<compile_context>
chip_gen: v6e
topology: v6e:2x2x1
jax: 0.10.0
libtpu: 0.0.40
codegen_flags: <defaults>
</compile_context>

<pallas_src>
import functools

import jax
import jax.numpy as jnp
import numpy as np
from jax.experimental import pallas as pl
from jax.experimental.pallas import tpu as pltpu


# ----------------------------- Pallas kernel ------------------------------

def _fused_net_kernel(x_ref, t1_ref, b1_ref, t2_ref, b2_ref,
                      w3_ref, b3_ref, w4_ref, b4_ref, o_ref):
    f32 = jnp.float32
    # conv1 (3->1, k=32, pad=1) as a single lane-dense Toeplitz GEMM.
    h = jnp.dot(x_ref[...], t1_ref[...], preferred_element_type=f32)
    h = jnp.maximum(h + b1_ref[...], 0.0)                       # (M, 128)
    # conv2 (1->32, k=3, pad=1) as a Toeplitz GEMM whose output is already in
    # (oh, ow, co) flatten order -> no NHWC/NCHW transpose, stays in vregs.
    h = jnp.dot(h.astype(t2_ref.dtype), t2_ref[...], preferred_element_type=f32)
    h = jnp.maximum(h + b2_ref[...], 0.0)                       # (M, 2688)
    # fc1 + ReLU (fc1 weight rows pre-permuted to the (oh, ow, co) order above).
    h = jnp.dot(h.astype(w3_ref.dtype), w3_ref[...], preferred_element_type=f32)
    h = jnp.maximum(h + b3_ref[...], 0.0)                       # (M, 128)
    # TODO(synk): nn.Dropout(0.5) is identity in eval/inference mode; training-time
    # random masking/scaling is not implemented here.
    out = jnp.dot(h.astype(w4_ref.dtype), w4_ref[...], preferred_element_type=f32)
    o_ref[...] = (out + b4_ref[...]).astype(o_ref.dtype)        # (M, 128) lane-dense store


# --------------------------- one-time param prep ---------------------------

def _round_up(x, m):
    return ((x + m - 1) // m) * m


def _pad2d(a, rows, cols):
    return jnp.pad(a, ((0, rows - a.shape[0]), (0, cols - a.shape[1])))


def _conv_toeplitz(w, in_h, in_w, pad):
    """Stride-1 conv as a dense matrix.

    w: (Cout, Cin, KH, KW).  Returns T of shape
    (Cin*in_h*in_w, out_h*out_w*Cout) with rows in (c, h, w) order (unpadded
    input coords; zero padding is folded in) and cols in (oh, ow, co) order, so
    that  conv(x)  ==  x.reshape(N, -1) @ T  (NCHW flatten on the input side).
    """
    Cout, Cin, KH, KW = w.shape
    out_h = in_h + 2 * pad - KH + 1
    out_w = in_w + 2 * pad - KW + 1
    kh = jnp.arange(in_h)[:, None] - jnp.arange(out_h)[None, :] + pad   # (in_h, out_h)
    kw = jnp.arange(in_w)[:, None] - jnp.arange(out_w)[None, :] + pad   # (in_w, out_w)
    mh = (kh >= 0) & (kh < KH)
    mw = (kw >= 0) & (kw < KW)
    wt = jnp.transpose(w, (1, 2, 3, 0))                                 # (Cin, KH, KW, Cout)
    t = wt[:, jnp.clip(kh, 0, KH - 1)]                                  # (Cin, in_h, out_h, KW, Cout)
    t = t[:, :, :, jnp.clip(kw, 0, KW - 1)]                             # (Cin, in_h, out_h, in_w, out_w, Cout)
    t = t * (mh[None, :, :, None, None, None] & mw[None, None, None, :, :, None])
    t = jnp.transpose(t, (0, 1, 3, 2, 4, 5))                            # (Cin, in_h, in_w, out_h, out_w, Cout)
    return t.reshape(Cin * in_h * in_w, out_h * out_w * Cout)


def prepare_params(params, input_dim, n_classes, mxu_dtype=jnp.bfloat16):
    """One-time relayout of the PyTorch-style params into lane-dense kernel operands."""
    oh = input_dim + 2 - 32 + 1                  # conv1 spatial output
    assert oh == input_dim // 4, "module only consistent for input_dim == 38"
    ohw = oh * oh                                # 81
    k1 = 3 * input_dim * input_dim               # 4332
    k1p = _round_up(k1, 128)                     # 4352 (also multiple of 16 for bf16 sublanes)
    ohwp = _round_up(ohw, 128)                   # 128
    f2 = ohw * 32                                # 2592
    f2p = _round_up(f2, 128)                     # 2688
    fcp = 128                                    # fc1-out / fc2 padded lanes

    # conv1: Toeplitz (K1, OH*OW) zero-padded to (K1P, 128).  Zero K-pad rows
    # and zero output-pad cols keep the GEMM exact; bias pad cols stay 0 so the
    # padded conv1 output columns are exactly zero.
    t1 = _pad2d(_conv_toeplitz(params["conv1_w"], input_dim, input_dim, pad=1), k1p, ohwp)
    b1 = jnp.zeros((1, ohwp), jnp.float32).at[:, :ohw].set(
        jnp.broadcast_to(params["conv1_b"].reshape(1, 1), (1, ohw)))

    # conv2: Toeplitz (OH*OW, OH*OW*32) zero-padded to (128, 2688); zero pad
    # rows make the padded conv1 columns harmless, zero pad cols keep the
    # padded feature columns exactly zero.
    t2 = _pad2d(_conv_toeplitz(params["conv2_w"], oh, oh, pad=1), ohwp, f2p)
    b2 = jnp.zeros((1, f2p), jnp.float32).at[:, :f2].set(
        jnp.tile(params["conv2_b"], ohw).reshape(1, f2))

    # fc1 weight with rows permuted from PyTorch (co, oh, ow) flatten order to
    # the (oh, ow, co) order the conv2 Toeplitz GEMM produces; rows padded to
    # 2688 (zeros) and output cols padded 32 -> 128 (zeros).
    w3 = params["fc1_w"].reshape(32, 32, ohw)                    # (out, co, ohow)
    w3 = jnp.transpose(w3, (2, 1, 0)).reshape(f2, 32)            # rows = (ohow, co)
    w3 = _pad2d(w3, f2p, fcp)
    b3 = jnp.zeros((1, fcp), jnp.float32).at[:, :32].set(params["fc1_b"].reshape(1, 32))

    # fc2 as a single clean (128, 128) MXU tile (logits sliced to n_classes outside).
    w4 = jnp.zeros((fcp, fcp), jnp.float32).at[:32, :n_classes].set(params["fc2_w"].T)
    b4 = jnp.zeros((1, fcp), jnp.float32).at[:, :n_classes].set(params["fc2_b"].reshape(1, -1))

    return dict(
        t1=t1.astype(mxu_dtype), b1=b1.astype(jnp.float32),
        t2=t2.astype(mxu_dtype), b2=b2.astype(jnp.float32),
        w3=w3.astype(mxu_dtype), b3=b3.astype(jnp.float32),
        w4=w4.astype(mxu_dtype), b4=b4.astype(jnp.float32),
    )


# ------------------------------- forward ----------------------------------

def network_forward(prep, x, n_classes):
    n = x.shape[0]
    k1 = x.shape[1] * x.shape[2] * x.shape[3]
    k1p = prep["t1"].shape[0]                    # 4352 (128-aligned contraction)
    fcp = prep["w4"].shape[1]                    # 128

    # Batch tiling: small batches get one minimally padded (sublane-aligned)
    # tile; large batches tile at 128 rows and the M-grid is megacore-parallel.
    block_m = 128 if n >= 128 else _round_up(max(n, 1), 8)
    m = _round_up(n, block_m)
    grid_m = m // block_m

    # Single fused wrapper op on the input: reshape + zero pad (rows to the
    # tile, cols to the aligned K) + bf16 cast.  All weight relayout is
    # one-time in prepare_params(); zero pad rows/cols compute harmless junk
    # that is sliced off / multiplied by zero weights.
    xf = jnp.pad(x.reshape(n, k1), ((0, m - n), (0, k1p - k1))).astype(prep["t1"].dtype)

    operands = (xf, prep["t1"], prep["b1"], prep["t2"], prep["b2"],
                prep["w3"], prep["b3"], prep["w4"], prep["b4"])

    # x / out are tiled over the batch grid; every weight uses a constant
    # index_map so it stays VMEM-resident across grid steps.
    in_specs = [pl.BlockSpec((block_m, k1p), lambda i: (i, 0))]
    in_specs += [pl.BlockSpec(a.shape, lambda i: (0, 0)) for a in operands[1:]]

    # Scoped-VMEM budget from the real footprint (double-buffered operands +
    # headroom for in-kernel f32 intermediates), instead of a blanket 32 MiB.
    weight_bytes = sum(int(a.size) * a.dtype.itemsize for a in operands[1:])
    io_bytes = block_m * k1p * xf.dtype.itemsize + block_m * fcp * 4
    vmem_limit = int(2 * (weight_bytes + io_bytes) + (8 << 20))

    out = pl.pallas_call(
        _fused_net_kernel,
        out_shape=jax.ShapeDtypeStruct((m, fcp), jnp.float32),
        grid=(grid_m,),
        in_specs=in_specs,
        out_specs=pl.BlockSpec((block_m, fcp), lambda i: (i, 0)),
        compiler_params=pltpu.CompilerParams(
            dimension_semantics=("parallel",),       # lets v7x shard batch tiles over both TCs
            vmem_limit_bytes=vmem_limit),
    )(*operands)
    return out[:n, :n_classes]


# ----------------------------- reference path ------------------------------

def reference_forward(params, x):
    dn = ("NCHW", "OIHW", "NCHW")
    hp = jax.lax.Precision.HIGHEST
    y = jax.lax.conv_general_dilated(x, params["conv1_w"], (1, 1), ((1, 1), (1, 1)),
                                     dimension_numbers=dn, precision=hp)
    y = jax.nn.relu(y + params["conv1_b"].reshape(1, -1, 1, 1))
    y = jax.lax.conv_general_dilated(y, params["conv2_w"], (1, 1), ((1, 1), (1, 1)),
                                     dimension_numbers=dn, precision=hp)
    y = jax.nn.relu(y + params["conv2_b"].reshape(1, -1, 1, 1))
    y = y.reshape(y.shape[0], -1)
    y = jax.nn.relu(jnp.dot(y, params["fc1_w"].T, precision=hp) + params["fc1_b"])
    return jnp.dot(y, params["fc2_w"].T, precision=hp) + params["fc2_b"]


def init_params(key, input_dim, n_classes):
    fdim = 32 * (input_dim // 4) * (input_dim // 4)
    ks = jax.random.split(key, 8)
    s = 0.02
    return dict(
        conv1_w=s * jax.random.normal(ks[0], (1, 3, 32, 32), jnp.float32),
        conv1_b=s * jax.random.normal(ks[1], (1,), jnp.float32),
        conv2_w=s * jax.random.normal(ks[2], (32, 1, 3, 3), jnp.float32),
        conv2_b=s * jax.random.normal(ks[3], (32,), jnp.float32),
        fc1_w=s * jax.random.normal(ks[4], (32, fdim), jnp.float32),
        fc1_b=s * jax.random.normal(ks[5], (32,), jnp.float32),
        fc2_w=s * jax.random.normal(ks[6], (n_classes, 32), jnp.float32),
        fc2_b=s * jax.random.normal(ks[7], (n_classes,), jnp.float32),
    )


if __name__ == "__main__":
    # input_dim = 38 is the only size consistent with conv1(k=32, pad=1) feeding
    # fc1's 32 * (input_dim // 4)^2 input features (38 - 29 == 38 // 4 == 9).
    batch, input_dim, n_classes = 2, 38, 10

    key = jax.random.PRNGKey(0)
    k_params, k_x = jax.random.split(key)
    params = init_params(k_params, input_dim, n_classes)
    x = jax.random.normal(k_x, (batch, 3, input_dim, input_dim), jnp.float32)

    # One-time weight relayout (hoisted out of the per-call forward path).
    prep = jax.tree_util.tree_map(jax.block_until_ready,
                                  prepare_params(params, input_dim, n_classes))

    fwd = jax.jit(functools.partial(network_forward, n_classes=n_classes))
    logits = fwd(prep, x)
    jax.block_until_ready(logits)
    assert logits.shape == (batch, n_classes), logits.shape

    ref = reference_forward(params, x)
    np.testing.assert_allclose(np.asarray(logits), np.asarray(ref), rtol=2e-2, atol=2e-2)

    print("KERNEL_OK")
</pallas_src>

<mosaic_0001>
module attributes {stable_mosaic.version = 11 : i64} {
  func.func @_fused_net_kernel(%arg0: i32, %arg1: memref<8x4352xbf16, #tpu.memory_space<vmem>>, %arg2: memref<4352x128xbf16, #tpu.memory_space<vmem>>, %arg3: memref<1x128xf32, #tpu.memory_space<vmem>>, %arg4: memref<128x2688xbf16, #tpu.memory_space<vmem>>, %arg5: memref<1x2688xf32, #tpu.memory_space<vmem>>, %arg6: memref<2688x128xbf16, #tpu.memory_space<vmem>>, %arg7: memref<1x128xf32, #tpu.memory_space<vmem>>, %arg8: memref<128x128xbf16, #tpu.memory_space<vmem>>, %arg9: memref<1x128xf32, #tpu.memory_space<vmem>>, %arg10: memref<8x128xf32, #tpu.memory_space<vmem>>) attributes {dimension_semantics = [#tpu.dimension_semantics<parallel>], iteration_bounds = array<i64: 1>, scalar_prefetch = 0 : i64, scratch_operands = 0 : i64, tpu.core_type = #tpu.core_type<tc>, window_params = [{transform_indices = @transform_0, window_bounds = array<i64: 8, 4352>}, {pipeline_mode = #tpu.pipeline_mode<synchronous>, transform_indices = @transform_1, window_bounds = array<i64: 4352, 128>}, {pipeline_mode = #tpu.pipeline_mode<synchronous>, transform_indices = @transform_2, window_bounds = array<i64: 1, 128>}, {pipeline_mode = #tpu.pipeline_mode<synchronous>, transform_indices = @transform_3, window_bounds = array<i64: 128, 2688>}, {pipeline_mode = #tpu.pipeline_mode<synchronous>, transform_indices = @transform_4, window_bounds = array<i64: 1, 2688>}, {pipeline_mode = #tpu.pipeline_mode<synchronous>, transform_indices = @transform_5, window_bounds = array<i64: 2688, 128>}, {pipeline_mode = #tpu.pipeline_mode<synchronous>, transform_indices = @transform_6, window_bounds = array<i64: 1, 128>}, {pipeline_mode = #tpu.pipeline_mode<synchronous>, transform_indices = @transform_7, window_bounds = array<i64: 128, 128>}, {pipeline_mode = #tpu.pipeline_mode<synchronous>, transform_indices = @transform_8, window_bounds = array<i64: 1, 128>}, {transform_indices = @transform_9, window_bounds = array<i64: 8, 128>}]} {
    %c0 = arith.constant 0 : index
    %c0_0 = arith.constant 0 : index
    %0 = vector.load %arg1[%c0, %c0_0] : memref<8x4352xbf16, #tpu.memory_space<vmem>>, vector<8x4352xbf16>
    %c0_1 = arith.constant 0 : index
    %c0_2 = arith.constant 0 : index
    %1 = vector.load %arg2[%c0_1, %c0_2] : memref<4352x128xbf16, #tpu.memory_space<vmem>>, vector<4352x128xbf16>
    %cst = arith.constant dense<0.000000e+00> : vector<8x128xf32>
    %2 = tpu.matmul %0, %1, %cst {dimension_numbers = #tpu.dot_dimension_numbers<[1], [0], [0], [1], [0, 0, 1, 1], [], []>} : vector<8x4352xbf16>, vector<4352x128xbf16>, vector<8x128xf32> -> vector<8x128xf32>
    %c0_3 = arith.constant 0 : index
    %c0_4 = arith.constant 0 : index
    %3 = vector.load %arg3[%c0_3, %c0_4] : memref<1x128xf32, #tpu.memory_space<vmem>>, vector<1x128xf32>
    %4 = vector.broadcast %3 : vector<1x128xf32> to vector<8x128xf32>
    %5 = arith.addf %2, %4 : vector<8x128xf32>
    %cst_5 = arith.constant 0.000000e+00 : f32
    %6 = vector.broadcast %cst_5 : f32 to vector<8x128xf32>
    %7 = arith.maximumf %5, %6 : vector<8x128xf32>
    %8 = arith.truncf %7 : vector<8x128xf32> to vector<8x128xbf16>
    %c0_6 = arith.constant 0 : index
    %c0_7 = arith.constant 0 : index
    %9 = vector.load %arg4[%c0_6, %c0_7] : memref<128x2688xbf16, #tpu.memory_space<vmem>>, vector<128x2688xbf16>
    %cst_8 = arith.constant dense<0.000000e+00> : vector<8x2688xf32>
    %10 = tpu.matmul %8, %9, %cst_8 {dimension_numbers = #tpu.dot_dimension_numbers<[1], [0], [0], [1], [0, 0, 1, 1], [], []>} : vector<8x128xbf16>, vector<128x2688xbf16>, vector<8x2688xf32> -> vector<8x2688xf32>
    %c0_9 = arith.constant 0 : index
    %c0_10 = arith.constant 0 : index
    %11 = vector.load %arg5[%c0_9, %c0_10] : memref<1x2688xf32, #tpu.memory_space<vmem>>, vector<1x2688xf32>
    %12 = vector.broadcast %11 : vector<1x2688xf32> to vector<8x2688xf32>
    %13 = arith.addf %10, %12 : vector<8x2688xf32>
    %cst_11 = arith.constant 0.000000e+00 : f32
    %14 = vector.broadcast %cst_11 : f32 to vector<8x2688xf32>
    %15 = arith.maximumf %13, %14 : vector<8x2688xf32>
    %16 = arith.truncf %15 : vector<8x2688xf32> to vector<8x2688xbf16>
    %c0_12 = arith.constant 0 : index
    %c0_13 = arith.constant 0 : index
    %17 = vector.load %arg6[%c0_12, %c0_13] : memref<2688x128xbf16, #tpu.memory_space<vmem>>, vector<2688x128xbf16>
    %cst_14 = arith.constant dense<0.000000e+00> : vector<8x128xf32>
    %18 = tpu.matmul %16, %17, %cst_14 {dimension_numbers = #tpu.dot_dimension_numbers<[1], [0], [0], [1], [0, 0, 1, 1], [], []>} : vector<8x2688xbf16>, vector<2688x128xbf16>, vector<8x128xf32> -> vector<8x128xf32>
    %c0_15 = arith.constant 0 : index
    %c0_16 = arith.constant 0 : index
    %19 = vector.load %arg7[%c0_15, %c0_16] : memref<1x128xf32, #tpu.memory_space<vmem>>, vector<1x128xf32>
    %20 = vector.broadcast %19 : vector<1x128xf32> to vector<8x128xf32>
    %21 = arith.addf %18, %20 : vector<8x128xf32>
    %cst_17 = arith.constant 0.000000e+00 : f32
    %22 = vector.broadcast %cst_17 : f32 to vector<8x128xf32>
    %23 = arith.maximumf %21, %22 : vector<8x128xf32>
    %24 = arith.truncf %23 : vector<8x128xf32> to vector<8x128xbf16>
    %c0_18 = arith.constant 0 : index
    %c0_19 = arith.constant 0 : index
    %25 = vector.load %arg8[%c0_18, %c0_19] : memref<128x128xbf16, #tpu.memory_space<vmem>>, vector<128x128xbf16>
    %cst_20 = arith.constant dense<0.000000e+00> : vector<8x128xf32>
    %26 = tpu.matmul %24, %25, %cst_20 {dimension_numbers = #tpu.dot_dimension_numbers<[1], [0], [0], [1], [0, 0, 1, 1], [], []>} : vector<8x128xbf16>, vector<128x128xbf16>, vector<8x128xf32> -> vector<8x128xf32>
    %c0_21 = arith.constant 0 : index
    %c0_22 = arith.constant 0 : index
    %27 = vector.load %arg9[%c0_21, %c0_22] : memref<1x128xf32, #tpu.memory_space<vmem>>, vector<1x128xf32>
    %28 = vector.broadcast %27 : vector<1x128xf32> to vector<8x128xf32>
    %29 = arith.addf %26, %28 : vector<8x128xf32>
    %c0_23 = arith.constant 0 : index
    %c0_24 = arith.constant 0 : index
    %30 = vector.load %arg10[%c0_23, %c0_24] : memref<8x128xf32, #tpu.memory_space<vmem>>, vector<8x128xf32>
    tpu.vector_store %arg10[%c0_23, %c0_24], %29 {strides = array<i32>} : memref<8x128xf32, #tpu.memory_space<vmem>>, vector<8x128xf32>,
    return
  }
  func.func @transform_0(%arg0: i32) -> (i32, i32) {
    %c0_i32 = arith.constant 0 : i32
    %c0_i32_0 = arith.constant 0 : i32
    return %arg0, %c0_i32 : i32, i32
  }
  func.func @transform_1(%arg0: i32) -> (i32, i32) {
    %c0_i32 = arith.constant 0 : i32
    %c0_i32_0 = arith.constant 0 : i32
    %c0_i32_1 = arith.constant 0 : i32
    return %c0_i32, %c0_i32_0 : i32, i32
  }
  func.func @transform_2(%arg0: i32) -> (i32, i32) {
    %c0_i32 = arith.constant 0 : i32
    %c0_i32_0 = arith.constant 0 : i32
    %c0_i32_1 = arith.constant 0 : i32
    return %c0_i32, %c0_i32_0 : i32, i32
  }
  func.func @transform_3(%arg0: i32) -> (i32, i32) {
    %c0_i32 = arith.constant 0 : i32
    %c0_i32_0 = arith.constant 0 : i32
    %c0_i32_1 = arith.constant 0 : i32
    return %c0_i32, %c0_i32_0 : i32, i32
  }
  func.func @transform_4(%arg0: i32) -> (i32, i32) {
    %c0_i32 = arith.constant 0 : i32
    %c0_i32_0 = arith.constant 0 : i32
    %c0_i32_1 = arith.constant 0 : i32
    return %c0_i32, %c0_i32_0 : i32, i32
  }
  func.func @transform_5(%arg0: i32) -> (i32, i32) {
    %c0_i32 = arith.constant 0 : i32
    %c0_i32_0 = arith.constant 0 : i32
    %c0_i32_1 = arith.constant 0 : i32
    return %c0_i32, %c0_i32_0 : i32, i32
  }
  func.func @transform_6(%arg0: i32) -> (i32, i32) {
    %c0_i32 = arith.constant 0 : i32
    %c0_i32_0 = arith.constant 0 : i32
    %c0_i32_1 = arith.constant 0 : i32
    return %c0_i32, %c0_i32_0 : i32, i32
  }
  func.func @transform_7(%arg0: i32) -> (i32, i32) {
    %c0_i32 = arith.constant 0 : i32
    %c0_i32_0 = arith.constant 0 : i32
    %c0_i32_1 = arith.constant 0 : i32
    return %c0_i32, %c0_i32_0 : i32, i32
  }
  func.func @transform_8(%arg0: i32) -> (i32, i32) {
    %c0_i32 = arith.constant 0 : i32
    %c0_i32_0 = arith.constant 0 : i32
    %c0_i32_1 = arith.constant 0 : i32
    return %c0_i32, %c0_i32_0 : i32, i32
  }
  func.func @transform_9(%arg0: i32) -> (i32, i32) {
    %c0_i32 = arith.constant 0 : i32
    %c0_i32_0 = arith.constant 0 : i32
    return %arg0, %c0_i32 : i32, i32
  }
}

</mosaic_0001>

<bundles_post_ra>
// kernel: network_forward.1
= control target key start
LH: loop header
LB: loop body
LE: loop exit
PB: predicated region body
PF: predicated region fallthrough
CT: control target
= control target key end

     0   :  { %14 = vsyncpa [#allocation3], 0  ;;  %s9207_s0 = inlined_call_operand.vmem [shape: bf16[8,4352], index: 0, kind: input, shape index: {}]   ;;  %s9208_s1 = inlined_call_operand.hbm [shape: bf16[4352,128], index: 1, kind: input, shape index: {}]   ;;  %s9209_s2 = inlined_call_operand.hbm [shape: f32[1,128], index: 2, kind: input, shape index: {}]   ;;  %s9210_s3 = inlined_call_operand.hbm [shape: bf16[128,2688], index: 3, kind: input, shape index: {}]   ;;  %s9211_s4 = inlined_call_operand.hbm [shape: f32[1,2688], index: 4, kind: input, shape index: {}]   ;;  %s9212_s5 = inlined_call_operand.hbm [shape: bf16[2688,128], index: 5, kind: input, shape index: {}]   ;;  %s9213_s6 = inlined_call_operand.hbm [shape: f32[1,128], index: 6, kind: input, shape index: {}]   ;;  %s9214_s7 = inlined_call_operand.hbm [shape: bf16[128,128], index: 7, kind: input, shape index: {}]   ;;  %s9215_s8 = inlined_call_operand.hbm [shape: f32[1,128], index: 8, kind: input, shape index: {}]   ;;  %s9216_s9 = inlined_call_operand.vmem [shape: f32[8,128], index: 9, kind: output, shape index: {}]  }
   0x1   :  { %15 = vsyncpa [#allocation5], 0 }
   0x2   :  { %16 = vsyncpa [#allocation8], 0 }
   0x3   :  { %17 = vsyncpa [#allocation11], 0 }
   0x4   :  { %18 = vsyncpa [#allocation14], 0  ;;  %s8925_s30 = smov [#allocation4]   ;;  %s8926_s11 = smov [#allocation7]  }
   0x5   :  { %s39_s10 = sshll.u32 %s8925_s30, 4  ;;  %s61_s12 = sshll.u32 %s8926_s11, 4  ;;  %s40_s10 = int_to_ptr.vmem [resolvable:$true] %s39_s10  ;;  %s62_s12 = int_to_ptr.vmem [resolvable:$true] %s61_s12 }
   0x6   :  { %s8763_s13 = scalar_lea.vmem %s40_s10, 16  ;;  %s8767_s14 = scalar_lea.vmem %s40_s10, 32 }
   0x7   :  { %p8764_p0 = scmp.ne.s32.totalorder %s40_s10, %s8763_s13  ;;  %p8768_p1 = scmp.lt.s32.totalorder %s40_s10, %s40_s10 }
   0x8   :  { %p8769_p2 = scmp.lt.s32.totalorder %s8767_s14, %s8763_s13 }
   0xa   :  { %p8770_p3 = por %p8769_p2, %p8768_p1 }
   0xc   :  { %p8771_p4 = pnand %p8770_p3, %p8764_p0 }
   0xe   :  { %8774 = shalt.err (!%p8771_p4)
}
   0xf   :  { %42 = dma.hbm_to_vmem [thread:$0]  %s9209_s2, 16, %s40_s10, [#allocation5]  }
  0x10   :  { %s8783_s17 = scalar_lea.vmem %s62_s12, 336  ;;  %s8787_s18 = scalar_lea.vmem %s62_s12, 352 }
  0x11   :  { %p8784_p5 = scmp.ne.s32.totalorder %s62_s12, %s8783_s17  ;;  %p8788_p6 = scmp.lt.s32.totalorder %s62_s12, %s62_s12 }
  0x12   :  { %p8789_p7 = scmp.lt.s32.totalorder %s8787_s18, %s8783_s17 }
  0x14   :  { %p8790_p8 = por %p8789_p7, %p8788_p6 }
  0x16   :  { %p8791_p9 = pnand %p8790_p8, %p8784_p5 }
  0x18   :  { %8794 = shalt.err (!%p8791_p9)
}
  0x19   :  { %64 = dma.hbm_to_vmem [thread:$0]  %s9211_s4, 336, %s62_s12, [#allocation8]  }
  0x1a   :  { %s8927_s21 = smov [#allocation10]   ;;  %s8928_s23 = smov [#allocation2]  }
  0x1b   :  { %s83_s22 = sshll.u32 %s8927_s21, 4  ;;  %s26_s24 = sshll.u32 %s8928_s23, 4  ;;  %s84_s22 = int_to_ptr.vmem [resolvable:$true] %s83_s22  ;;  %s27_s24 = int_to_ptr.vmem [resolvable:$true] %s26_s24 }
  0x1c   :  { %s8803_s25 = scalar_lea.vmem %s84_s22, 16  ;;  %s8807_s2 = scalar_lea.vmem %s84_s22, 32 }
  0x1d   :  { %p8804_p10 = scmp.ne.s32.totalorder %s84_s22, %s8803_s25  ;;  %p8808_p11 = scmp.lt.s32.totalorder %s84_s22, %s84_s22 }
  0x1e   :  { %p8809_p12 = scmp.lt.s32.totalorder %s8807_s2, %s8803_s25 }
  0x20   :  { %p8810_p13 = por %p8809_p12, %p8808_p11 }
  0x22   :  { %p8811_p0 = pnand %p8810_p13, %p8804_p10 }
  0x24   :  { %8814 = shalt.err (!%p8811_p0)
}
  0x25   :  { %86 = dma.hbm_to_vmem [thread:$0]  %s9213_s6, 16, %s84_s22, [#allocation11]  }
  0x26   :  { %s8823_s28 = scalar_lea.vmem %s27_s24, 34816  ;;  %p8828_p2 = scmp.lt.s32.totalorder %s27_s24, %s27_s24 }
  0x27   :  { %p8824_p1 = scmp.ne.s32.totalorder %s27_s24, %s8823_s28  ;;  %p8829_p3 = scmp.lt.s32.totalorder %s8823_s28, %s8823_s28 }
  0x29   :  { %p8830_p4 = por %p8829_p3, %p8828_p2 }
  0x2b   :  { %p8831_p5 = pnand %p8830_p4, %p8824_p1 }
  0x2d   :  { %8834 = shalt.err (!%p8831_p5)
}
  0x2e   :  { %s8929_s4 = smov 64   ;;  %s8930_s29 = smov 4  }
  0x2f   :  { %32 = dma.hbm_to_vmem [thread:$0]  %s9208_s1, 34816, %s27_s24, [#allocation3], %s8929_s4, %s8929_s4, %s8930_s29  }
  0x30   :  { %s8931_s11 = smov [#allocation6]  }
  0x31   :  { %s48_s12 = sshll.u32 %s8931_s11, 4  ;;  %s49_s12 = int_to_ptr.vmem [resolvable:$true] %s48_s12 }
  0x32   :  { %s8843_s6 = scalar_lea.vmem %s49_s12, 21504  ;;  %p8848_p7 = scmp.lt.s32.totalorder %s49_s12, %s49_s12 }
  0x33   :  { %p8844_p6 = scmp.ne.s32.totalorder %s49_s12, %s8843_s6  ;;  %p8849_p8 = scmp.lt.s32.totalorder %s8843_s6, %s8843_s6 }
  0x35   :  { %p8850_p9 = por %p8849_p8, %p8848_p7 }
  0x37   :  { %p8851_p10 = pnand %p8850_p9, %p8844_p6 }
  0x39   :  { %8854 = shalt.err (!%p8851_p10)
}
  0x3a   :  { %s8932_s13 = smov 1344   ;;  %s8933_s14 = smov 84  }
  0x3b   :  { %54 = dma.hbm_to_vmem [thread:$0]  %s9210_s3, 21504, %s49_s12, [#allocation5], %s8932_s13, %s8932_s13, %s8933_s14  }
  0x3c   :  { %s8934_s17 = smov [#allocation9]   ;;  %s8935_s1 = smov [#allocation12]  }
  0x3d   :  { %s70_s18 = sshll.u32 %s8934_s17, 4  ;;  %s92_s19 = sshll.u32 %s8935_s1, 4  ;;  %s71_s18 = int_to_ptr.vmem [resolvable:$true] %s70_s18  ;;  %s93_s19 = int_to_ptr.vmem [resolvable:$true] %s92_s19 }
  0x3e   :  { %s8863_s20 = scalar_lea.vmem %s71_s18, 21504  ;;  %p8868_p12 = scmp.lt.s32.totalorder %s71_s18, %s71_s18 }
  0x3f   :  { %p8864_p11 = scmp.ne.s32.totalorder %s71_s18, %s8863_s20  ;;  %p8869_p13 = scmp.lt.s32.totalorder %s8863_s20, %s8863_s20 }
  0x41   :  { %p8870_p0 = por %p8869_p13, %p8868_p12 }
  0x43   :  { %p8871_p1 = pnand %p8870_p0, %p8864_p11 }
  0x45   :  { %8874 = shalt.err (!%p8871_p1)
}
  0x46   :  { %76 = dma.hbm_to_vmem [thread:$0]  %s9212_s5, 21504, %s71_s18, [#allocation8], %s8929_s4, %s8929_s4, %s8930_s29  }
  0x47   :  { %s8883_s3 = scalar_lea.vmem %s93_s19, 1024  ;;  %p8888_p3 = scmp.lt.s32.totalorder %s93_s19, %s93_s19 }
  0x48   :  { %p8884_p2 = scmp.ne.s32.totalorder %s93_s19, %s8883_s3  ;;  %p8889_p4 = scmp.lt.s32.totalorder %s8883_s3, %s8883_s3 }
  0x4a   :  { %p8890_p5 = por %p8889_p4, %p8888_p3 }
  0x4c   :  { %p8891_p6 = pnand %p8890_p5, %p8884_p2 }
  0x4e   :  { %8894 = shalt.err (!%p8891_p6)
}
  0x4f   :  { %98 = dma.hbm_to_vmem [thread:$0]  %s9214_s7, 1024, %s93_s19, [#allocation11], %s8929_s4, %s8929_s4, %s8930_s29  }
  0x50   :  { %s8936_s25 = smov [#allocation13]  }
  0x51   :  { %s105_s2 = sshll.u32 %s8936_s25, 4  ;;  %s106_s2 = int_to_ptr.vmem [resolvable:$true] %s105_s2 }
  0x52   :  { %s8903_s26 = scalar_lea.vmem %s106_s2, 16  ;;  %s8907_s5 = scalar_lea.vmem %s106_s2, 32 }
  0x53   :  { %p8904_p7 = scmp.ne.s32.totalorder %s106_s2, %s8903_s26  ;;  %p8908_p8 = scmp.lt.s32.totalorder %s106_s2, %s106_s2 }
  0x54   :  { %p8909_p9 = scmp.lt.s32.totalorder %s8907_s5, %s8903_s26 }
  0x56   :  { %p8910_p10 = por %p8909_p9, %p8908_p8 }
  0x58   :  { %p8911_p11 = pnand %p8910_p10, %p8904_p7 }
  0x5a   :  { %8914 = shalt.err (!%p8911_p11)
}
  0x5b   :  { %108 = dma.hbm_to_vmem [thread:$0]  %s9215_s8, 16, %s106_s2, [#allocation14]  }
  0x5c   :  { %8915 = dma.done.wait [#allocation3], 34816  }
  0x5d   :  { %8916 = vsyncadd [#allocation3], 4294932480 }
  0x5e   :  { %8917 = dma.done.wait [#allocation5], 21520  }
  0x5f   :  { %8918 = vsyncadd [#allocation5], 4294945776 }
  0x60   :  { %8919 = dma.done.wait [#allocation8], 21840  }
  0x61   :  { %8920 = vsyncadd [#allocation8], 4294945456 }
  0x62   :  { %8921 = dma.done.wait [#allocation11], 1040  }
  0x63   :  { %8922 = vsyncadd [#allocation11], 4294966256 }
  0x64   :  { %8923 = dma.done.wait [#allocation14], 16  }
  0x65   :  { %8924 = vsyncadd [#allocation14], 4294967280  ;;  %v8025_v0 = vld [vmem:[#allocation2 + $0x78] sm:$0xff]   ;;  %v8029_v4 = vld [vmem:[#allocation2 + $0x70] sm:$0xff]   ;;  %vm8939_vm0 = vmmov 0  }
  0x66   :  { %v8026_v1 = vld [vmem:[#allocation2 + $0x38] sm:$0xff]   ;;  %7329 = vmatprep.subr.bf16.mxu0 %v8025_v0  ;;  %v8030_v5 = vld [vmem:[#allocation2 + $0x30] sm:$0xff]   ;;  %v8033_v8 = vld [vmem:[#allocation2 + $0x68] sm:$0xff]  }
  0x67   :  { %v8027_v2 = vld [vmem:[#allocation2 + $0xf8] sm:$0xff]   ;;  %7330 = vmatpush3.bf16.msra.mxu0 %v8026_v1  ;;  %v8031_v6 = vld [vmem:[#allocation2 + $0xf0] sm:$0xff]   ;;  %v8034_v9 = vld [vmem:[#allocation2 + $0x28] sm:$0xff]  }
  0x68   :  { %v8028_v3 = vld [vmem:[#allocation2 + $0xb8] sm:$0xff]   ;;  %7351 = vmatprep.subr.bf16.mxu1 %v8027_v2  ;;  %7331 = vmatprep.subr.bf16.mxu0 %v8029_v4  ;;  %v8032_v7 = vld [vmem:[#allocation2 + $0xb0] sm:$0xff]   ;;  %v8035_v10 = vld [vmem:[#allocation2 + $0xe8] sm:$0xff]  }
  0x69   :  { %7352 = vmatpush3.bf16.msra.mxu1 %v8028_v3  ;;  %v8036_v11 = vld [vmem:[#allocation2 + $0xa8] sm:$0xff]   ;;  %v8037_v12 = vld [vmem:[#allocation2 + $0x60] sm:$0xff]   ;;  %v8041_v16 = vld [vmem:[#allocation2 + $0x58] sm:$0xff]  }
  0x6a   :  { %7353 = vmatprep.subr.bf16.mxu1 %v8031_v6  ;;  %v8038_v13 = vld [vmem:[#allocation2 + $0x20] sm:$0xff]   ;;  %v8042_v17 = vld [vmem:[#allocation2 + $0x18] sm:$0xff]   ;;  %v8045_v20 = vld [vmem:[#allocation2 + $0x50] sm:$0xff]  }
  0x6b   :  { %7332 = vmatpush3.bf16.msra.mxu0 %v8030_v5  ;;  %v8039_v14 = vld [vmem:[#allocation2 + $0xe0] sm:$0xff]   ;;  %v8043_v18 = vld [vmem:[#allocation2 + $0xd8] sm:$0xff]   ;;  %v8046_v21 = vld [vmem:[#allocation2 + $0x10] sm:$0xff]  }
  0x6c   :  { %7333 = vmatprep.subr.bf16.mxu0 %v8033_v8  ;;  %v8040_v15 = vld [vmem:[#allocation2 + $0xa0] sm:$0xff]   ;;  %v8044_v19 = vld [vmem:[#allocation2 + $0x98] sm:$0xff]   ;;  %v8047_v22 = vld [vmem:[#allocation2 + $0xd0] sm:$0xff]  }
  0x6d   :  { %7354 = vmatpush3.bf16.msra.mxu1 %v8032_v7  ;;  %v8048_v23 = vld [vmem:[#allocation2 + $0x90] sm:$0xff]   ;;  %v8049_v24 = vld [vmem:[#allocation2 + $0x48] sm:$0xff]   ;;  %v8053_v28 = vld [vmem:[#allocation2 + $0x40] sm:$0xff]  }
  0x6e   :  { %7355 = vmatprep.subr.bf16.mxu1 %v8035_v10  ;;  %v8050_v25 = vld [vmem:[#allocation2 + $0x8] sm:$0xff]   ;;  %v8054_v29 = vld [vmem:[#allocation2] sm:$0xff]   ;;  %v8059_v35 = vld [vmem:[#allocation2 + $0x178] sm:$0xff]  }
  0x6f   :  { %7334 = vmatpush3.bf16.msra.mxu0 %v8034_v9  ;;  %v8051_v26 = vld [vmem:[#allocation2 + $0xc8] sm:$0xff]   ;;  %v8055_v30 = vld [vmem:[#allocation2 + $0xc0] sm:$0xff]   ;;  %v8062_v39 = vld [vmem:[#allocation2 + $0x138] sm:$0xff]  }
  0x70   :  { %7335 = vmatprep.subr.bf16.mxu0 %v8037_v12  ;;  %v8052_v27 = vld [vmem:[#allocation2 + $0x88] sm:$0xff]   ;;  %v134_v31 = vld [vmem:[%s9207_s0] sm:$0xff]  ;;  %v8063_v40 = vld [vmem:[#allocation2 + $0x1f8] sm:$0xff]  }
  0x71   :  { %7356 = vmatpush3.bf16.msra.mxu1 %v8036_v11  ;;  %v6677_v32 = vcombine.low %v134_v31, %v134_v31  ;;  %v6678_v33 = vcombine.high %v134_v31, %v134_v31  ;;  %v8058_v34 = vld [vmem:[#allocation2 + $0x80] sm:$0xff]   ;;  %v135_v36 = vld [vmem:[%s9207_s0 + $0x8] sm:$0xff]  ;;  %v8064_v41 = vld [vmem:[#allocation2 + $0x1b8] sm:$0xff]  }
  0x72   :  { %7357 = vmatprep.subr.bf16.mxu1 %v8039_v14  ;;  %v6679_v37 = vcombine.low %v135_v36, %v135_v36  ;;  %v6680_v38 = vcombine.high %v135_v36, %v135_v36  ;;  %v8065_v42 = vld [vmem:[#allocation2 + $0x170] sm:$0xff]   ;;  %v8069_v46 = vld [vmem:[#allocation2 + $0x168] sm:$0xff]   ;;  %v8073_v50 = vld [vmem:[#allocation2 + $0x160] sm:$0xff]  }
  0x73   :  { %7336 = vmatpush3.bf16.msra.mxu0 %v8038_v13  ;;  %2485 = vmatprep.mubr.bf16.mxu0 %v6678_v33  ;;  %v8066_v43 = vld [vmem:[#allocation2 + $0x130] sm:$0xff]   ;;  %v8070_v47 = vld [vmem:[#allocation2 + $0x128] sm:$0xff]   ;;  %v8074_v51 = vld [vmem:[#allocation2 + $0x120] sm:$0xff]  }
  0x74   :  { %7337 = vmatprep.subr.bf16.mxu0 %v8041_v16  ;;  %2525 = vmatprep.mubr.bf16.mxu1 %v6680_v38  ;;  %v8067_v44 = vld [vmem:[#allocation2 + $0x1f0] sm:$0xff]   ;;  %v8071_v48 = vld [vmem:[#allocation2 + $0x1e8] sm:$0xff]   ;;  %v8075_v52 = vld [vmem:[#allocation2 + $0x1e0] sm:$0xff]  }
  0x75   :  { %7358 = vmatpush3.bf16.msra.mxu1 %v8040_v15  ;;  %v8068_v45 = vld [vmem:[#allocation2 + $0x1b0] sm:$0xff]   ;;  %v8072_v49 = vld [vmem:[#allocation2 + $0x1a8] sm:$0xff]   ;;  %v8076_v53 = vld [vmem:[#allocation2 + $0x1a0] sm:$0xff]  }
  0x76   :  { %7359 = vmatprep.subr.bf16.mxu1 %v8043_v18  ;;  %v8077_v54 = vld [vmem:[#allocation2 + $0x158] sm:$0xff]   ;;  %v8081_v58 = vld [vmem:[#allocation2 + $0x150] sm:$0xff]   ;;  %v8085_v62 = vld [vmem:[#allocation2 + $0x148] sm:$0xff]  }
  0x77   :  { %7338 = vmatpush3.bf16.msra.mxu0 %v8042_v17  ;;  %v8078_v55 = vld [vmem:[#allocation2 + $0x118] sm:$0xff]   ;;  %v8082_v59 = vld [vmem:[#allocation2 + $0x110] sm:$0xff]   ;;  %v8086_v63 = vld [vmem:[#allocation2 + $0x108] sm:$0xff]  }
  0x78   :  { %7339 = vmatprep.subr.bf16.mxu0 %v8045_v20  ;;  %v8079_v56 = vld [vmem:[#allocation2 + $0x1d8] sm:$0xff]   ;;  %v8083_v60 = vld [vmem:[#allocation2 + $0x1d0] sm:$0xff]   ;;  %v8087_v0 = vld [vmem:[#allocation2 + $0x1c8] sm:$0xff]  }
  0x79   :  { %7360 = vmatpush3.bf16.msra.mxu1 %v8044_v19  ;;  %v8080_v57 = vld [vmem:[#allocation2 + $0x198] sm:$0xff]   ;;  %v8084_v61 = vld [vmem:[#allocation2 + $0x190] sm:$0xff]   ;;  %v8088_v1 = vld [vmem:[#allocation2 + $0x188] sm:$0xff]  }
  0x7a   :  { %7361 = vmatprep.subr.bf16.mxu1 %v8047_v22  ;;  %v8089_v2 = vld [vmem:[#allocation2 + $0x140] sm:$0xff]   ;;  %v136_v5 = vld [vmem:[%s9207_s0 + $0x10] sm:$0xff]  ;;  %v8095_v9 = vld [vmem:[#allocation2 + $0x278] sm:$0xff]  }
  0x7b   :  { %7340 = vmatpush3.bf16.msra.mxu0 %v8046_v21  ;;  %v8090_v3 = vld [vmem:[#allocation2 + $0x100] sm:$0xff]   ;;  %v6681_v6 = vcombine.low %v136_v5, %v136_v5  ;;  %v6682_v7 = vcombine.high %v136_v5, %v136_v5  ;;  %v137_v10 = vld [vmem:[%s9207_s0 + $0x18] sm:$0xff]  ;;  %v8101_v16 = vld [vmem:[#allocation2 + $0x270] sm:$0xff]  }
  0x7c   :  { %7341 = vmatprep.subr.bf16.mxu0 %v8049_v24  ;;  %v8091_v4 = vld [vmem:[#allocation2 + $0x1c0] sm:$0xff]   ;;  %v6683_v11 = vcombine.low %v137_v10, %v137_v10  ;;  %v6684_v12 = vcombine.high %v137_v10, %v137_v10  ;;  %v8098_v13 = vld [vmem:[#allocation2 + $0x238] sm:$0xff]   ;;  %v8102_v17 = vld [vmem:[#allocation2 + $0x230] sm:$0xff]  }
  0x7d   :  { %7362 = vmatpush3.bf16.msra.mxu1 %v8048_v23  ;;  %v8094_v8 = vld [vmem:[#allocation2 + $0x180] sm:$0xff]   ;;  %v8099_v14 = vld [vmem:[#allocation2 + $0x2f8] sm:$0xff]   ;;  %v8103_v18 = vld [vmem:[#allocation2 + $0x2f0] sm:$0xff]  }
  0x7e   :  { %7363 = vmatprep.subr.bf16.mxu1 %v8051_v26  ;;  %v8100_v15 = vld [vmem:[#allocation2 + $0x2b8] sm:$0xff]   ;;  %v8104_v19 = vld [vmem:[#allocation2 + $0x2b0] sm:$0xff]   ;;  %v8105_v20 = vld [vmem:[#allocation2 + $0x268] sm:$0xff]  }
  0x7f   :  { %7342 = vmatpush3.bf16.msra.mxu0 %v8050_v25  ;;  %v8106_v21 = vld [vmem:[#allocation2 + $0x228] sm:$0xff]   ;;  %v8109_v24 = vld [vmem:[#allocation2 + $0x260] sm:$0xff]   ;;  %v8116_v31 = vld [vmem:[#allocation2 + $0x298] sm:$0xff]  }
  0x80   :  { %7343 = vmatprep.subr.bf16.mxu0 %v8053_v28  ;;  %v8107_v22 = vld [vmem:[#allocation2 + $0x2e8] sm:$0xff]   ;;  %v8110_v25 = vld [vmem:[#allocation2 + $0x220] sm:$0xff]   ;;  %v8113_v28 = vld [vmem:[#allocation2 + $0x258] sm:$0xff]  }
  0x81   :  { %7364 = vmatpush3.bf16.msra.mxu1 %v8052_v27  ;;  %v8108_v23 = vld [vmem:[#allocation2 + $0x2a8] sm:$0xff]   ;;  %v8111_v26 = vld [vmem:[#allocation2 + $0x2e0] sm:$0xff]   ;;  %v8118_v33 = vld [vmem:[#allocation2 + $0x210] sm:$0xff]  }
  0x82   :  { %7365 = vmatprep.subr.bf16.mxu1 %v8055_v30  ;;  %v8112_v27 = vld [vmem:[#allocation2 + $0x2a0] sm:$0xff]   ;;  %v8115_v30 = vld [vmem:[#allocation2 + $0x2d8] sm:$0xff]   ;;  %v8121_v36 = vld [vmem:[#allocation2 + $0x248] sm:$0xff]  }
  0x83   :  { %7344 = vmatpush3.bf16.msra.mxu0 %v8054_v29  ;;  %v8114_v29 = vld [vmem:[#allocation2 + $0x218] sm:$0xff]   ;;  %v8123_v38 = vld [vmem:[#allocation2 + $0x2c8] sm:$0xff]  }
  0x84   :  { %7373 = vmatprep.subr.bf16.mxu0 %v8059_v35  ;;  %v8120_v35 = vld [vmem:[#allocation2 + $0x290] sm:$0xff]   ;;  %v8152_v5 = vld [vmem:[#allocation2 + $0x398] sm:$0xff]   ;;  %v8157_v10 = vld [vmem:[#allocation2 + $0x348] sm:$0xff]  }
  0x85   :  { %7366 = vmatpush3.bf16.msra.mxu1 %v8058_v34  ;;  %v8119_v34 = vld [vmem:[#allocation2 + $0x2d0] sm:$0xff]  }
  0x86   :  { %2486 = vmatmul.mubr.bf16.vlgmr.msra.gmra.mxu0 %v6677_v32  ;;  %7395 = vmatprep.subr.bf16.mxu1 %v8063_v40  ;;  %v8117_v32 = vld [vmem:[#allocation2 + $0x250] sm:$0xff]   ;;  %v8125_v40 = vld [vmem:[#allocation2 + $0x240] sm:$0xff]  }
  0x87   :  { %7374 = vmatpush3.bf16.msra.mxu0 %v8062_v39  ;;  %2565 = vmatprep.mubr.bf16.mxu0 %v6682_v7  ;;  %v8124_v39 = vld [vmem:[#allocation2 + $0x288] sm:$0xff]   ;;  %v8154_v7 = vld [vmem:[#allocation2 + $0x310] sm:$0xff]  }
  0x88   :  { %2526 = vmatmul.mubr.bf16.vlgmr.msra.gmra.mxu1 %v6679_v37  ;;  %7375 = vmatprep.subr.bf16.mxu0 %v8065_v42  ;;  %v8122_v37 = vld [vmem:[#allocation2 + $0x208] sm:$0xff]   ;;  %v8127_v42 = vld [vmem:[#allocation2 + $0x2c0] sm:$0xff]  }
  0x89   :  { %7396 = vmatpush3.bf16.msra.mxu1 %v8064_v41  ;;  %2605 = vmatprep.mubr.bf16.mxu1 %v6684_v12  ;;  %v8126_v41 = vld [vmem:[#allocation2 + $0x200] sm:$0xff]   ;;  %v8159_v12 = vld [vmem:[#allocation2 + $0x3c8] sm:$0xff]  }
  0x8a   :  { %7397 = vmatprep.subr.bf16.mxu1 %v8067_v44 }
  0x8b   :  { %7376 = vmatpush3.bf16.msra.mxu0 %v8066_v43  ;;  %v138_v43 = vld [vmem:[%s9207_s0 + $0x20] sm:$0xff] }
  0x8c   :  { %7377 = vmatprep.subr.bf16.mxu0 %v8069_v46  ;;  %v6685_v44 = vcombine.low %v138_v43, %v138_v43  ;;  %v8130_v46 = vld [vmem:[#allocation2 + $0x280] sm:$0xff]  }
  0x8d   :  { %7398 = vmatpush3.bf16.msra.mxu1 %v8068_v45  ;;  %v6686_v45 = vcombine.high %v138_v43, %v138_v43  ;;  %v8188_v43 = vld [vmem:[#allocation2 + $0x498] sm:$0xff]  }
  0x8e   :  { %7399 = vmatprep.subr.bf16.mxu1 %v8071_v48  ;;  %v139_v48 = vld [vmem:[%s9207_s0 + $0x28] sm:$0xff] }
  0x8f   :  { %7378 = vmatpush3.bf16.msra.mxu0 %v8070_v47  ;;  %v8131_v47 = vld [vmem:[#allocation2 + $0x378] sm:$0xff]  }
  0x90   :  { %7379 = vmatprep.subr.bf16.mxu0 %v8073_v50  ;;  %v6688_v50 = vcombine.high %v139_v48, %v139_v48 }
  0x91   :  { %7400 = vmatpush3.bf16.msra.mxu1 %v8072_v49  ;;  %v6687_v49 = vcombine.low %v139_v48, %v139_v48  ;;  %v8193_v48 = vld [vmem:[#allocation2 + $0x448] sm:$0xff]  }
  0x92   :  { %7401 = vmatprep.subr.bf16.mxu1 %v8075_v52  ;;  %v8135_v52 = vld [vmem:[#allocation2 + $0x3f8] sm:$0xff]  }
  0x93   :  { %7380 = vmatpush3.bf16.msra.mxu0 %v8074_v51  ;;  %v8134_v51 = vld [vmem:[#allocation2 + $0x338] sm:$0xff]  }
  0x94   :  { %7381 = vmatprep.subr.bf16.mxu0 %v8077_v54  ;;  %v8137_v54 = vld [vmem:[#allocation2 + $0x370] sm:$0xff]  }
  0x95   :  { %7402 = vmatpush3.bf16.msra.mxu1 %v8076_v53  ;;  %v8136_v53 = vld [vmem:[#allocation2 + $0x3b8] sm:$0xff]  }
  0x96   :  { %7403 = vmatprep.subr.bf16.mxu1 %v8079_v56  ;;  %v8139_v56 = vld [vmem:[#allocation2 + $0x3f0] sm:$0xff]  }
  0x97   :  { %7382 = vmatpush3.bf16.msra.mxu0 %v8078_v55  ;;  %v8138_v55 = vld [vmem:[#allocation2 + $0x330] sm:$0xff]  }
  0x98   :  { %7383 = vmatprep.subr.bf16.mxu0 %v8081_v58  ;;  %v8141_v58 = vld [vmem:[#allocation2 + $0x368] sm:$0xff]  }
  0x99   :  { %7404 = vmatpush3.bf16.msra.mxu1 %v8080_v57  ;;  %v8140_v57 = vld [vmem:[#allocation2 + $0x3b0] sm:$0xff]  }
  0x9a   :  { %7405 = vmatprep.subr.bf16.mxu1 %v8083_v60  ;;  %v8143_v60 = vld [vmem:[#allocation2 + $0x3e8] sm:$0xff]  }
  0x9b   :  { %7384 = vmatpush3.bf16.msra.mxu0 %v8082_v59  ;;  %v8142_v59 = vld [vmem:[#allocation2 + $0x328] sm:$0xff]  }
  0x9c   :  { %7385 = vmatprep.subr.bf16.mxu0 %v8085_v62  ;;  %v8145_v62 = vld [vmem:[#allocation2 + $0x360] sm:$0xff]  }
  0x9d   :  { %7406 = vmatpush3.bf16.msra.mxu1 %v8084_v61  ;;  %v8144_v61 = vld [vmem:[#allocation2 + $0x3a8] sm:$0xff]  }
  0x9e   :  { %7407 = vmatprep.subr.bf16.mxu1 %v8087_v0  ;;  %v8147_v0 = vld [vmem:[#allocation2 + $0x3e0] sm:$0xff]  }
  0x9f   :  { %7386 = vmatpush3.bf16.msra.mxu0 %v8086_v63  ;;  %v8146_v63 = vld [vmem:[#allocation2 + $0x320] sm:$0xff]  }
  0xa0   :  { %7387 = vmatprep.subr.bf16.mxu0 %v8089_v2  ;;  %v8149_v2 = vld [vmem:[#allocation2 + $0x358] sm:$0xff]  }
  0xa1   :  { %7408 = vmatpush3.bf16.msra.mxu1 %v8088_v1  ;;  %v8148_v1 = vld [vmem:[#allocation2 + $0x3a0] sm:$0xff]  }
  0xa2   :  { %7409 = vmatprep.subr.bf16.mxu1 %v8091_v4  ;;  %v8151_v4 = vld [vmem:[#allocation2 + $0x3d8] sm:$0xff]  }
  0xa3   :  { %7388 = vmatpush3.bf16.msra.mxu0 %v8090_v3  ;;  %v8150_v3 = vld [vmem:[#allocation2 + $0x318] sm:$0xff]  }
  0xa4   :  { %7417 = vmatprep.subr.bf16.mxu0 %v8095_v9  ;;  %v8156_v9 = vld [vmem:[#allocation2 + $0x390] sm:$0xff]  }
  0xa5   :  { %7410 = vmatpush3.bf16.msra.mxu1 %v8094_v8  ;;  %v8155_v8 = vld [vmem:[#allocation2 + $0x3d0] sm:$0xff]  }
  0xa6   :  { %2566 = vmatmul.mubr.bf16.vlgmr.msra.gmra.mxu0 %v6681_v6  ;;  %7439 = vmatprep.subr.bf16.mxu1 %v8099_v14  ;;  %v8153_v6 = vld [vmem:[#allocation2 + $0x350] sm:$0xff]   ;;  %v8161_v14 = vld [vmem:[#allocation2 + $0x340] sm:$0xff]  }
  0xa7   :  { %7418 = vmatpush3.bf16.msra.mxu0 %v8098_v13  ;;  %2645 = vmatprep.mubr.bf16.mxu0 %v6686_v45  ;;  %v8160_v13 = vld [vmem:[#allocation2 + $0x388] sm:$0xff]   ;;  %v8190_v45 = vld [vmem:[#allocation2 + $0x410] sm:$0xff]  }
  0xa8   :  { %2606 = vmatmul.mubr.bf16.vlgmr.msra.gmra.mxu1 %v6683_v11  ;;  %7419 = vmatprep.subr.bf16.mxu0 %v8101_v16  ;;  %v8158_v11 = vld [vmem:[#allocation2 + $0x308] sm:$0xff]   ;;  %v8163_v16 = vld [vmem:[#allocation2 + $0x3c0] sm:$0xff]  }
  0xa9   :  { %7440 = vmatpush3.bf16.msra.mxu1 %v8100_v15  ;;  %2685 = vmatprep.mubr.bf16.mxu1 %v6688_v50  ;;  %v8162_v15 = vld [vmem:[#allocation2 + $0x300] sm:$0xff]   ;;  %v8195_v50 = vld [vmem:[#allocation2 + $0x4c8] sm:$0xff]  }
  0xaa   :  { %7441 = vmatprep.subr.bf16.mxu1 %v8103_v18 }
  0xab   :  { %7420 = vmatpush3.bf16.msra.mxu0 %v8102_v17  ;;  %v140_v17 = vld [vmem:[%s9207_s0 + $0x30] sm:$0xff] }
  0xac   :  { %7421 = vmatprep.subr.bf16.mxu0 %v8105_v20  ;;  %v6689_v18 = vcombine.low %v140_v17, %v140_v17  ;;  %v8166_v20 = vld [vmem:[#allocation2 + $0x380] sm:$0xff]  }
  0xad   :  { %7442 = vmatpush3.bf16.msra.mxu1 %v8104_v19  ;;  %v6690_v19 = vcombine.high %v140_v17, %v140_v17  ;;  %v8224_v17 = vld [vmem:[#allocation2 + $0x598] sm:$0xff]  }
  0xae   :  { %7443 = vmatprep.subr.bf16.mxu1 %v8107_v22  ;;  %v141_v22 = vld [vmem:[%s9207_s0 + $0x38] sm:$0xff] }
  0xaf   :  { %7422 = vmatpush3.bf16.msra.mxu0 %v8106_v21  ;;  %v8167_v21 = vld [vmem:[#allocation2 + $0x478] sm:$0xff]  }
  0xb0   :  { %7423 = vmatprep.subr.bf16.mxu0 %v8109_v24  ;;  %v6692_v24 = vcombine.high %v141_v22, %v141_v22 }
  0xb1   :  { %7444 = vmatpush3.bf16.msra.mxu1 %v8108_v23  ;;  %v6691_v23 = vcombine.low %v141_v22, %v141_v22  ;;  %v8229_v22 = vld [vmem:[#allocation2 + $0x548] sm:$0xff]  }
  0xb2   :  { %7445 = vmatprep.subr.bf16.mxu1 %v8111_v26  ;;  %v8171_v26 = vld [vmem:[#allocation2 + $0x4f8] sm:$0xff]  }
  0xb3   :  { %7424 = vmatpush3.bf16.msra.mxu0 %v8110_v25  ;;  %v8170_v25 = vld [vmem:[#allocation2 + $0x438] sm:$0xff]  }
  0xb4   :  { %7425 = vmatprep.subr.bf16.mxu0 %v8113_v28  ;;  %v8173_v28 = vld [vmem:[#allocation2 + $0x470] sm:$0xff]  }
  0xb5   :  { %7446 = vmatpush3.bf16.msra.mxu1 %v8112_v27  ;;  %v8172_v27 = vld [vmem:[#allocation2 + $0x4b8] sm:$0xff]  }
  0xb6   :  { %7447 = vmatprep.subr.bf16.mxu1 %v8115_v30  ;;  %v8175_v30 = vld [vmem:[#allocation2 + $0x4f0] sm:$0xff]  }
  0xb7   :  { %7426 = vmatpush3.bf16.msra.mxu0 %v8114_v29  ;;  %v8174_v29 = vld [vmem:[#allocation2 + $0x430] sm:$0xff]  }
  0xb8   :  { %7427 = vmatprep.subr.bf16.mxu0 %v8117_v32  ;;  %v8177_v32 = vld [vmem:[#allocation2 + $0x468] sm:$0xff]  }
  0xb9   :  { %7448 = vmatpush3.bf16.msra.mxu1 %v8116_v31  ;;  %v8176_v31 = vld [vmem:[#allocation2 + $0x4b0] sm:$0xff]  }
  0xba   :  { %7449 = vmatprep.subr.bf16.mxu1 %v8119_v34  ;;  %v8179_v34 = vld [vmem:[#allocation2 + $0x4e8] sm:$0xff]  }
  0xbb   :  { %7428 = vmatpush3.bf16.msra.mxu0 %v8118_v33  ;;  %v8178_v33 = vld [vmem:[#allocation2 + $0x428] sm:$0xff]  }
  0xbc   :  { %7429 = vmatprep.subr.bf16.mxu0 %v8121_v36  ;;  %v8181_v36 = vld [vmem:[#allocation2 + $0x460] sm:$0xff]  }
  0xbd   :  { %7450 = vmatpush3.bf16.msra.mxu1 %v8120_v35  ;;  %v8180_v35 = vld [vmem:[#allocation2 + $0x4a8] sm:$0xff]  }
  0xbe   :  { %7451 = vmatprep.subr.bf16.mxu1 %v8123_v38  ;;  %v8183_v38 = vld [vmem:[#allocation2 + $0x4e0] sm:$0xff]  }
  0xbf   :  { %7430 = vmatpush3.bf16.msra.mxu0 %v8122_v37  ;;  %v8182_v37 = vld [vmem:[#allocation2 + $0x420] sm:$0xff]  }
  0xc0   :  { %7431 = vmatprep.subr.bf16.mxu0 %v8125_v40  ;;  %v8185_v40 = vld [vmem:[#allocation2 + $0x458] sm:$0xff]  }
  0xc1   :  { %7452 = vmatpush3.bf16.msra.mxu1 %v8124_v39  ;;  %v8184_v39 = vld [vmem:[#allocation2 + $0x4a0] sm:$0xff]  }
  0xc2   :  { %7453 = vmatprep.subr.bf16.mxu1 %v8127_v42  ;;  %v8187_v42 = vld [vmem:[#allocation2 + $0x4d8] sm:$0xff]  }
  0xc3   :  { %7432 = vmatpush3.bf16.msra.mxu0 %v8126_v41  ;;  %v8186_v41 = vld [vmem:[#allocation2 + $0x418] sm:$0xff]  }
  0xc4   :  { %7461 = vmatprep.subr.bf16.mxu0 %v8131_v47  ;;  %v8192_v47 = vld [vmem:[#allocation2 + $0x490] sm:$0xff]  }
  0xc5   :  { %7454 = vmatpush3.bf16.msra.mxu1 %v8130_v46  ;;  %v8191_v46 = vld [vmem:[#allocation2 + $0x4d0] sm:$0xff]  }
  0xc6   :  { %2646 = vmatmul.mubr.bf16.vlgmr.msra.gmra.mxu0 %v6685_v44  ;;  %7483 = vmatprep.subr.bf16.mxu1 %v8135_v52  ;;  %v8189_v44 = vld [vmem:[#allocation2 + $0x450] sm:$0xff]   ;;  %v8197_v52 = vld [vmem:[#allocation2 + $0x440] sm:$0xff]  }
  0xc7   :  { %7462 = vmatpush3.bf16.msra.mxu0 %v8134_v51  ;;  %2725 = vmatprep.mubr.bf16.mxu0 %v6690_v19  ;;  %v8196_v51 = vld [vmem:[#allocation2 + $0x488] sm:$0xff]   ;;  %v8226_v19 = vld [vmem:[#allocation2 + $0x510] sm:$0xff]  }
  0xc8   :  { %2686 = vmatmul.mubr.bf16.vlgmr.msra.gmra.mxu1 %v6687_v49  ;;  %7463 = vmatprep.subr.bf16.mxu0 %v8137_v54  ;;  %v8194_v49 = vld [vmem:[#allocation2 + $0x408] sm:$0xff]   ;;  %v8199_v54 = vld [vmem:[#allocation2 + $0x4c0] sm:$0xff]  }
  0xc9   :  { %7484 = vmatpush3.bf16.msra.mxu1 %v8136_v53  ;;  %2765 = vmatprep.mubr.bf16.mxu1 %v6692_v24  ;;  %v8198_v53 = vld [vmem:[#allocation2 + $0x400] sm:$0xff]   ;;  %v8231_v24 = vld [vmem:[#allocation2 + $0x5c8] sm:$0xff]  }
  0xca   :  { %7485 = vmatprep.subr.bf16.mxu1 %v8139_v56 }
  0xcb   :  { %7464 = vmatpush3.bf16.msra.mxu0 %v8138_v55  ;;  %v142_v55 = vld [vmem:[%s9207_s0 + $0x40] sm:$0xff] }
  0xcc   :  { %7465 = vmatprep.subr.bf16.mxu0 %v8141_v58  ;;  %v6693_v56 = vcombine.low %v142_v55, %v142_v55  ;;  %v8202_v58 = vld [vmem:[#allocation2 + $0x480] sm:$0xff]  }
  0xcd   :  { %7486 = vmatpush3.bf16.msra.mxu1 %v8140_v57  ;;  %v6694_v57 = vcombine.high %v142_v55, %v142_v55  ;;  %v8260_v55 = vld [vmem:[#allocation2 + $0x698] sm:$0xff]  }
  0xce   :  { %7487 = vmatprep.subr.bf16.mxu1 %v8143_v60  ;;  %v143_v60 = vld [vmem:[%s9207_s0 + $0x48] sm:$0xff] }
  0xcf   :  { %7466 = vmatpush3.bf16.msra.mxu0 %v8142_v59  ;;  %v8203_v59 = vld [vmem:[#allocation2 + $0x578] sm:$0xff]  }
  0xd0   :  { %7467 = vmatprep.subr.bf16.mxu0 %v8145_v62  ;;  %v6696_v62 = vcombine.high %v143_v60, %v143_v60 }
  0xd1   :  { %7488 = vmatpush3.bf16.msra.mxu1 %v8144_v61  ;;  %v6695_v61 = vcombine.low %v143_v60, %v143_v60  ;;  %v8265_v60 = vld [vmem:[#allocation2 + $0x648] sm:$0xff]  }
  0xd2   :  { %7489 = vmatprep.subr.bf16.mxu1 %v8147_v0  ;;  %v8207_v0 = vld [vmem:[#allocation2 + $0x5f8] sm:$0xff]  }
  0xd3   :  { %7468 = vmatpush3.bf16.msra.mxu0 %v8146_v63  ;;  %v8206_v63 = vld [vmem:[#allocation2 + $0x538] sm:$0xff]  }
  0xd4   :  { %7469 = vmatprep.subr.bf16.mxu0 %v8149_v2  ;;  %v8209_v2 = vld [vmem:[#allocation2 + $0x570] sm:$0xff]  }
  0xd5   :  { %7490 = vmatpush3.bf16.msra.mxu1 %v8148_v1  ;;  %v8208_v1 = vld [vmem:[#allocation2 + $0x5b8] sm:$0xff]  }
  0xd6   :  { %7491 = vmatprep.subr.bf16.mxu1 %v8151_v4  ;;  %v8211_v4 = vld [vmem:[#allocation2 + $0x5f0] sm:$0xff]  }
  0xd7   :  { %7470 = vmatpush3.bf16.msra.mxu0 %v8150_v3  ;;  %v8210_v3 = vld [vmem:[#allocation2 + $0x530] sm:$0xff]  }
  0xd8   :  { %7471 = vmatprep.subr.bf16.mxu0 %v8153_v6  ;;  %v8213_v6 = vld [vmem:[#allocation2 + $0x568] sm:$0xff]  }
  0xd9   :  { %7492 = vmatpush3.bf16.msra.mxu1 %v8152_v5  ;;  %v8212_v5 = vld [vmem:[#allocation2 + $0x5b0] sm:$0xff]  }
  0xda   :  { %7493 = vmatprep.subr.bf16.mxu1 %v8155_v8  ;;  %v8215_v8 = vld [vmem:[#allocation2 + $0x5e8] sm:$0xff]  }
  0xdb   :  { %7472 = vmatpush3.bf16.msra.mxu0 %v8154_v7  ;;  %v8214_v7 = vld [vmem:[#allocation2 + $0x528] sm:$0xff]  }
  0xdc   :  { %7473 = vmatprep.subr.bf16.mxu0 %v8157_v10  ;;  %v8217_v10 = vld [vmem:[#allocation2 + $0x560] sm:$0xff]  }
  0xdd   :  { %7494 = vmatpush3.bf16.msra.mxu1 %v8156_v9  ;;  %v8216_v9 = vld [vmem:[#allocation2 + $0x5a8] sm:$0xff]  }
  0xde   :  { %7495 = vmatprep.subr.bf16.mxu1 %v8159_v12  ;;  %v8219_v12 = vld [vmem:[#allocation2 + $0x5e0] sm:$0xff]  }
  0xdf   :  { %7474 = vmatpush3.bf16.msra.mxu0 %v8158_v11  ;;  %v8218_v11 = vld [vmem:[#allocation2 + $0x520] sm:$0xff]  }
  0xe0   :  { %7475 = vmatprep.subr.bf16.mxu0 %v8161_v14  ;;  %v8221_v14 = vld [vmem:[#allocation2 + $0x558] sm:$0xff]  }
  0xe1   :  { %7496 = vmatpush3.bf16.msra.mxu1 %v8160_v13  ;;  %v8220_v13 = vld [vmem:[#allocation2 + $0x5a0] sm:$0xff]  }
  0xe2   :  { %7497 = vmatprep.subr.bf16.mxu1 %v8163_v16  ;;  %v8223_v16 = vld [vmem:[#allocation2 + $0x5d8] sm:$0xff]  }
  0xe3   :  { %7476 = vmatpush3.bf16.msra.mxu0 %v8162_v15  ;;  %v8222_v15 = vld [vmem:[#allocation2 + $0x518] sm:$0xff]  }
  0xe4   :  { %7505 = vmatprep.subr.bf16.mxu0 %v8167_v21  ;;  %v8228_v21 = vld [vmem:[#allocation2 + $0x590] sm:$0xff]  }
  0xe5   :  { %7498 = vmatpush3.bf16.msra.mxu1 %v8166_v20  ;;  %v8227_v20 = vld [vmem:[#allocation2 + $0x5d0] sm:$0xff]  }
  0xe6   :  { %2726 = vmatmul.mubr.bf16.vlgmr.msra.gmra.mxu0 %v6689_v18  ;;  %7527 = vmatprep.subr.bf16.mxu1 %v8171_v26  ;;  %v8225_v18 = vld [vmem:[#allocation2 + $0x550] sm:$0xff]   ;;  %v8233_v26 = vld [vmem:[#allocation2 + $0x540] sm:$0xff]  }
  0xe7   :  { %7506 = vmatpush3.bf16.msra.mxu0 %v8170_v25  ;;  %2805 = vmatprep.mubr.bf16.mxu0 %v6694_v57  ;;  %v8232_v25 = vld [vmem:[#allocation2 + $0x588] sm:$0xff]   ;;  %v8262_v57 = vld [vmem:[#allocation2 + $0x610] sm:$0xff]  }
  0xe8   :  { %2766 = vmatmul.mubr.bf16.vlgmr.msra.gmra.mxu1 %v6691_v23  ;;  %7507 = vmatprep.subr.bf16.mxu0 %v8173_v28  ;;  %v8230_v23 = vld [vmem:[#allocation2 + $0x508] sm:$0xff]   ;;  %v8235_v28 = vld [vmem:[#allocation2 + $0x5c0] sm:$0xff]  }
  0xe9   :  { %7528 = vmatpush3.bf16.msra.mxu1 %v8172_v27  ;;  %2845 = vmatprep.mubr.bf16.mxu1 %v6696_v62  ;;  %v8234_v27 = vld [vmem:[#allocation2 + $0x500] sm:$0xff]   ;;  %v8267_v62 = vld [vmem:[#allocation2 + $0x6c8] sm:$0xff]  }
  0xea   :  { %7529 = vmatprep.subr.bf16.mxu1 %v8175_v30 }
  0xeb   :  { %7508 = vmatpush3.bf16.msra.mxu0 %v8174_v29  ;;  %v144_v29 = vld [vmem:[%s9207_s0 + $0x50] sm:$0xff] }
  0xec   :  { %7509 = vmatprep.subr.bf16.mxu0 %v8177_v32  ;;  %v6697_v30 = vcombine.low %v144_v29, %v144_v29  ;;  %v8238_v32 = vld [vmem:[#allocation2 + $0x580] sm:$0xff]  }
  0xed   :  { %7530 = vmatpush3.bf16.msra.mxu1 %v8176_v31  ;;  %v6698_v31 = vcombine.high %v144_v29, %v144_v29 }
  0xee   :  { %7531 = vmatprep.subr.bf16.mxu1 %v8179_v34  ;;  %v145_v34 = vld [vmem:[%s9207_s0 + $0x58] sm:$0xff] }
  0xef   :  { %7510 = vmatpush3.bf16.msra.mxu0 %v8178_v33  ;;  %v8239_v33 = vld [vmem:[#allocation2 + $0x678] sm:$0xff]  }
  0xf0   :  { %7511 = vmatprep.subr.bf16.mxu0 %v8181_v36  ;;  %v6700_v36 = vcombine.high %v145_v34, %v145_v34 }
  0xf1   :  { %7532 = vmatpush3.bf16.msra.mxu1 %v8180_v35  ;;  %v6699_v35 = vcombine.low %v145_v34, %v145_v34  ;;  %v8288_v34 = vld [vmem:[#allocation2 + $0x7a8] sm:$0xff]  }
  0xf2   :  { %7533 = vmatprep.subr.bf16.mxu1 %v8183_v38  ;;  %v8243_v38 = vld [vmem:[#allocation2 + $0x6f8] sm:$0xff]  }
  0xf3   :  { %7512 = vmatpush3.bf16.msra.mxu0 %v8182_v37  ;;  %v8242_v37 = vld [vmem:[#allocation2 + $0x638] sm:$0xff]  }
  0xf4   :  { %7513 = vmatprep.subr.bf16.mxu0 %v8185_v40  ;;  %v8245_v40 = vld [vmem:[#allocation2 + $0x670] sm:$0xff]  }
  0xf5   :  { %7534 = vmatpush3.bf16.msra.mxu1 %v8184_v39  ;;  %v8244_v39 = vld [vmem:[#allocation2 + $0x6b8] sm:$0xff]  }
  0xf6   :  { %7535 = vmatprep.subr.bf16.mxu1 %v8187_v42  ;;  %v8247_v42 = vld [vmem:[#allocation2 + $0x6f0] sm:$0xff]  }
  0xf7   :  { %7514 = vmatpush3.bf16.msra.mxu0 %v8186_v41  ;;  %v8246_v41 = vld [vmem:[#allocation2 + $0x630] sm:$0xff]  }
  0xf8   :  { %7515 = vmatprep.subr.bf16.mxu0 %v8189_v44  ;;  %v8249_v44 = vld [vmem:[#allocation2 + $0x668] sm:$0xff]  }
  0xf9   :  { %7536 = vmatpush3.bf16.msra.mxu1 %v8188_v43  ;;  %v8248_v43 = vld [vmem:[#allocation2 + $0x6b0] sm:$0xff]  }
  0xfa   :  { %7537 = vmatprep.subr.bf16.mxu1 %v8191_v46  ;;  %v8251_v46 = vld [vmem:[#allocation2 + $0x6e8] sm:$0xff]  }
  0xfb   :  { %7516 = vmatpush3.bf16.msra.mxu0 %v8190_v45  ;;  %v8250_v45 = vld [vmem:[#allocation2 + $0x628] sm:$0xff]  }
  0xfc   :  { %7517 = vmatprep.subr.bf16.mxu0 %v8193_v48  ;;  %v8253_v48 = vld [vmem:[#allocation2 + $0x660] sm:$0xff]  }
  0xfd   :  { %7538 = vmatpush3.bf16.msra.mxu1 %v8192_v47  ;;  %v8252_v47 = vld [vmem:[#allocation2 + $0x6a8] sm:$0xff]  }
  0xfe   :  { %7539 = vmatprep.subr.bf16.mxu1 %v8195_v50  ;;  %v8255_v50 = vld [vmem:[#allocation2 + $0x6e0] sm:$0xff]  }
  0xff   :  { %7518 = vmatpush3.bf16.msra.mxu0 %v8194_v49  ;;  %v8254_v49 = vld [vmem:[#allocation2 + $0x620] sm:$0xff]  }
 0x100   :  { %7519 = vmatprep.subr.bf16.mxu0 %v8197_v52  ;;  %v8257_v52 = vld [vmem:[#allocation2 + $0x658] sm:$0xff]  }
 0x101   :  { %7540 = vmatpush3.bf16.msra.mxu1 %v8196_v51  ;;  %v8256_v51 = vld [vmem:[#allocation2 + $0x6a0] sm:$0xff]  }
 0x102   :  { %7541 = vmatprep.subr.bf16.mxu1 %v8199_v54  ;;  %v8259_v54 = vld [vmem:[#allocation2 + $0x6d8] sm:$0xff]  }
 0x103   :  { %7520 = vmatpush3.bf16.msra.mxu0 %v8198_v53  ;;  %v8258_v53 = vld [vmem:[#allocation2 + $0x618] sm:$0xff]  }
 0x104   :  { %7549 = vmatprep.subr.bf16.mxu0 %v8203_v59  ;;  %v8264_v59 = vld [vmem:[#allocation2 + $0x690] sm:$0xff]  }
 0x105   :  { %7542 = vmatpush3.bf16.msra.mxu1 %v8202_v58  ;;  %v8263_v58 = vld [vmem:[#allocation2 + $0x6d0] sm:$0xff]  }
 0x106   :  { %2806 = vmatmul.mubr.bf16.vlgmr.msra.gmra.mxu0 %v6693_v56  ;;  %7571 = vmatprep.subr.bf16.mxu1 %v8207_v0  ;;  %v8261_v56 = vld [vmem:[#allocation2 + $0x650] sm:$0xff]   ;;  %v8269_v0 = vld [vmem:[#allocation2 + $0x640] sm:$0xff]  }
 0x107   :  { %7550 = vmatpush3.bf16.msra.mxu0 %v8206_v63  ;;  %2885 = vmatprep.mubr.bf16.mxu0 %v6698_v31  ;;  %v8268_v63 = vld [vmem:[#allocation2 + $0x688] sm:$0xff]  }
 0x108   :  { %2846 = vmatmul.mubr.bf16.vlgmr.msra.gmra.mxu1 %v6695_v61  ;;  %7551 = vmatprep.subr.bf16.mxu0 %v8209_v2  ;;  %v8266_v61 = vld [vmem:[#allocation2 + $0x608] sm:$0xff]   ;;  %v8271_v2 = vld [vmem:[#allocation2 + $0x6c0] sm:$0xff]  }
 0x109   :  { %7572 = vmatpush3.bf16.msra.mxu1 %v8208_v1  ;;  %2925 = vmatprep.mubr.bf16.mxu1 %v6700_v36  ;;  %v8270_v1 = vld [vmem:[#allocation2 + $0x600] sm:$0xff]   ;;  %v8285_v31 = vld [vmem:[#allocation2 + $0x768] sm:$0xff]  }
 0x10a   :  { %7573 = vmatprep.subr.bf16.mxu1 %v8211_v4  ;;  %v8290_v36 = vld [vmem:[#allocation2 + $0x720] sm:$0xff]  }
 0x10b   :  { %7552 = vmatpush3.bf16.msra.mxu0 %v8210_v3  ;;  %v146_v3 = vld [vmem:[%s9207_s0 + $0x60] sm:$0xff] }
 0x10c   :  { %7553 = vmatprep.subr.bf16.mxu0 %v8213_v6  ;;  %v6702_v6 = vcombine.high %v146_v3, %v146_v3 }
 0x10d   :  { %7574 = vmatpush3.bf16.msra.mxu1 %v8212_v5  ;;  %v6701_v5 = vcombine.low %v146_v3, %v146_v3 }
 0x10e   :  { %7575 = vmatprep.subr.bf16.mxu1 %v8215_v8  ;;  %v8275_v8 = vld [vmem:[#allocation2 + $0x778] sm:$0xff]  }
 0x10f   :  { %7554 = vmatpush3.bf16.msra.mxu0 %v8214_v7  ;;  %v8274_v7 = vld [vmem:[#allocation2 + $0x680] sm:$0xff]  }
 0x110   :  { %7555 = vmatprep.subr.bf16.mxu0 %v8217_v10 }
 0x111   :  { %7576 = vmatpush3.bf16.msra.mxu1 %v8216_v9  ;;  %v147_v9 = vld [vmem:[%s9207_s0 + $0x68] sm:$0xff] }
 0x112   :  { %7577 = vmatprep.subr.bf16.mxu1 %v8219_v12  ;;  %v6703_v12 = vcombine.low %v147_v9, %v147_v9 }
 0x113   :  { %7556 = vmatpush3.bf16.msra.mxu0 %v8218_v11 }
 0x114   :  { %7557 = vmatprep.subr.bf16.mxu0 %v8221_v14  ;;  %v8278_v14 = vld [vmem:[#allocation2 + $0x738] sm:$0xff]  }
 0x115   :  { %7578 = vmatpush3.bf16.msra.mxu1 %v8220_v13  ;;  %v6704_v13 = vcombine.high %v147_v9, %v147_v9 }
 0x116   :  { %7579 = vmatprep.subr.bf16.mxu1 %v8223_v16 }
 0x117   :  { %7558 = vmatpush3.bf16.msra.mxu0 %v8222_v15  ;;  %v6676_v15 = vld [vmem:[#allocation4] ss:$0 sm:$0xff] }
 0x118   :  { %7559 = vmatprep.subr.bf16.mxu0 %v8225_v18 }
 0x119   :  { %7580 = vmatpush3.bf16.msra.mxu1 %v8224_v17  ;;  %v8279_v17 = vld [vmem:[#allocation2 + $0x7f8] sm:$0xff]  }
 0x11a   :  { %7581 = vmatprep.subr.bf16.mxu1 %v8227_v20 }
 0x11b   :  { %7560 = vmatpush3.bf16.msra.mxu0 %v8226_v19 }
 0x11c   :  { %7561 = vmatprep.subr.bf16.mxu0 %v8229_v22 }
 0x11d   :  { %7582 = vmatpush3.bf16.msra.mxu1 %v8228_v21  ;;  %v8280_v21 = vld [vmem:[#allocation2 + $0x7b8] sm:$0xff]  }
 0x11e   :  { %7583 = vmatprep.subr.bf16.mxu1 %v8231_v24 }
 0x11f   :  { %7562 = vmatpush3.bf16.msra.mxu0 %v8230_v23  ;;  %v8281_v23 = vld [vmem:[#allocation2 + $0x770] sm:$0xff]  }
 0x120   :  { %7563 = vmatprep.subr.bf16.mxu0 %v8233_v26 }
 0x121   :  { %7584 = vmatpush3.bf16.msra.mxu1 %v8232_v25 }
 0x122   :  { %7585 = vmatprep.subr.bf16.mxu1 %v8235_v28  ;;  %v8283_v28 = vld [vmem:[#allocation2 + $0x7f0] sm:$0xff]  }
 0x123   :  { %7564 = vmatpush3.bf16.msra.mxu0 %v8234_v27  ;;  %v8282_v27 = vld [vmem:[#allocation2 + $0x730] sm:$0xff]  }
 0x124   :  { %7593 = vmatprep.subr.bf16.mxu0 %v8239_v33  ;;  %v8287_v33 = vld [vmem:[#allocation2 + $0x7e8] sm:$0xff]  }
 0x125   :  { %7586 = vmatpush3.bf16.msra.mxu1 %v8238_v32  ;;  %v8286_v32 = vld [vmem:[#allocation2 + $0x728] sm:$0xff]  }
 0x126   :  { %2886 = vmatmul.mubr.bf16.vlgmr.msra.gmra.mxu0 %v6697_v30  ;;  %7615 = vmatprep.subr.bf16.mxu1 %v8243_v38  ;;  %v8284_v30 = vld [vmem:[#allocation2 + $0x7b0] sm:$0xff]   ;;  %v8292_v38 = vld [vmem:[#allocation2 + $0x7a0] sm:$0xff]  }
 0x127   :  { %7594 = vmatpush3.bf16.msra.mxu0 %v8242_v37  ;;  %2965 = vmatprep.mubr.bf16.mxu0 %v6702_v6  ;;  %v8291_v37 = vld [vmem:[#allocation2 + $0x7e0] sm:$0xff]   ;;  %v8315_v6 = vld [vmem:[#allocation2 + $0x870] sm:$0xff]  }
 0x128   :  { %2926 = vmatmul.mubr.bf16.vlgmr.msra.gmra.mxu1 %v6699_v35  ;;  %7595 = vmatprep.subr.bf16.mxu0 %v8245_v40  ;;  %v8289_v35 = vld [vmem:[#allocation2 + $0x760] sm:$0xff]   ;;  %v8294_v40 = vld [vmem:[#allocation2 + $0x718] sm:$0xff]  }
 0x129   :  { %7616 = vmatpush3.bf16.msra.mxu1 %v8244_v39  ;;  %3005 = vmatprep.mubr.bf16.mxu1 %v6704_v13  ;;  %v8293_v39 = vld [vmem:[#allocation2 + $0x758] sm:$0xff]  }
 0x12a   :  { %7617 = vmatprep.subr.bf16.mxu1 %v8247_v42  ;;  %v8296_v42 = vld [vmem:[#allocation2 + $0x798] sm:$0xff]  }
 0x12b   :  { %7596 = vmatpush3.bf16.msra.mxu0 %v8246_v41  ;;  %v8295_v41 = vld [vmem:[#allocation2 + $0x7d8] sm:$0xff]  }
 0x12c   :  { %7597 = vmatprep.subr.bf16.mxu0 %v8249_v44  ;;  %v8298_v44 = vld [vmem:[#allocation2 + $0x710] sm:$0xff]  }
 0x12d   :  { %7618 = vmatpush3.bf16.msra.mxu1 %v8248_v43  ;;  %v8297_v43 = vld [vmem:[#allocation2 + $0x750] sm:$0xff]  }
 0x12e   :  { %7619 = vmatprep.subr.bf16.mxu1 %v8251_v46  ;;  %v8300_v46 = vld [vmem:[#allocation2 + $0x790] sm:$0xff]  }
 0x12f   :  { %7598 = vmatpush3.bf16.msra.mxu0 %v8250_v45  ;;  %v8299_v45 = vld [vmem:[#allocation2 + $0x7d0] sm:$0xff]  }
 0x130   :  { %7599 = vmatprep.subr.bf16.mxu0 %v8253_v48  ;;  %v8302_v48 = vld [vmem:[#allocation2 + $0x708] sm:$0xff]  }
 0x131   :  { %7620 = vmatpush3.bf16.msra.mxu1 %v8252_v47  ;;  %v8301_v47 = vld [vmem:[#allocation2 + $0x748] sm:$0xff]  }
 0x132   :  { %7621 = vmatprep.subr.bf16.mxu1 %v8255_v50  ;;  %v8304_v50 = vld [vmem:[#allocation2 + $0x788] sm:$0xff]  }
 0x133   :  { %7600 = vmatpush3.bf16.msra.mxu0 %v8254_v49  ;;  %v8303_v49 = vld [vmem:[#allocation2 + $0x7c8] sm:$0xff]  }
 0x134   :  { %7601 = vmatprep.subr.bf16.mxu0 %v8257_v52  ;;  %v8306_v52 = vld [vmem:[#allocation2 + $0x700] sm:$0xff]  }
 0x135   :  { %7622 = vmatpush3.bf16.msra.mxu1 %v8256_v51  ;;  %v8305_v51 = vld [vmem:[#allocation2 + $0x740] sm:$0xff]  }
 0x136   :  { %7623 = vmatprep.subr.bf16.mxu1 %v8259_v54 }
 0x137   :  { %7602 = vmatpush3.bf16.msra.mxu0 %v8258_v53  ;;  %v8307_v53 = vld [vmem:[#allocation2 + $0x7c0] sm:$0xff]  }
 0x138   :  { %7603 = vmatprep.subr.bf16.mxu0 %v8261_v56 }
 0x139   :  { %7624 = vmatpush3.bf16.msra.mxu1 %v8260_v55  ;;  %v148_v55 = vld [vmem:[%s9207_s0 + $0x70] sm:$0xff] }
 0x13a   :  { %7625 = vmatprep.subr.bf16.mxu1 %v8263_v58  ;;  %v6705_v56 = vcombine.low %v148_v55, %v148_v55  ;;  %v8310_v58 = vld [vmem:[#allocation2 + $0x780] sm:$0xff]  }
 0x13b   :  { %7604 = vmatpush3.bf16.msra.mxu0 %v8262_v57  ;;  %v6706_v57 = vcombine.high %v148_v55, %v148_v55  ;;  %v8336_v55 = vld [vmem:[#allocation6 + $0x4a4] ss:$84 sps:$4 sm:$0xff]  }
 0x13c   :  { %7605 = vmatprep.subr.bf16.mxu0 %v8265_v60  ;;  %v8311_v60 = vld [vmem:[#allocation2 + $0x878] sm:$0xff]  }
 0x13d   :  { %7626 = vmatpush3.bf16.msra.mxu1 %v8264_v59 }
 0x13e   :  { %7627 = vmatprep.subr.bf16.mxu1 %v8267_v62 }
 0x13f   :  { %7606 = vmatpush3.bf16.msra.mxu0 %v8266_v61  ;;  %v149_v61 = vld [vmem:[%s9207_s0 + $0x78] sm:$0xff] }
 0x140   :  { %7607 = vmatprep.subr.bf16.mxu0 %v8269_v0  ;;  %v6707_v0 = vcombine.low %v149_v61, %v149_v61 }
 0x141   :  { %7628 = vmatpush3.bf16.msra.mxu1 %v8268_v63 }
 0x142   :  { %7629 = vmatprep.subr.bf16.mxu1 %v8271_v2  ;;  %v8314_v2 = vld [vmem:[#allocation2 + $0x838] sm:$0xff]  }
 0x143   :  { %7608 = vmatpush3.bf16.msra.mxu0 %v8270_v1  ;;  %v6708_v1 = vcombine.high %v149_v61, %v149_v61  ;;  %v8348_v61 = vld [vmem:[#allocation6 + $0x354] ss:$84 sps:$4 sm:$0xff]  }
 0x144   :  { %7637 = vmatprep.subr.bf16.mxu0 %v8275_v8  ;;  %v8316_v8 = vld [vmem:[#allocation2 + $0x830] sm:$0xff]  }
 0x145   :  { %7630 = vmatpush3.bf16.msra.mxu1 %v8274_v7 }
 0x146   :  { %v7345_v4 = vpop.f32.mrf.mxu0  ;;  %2966 = vmatmul.mubr.bf16.vlgmr.msra.gmra.mxu0 %v6701_v5  ;;  %7659 = vmatprep.subr.bf16.mxu1 %v8279_v17  ;;  %v8321_v17 = vld [vmem:[#allocation2 + $0x858] sm:$0xff]  }
 0x147   :  { %7638 = vmatpush3.bf16.msra.mxu0 %v8278_v14  ;;  %3045 = vmatprep.mubr.bf16.mxu0 %v6706_v57  ;;  %v8318_v14 = vld [vmem:[#allocation2 + $0x828] sm:$0xff]   ;;  %v8342_v57 = vld [vmem:[#allocation6 + $0x3fc] ss:$84 sps:$4 sm:$0xff]  }
 0x148   :  { %v7346_v10 = vpop.f32.mrf.mxu0  ;;  %v7367_v11 = vpop.f32.mrf.mxu1  ;;  %3006 = vmatmul.mubr.bf16.vlgmr.msra.gmra.mxu1 %v6703_v12  ;;  %7639 = vmatprep.subr.bf16.mxu0 %v8281_v23  ;;  %v8325_v23 = vld [vmem:[#allocation2 + $0x848] sm:$0xff]  }
 0x149   :  { %v7347_v16 = vadd.f32 %v7346_v10, %v7345_v4  ;;  %7660 = vmatpush3.bf16.msra.mxu1 %v8280_v21  ;;  %3085 = vmatprep.mubr.bf16.mxu1 %v6708_v1  ;;  %v8317_v10 = vld [vmem:[#allocation2 + $0x868] sm:$0xff]  }
 0x14a   :  { %v7348_v18 = vpop.f32.mrf.mxu0  ;;  %v7368_v19 = vpop.f32.mrf.mxu1  ;;  %7661 = vmatprep.subr.bf16.mxu1 %v8283_v28  ;;  %v8354_v1 = vld [vmem:[#allocation6 + $0x2ac] ss:$84 sps:$4 sm:$0xff]  }
 0x14b   :  { %v2488_v20 = vadd.f32 %v7347_v16, %v6676_v15  ;;  %v7369_v22 = vadd.f32 %v7368_v19, %v7367_v11  ;;  %7640 = vmatpush3.bf16.msra.mxu0 %v8282_v27  ;;  %v8319_v15 = vld [vmem:[#allocation2 + $0x860] sm:$0xff]   ;;  %v8322_v18 = vld [vmem:[#allocation2 + $0x818] sm:$0xff]   ;;  %v8323_v19 = vld [vmem:[#allocation2 + $0x850] sm:$0xff]  }
 0x14c   :  { %v7349_v24 = vpop.f32.mrf.mxu0  ;;  %v7370_v25 = vpop.f32.mrf.mxu1  ;;  %7641 = vmatprep.subr.bf16.mxu0 %v8285_v31  ;;  %v8320_v16 = vld [vmem:[#allocation2 + $0x820] sm:$0xff]  }
 0x14d   :  { %v9065_v26 = vadd.f32 %v7369_v22, %v2488_v20  ;;  %7662 = vmatpush3.bf16.msra.mxu1 %v8284_v30  ;;  %v150_v20 = vld [vmem:[%s9207_s0 + $0x80] sm:$0xff]  ;;  %v8324_v22 = vld [vmem:[#allocation2 + $0x810] sm:$0xff]   ;;  %v8326_v24 = vld [vmem:[#allocation2 + $0x808] sm:$0xff]  }
 0x14e   :  { %v7371_v29 = vpop.f32.mrf.mxu1  ;;  %7663 = vmatprep.subr.bf16.mxu1 %v8287_v33  ;;  %v6710_v21 = vcombine.high %v150_v20, %v150_v20  ;;  %v8327_v25 = vld [vmem:[#allocation2 + $0x840] sm:$0xff]   ;;  %v6709_v27 = vcombine.low %v150_v20, %v150_v20 }
 0x14f   :  { %7642 = vmatpush3.bf16.msra.mxu0 %v8286_v32  ;;  %v8370_v20 = vld [vmem:[#allocation6 + $0xb0] ss:$84 sps:$4 sm:$0xff]  }
 0x150   :  { %7643 = vmatprep.subr.bf16.mxu0 %v8289_v35 }
 0x151   :  { %7664 = vmatpush3.bf16.msra.mxu1 %v8288_v34 }
 0x152   :  { %7665 = vmatprep.subr.bf16.mxu1 %v8291_v37 }
 0x153   :  { %7644 = vmatpush3.bf16.msra.mxu0 %v8290_v36 }
 0x154   :  { %7645 = vmatprep.subr.bf16.mxu0 %v8293_v39 }
 0x155   :  { %7666 = vmatpush3.bf16.msra.mxu1 %v8292_v38 }
 0x156   :  { %7667 = vmatprep.subr.bf16.mxu1 %v8295_v41 }
 0x157   :  { %7646 = vmatpush3.bf16.msra.mxu0 %v8294_v40 }
 0x158   :  { %7647 = vmatprep.subr.bf16.mxu0 %v8297_v43 }
 0x159   :  { %7668 = vmatpush3.bf16.msra.mxu1 %v8296_v42 }
 0x15a   :  { %7669 = vmatprep.subr.bf16.mxu1 %v8299_v45 }
 0x15b   :  { %7648 = vmatpush3.bf16.msra.mxu0 %v8298_v44 }
 0x15c   :  { %7649 = vmatprep.subr.bf16.mxu0 %v8301_v47 }
 0x15d   :  { %7670 = vmatpush3.bf16.msra.mxu1 %v8300_v46 }
 0x15e   :  { %7671 = vmatprep.subr.bf16.mxu1 %v8303_v49 }
 0x15f   :  { %7650 = vmatpush3.bf16.msra.mxu0 %v8302_v48 }
 0x160   :  { %7651 = vmatprep.subr.bf16.mxu0 %v8305_v51 }
 0x161   :  { %7672 = vmatpush3.bf16.msra.mxu1 %v8304_v50 }
 0x162   :  { %7673 = vmatprep.subr.bf16.mxu1 %v8307_v53  ;;  %v8333_v53 = vld [vmem:[#allocation6 + $0x49c] ss:$84 sps:$4 sm:$0xff]  }
 0x163   :  { %7652 = vmatpush3.bf16.msra.mxu0 %v8306_v52  ;;  %v8331_v52 = vld [vmem:[#allocation6 + $0x498] ss:$84 sps:$4 sm:$0xff]  }
 0x164   :  { %7681 = vmatprep.subr.bf16.mxu0 %v8311_v60  ;;  %v8345_v60 = vld [vmem:[#allocation6 + $0x34c] ss:$84 sps:$4 sm:$0xff]  }
 0x165   :  { %7674 = vmatpush3.bf16.msra.mxu1 %v8310_v58  ;;  %v8337_v58 = vld [vmem:[#allocation6 + $0x3f0] ss:$84 sps:$4 sm:$0xff]  }
 0x166   :  { %v7389_v54 = vpop.f32.mrf.mxu0  ;;  %3046 = vmatmul.mubr.bf16.vlgmr.msra.gmra.mxu0 %v6705_v56  ;;  %v8339_v56 = vld [vmem:[#allocation6 + $0x3f4] ss:$84 sps:$4 sm:$0xff]   ;;  %4270 = vmatprep.subr.bf16.mxu1 %v8333_v53 }
 0x167   :  { %7682 = vmatpush3.bf16.msra.mxu0 %v8314_v2  ;;  %3125 = vmatprep.mubr.bf16.mxu0 %v6710_v21  ;;  %v8349_v2 = vld [vmem:[#allocation6 + $0x2a0] ss:$84 sps:$4 sm:$0xff]  }
 0x168   :  { %v7390_v59 = vpop.f32.mrf.mxu0  ;;  %v7411_v63 = vpop.f32.mrf.mxu1  ;;  %3086 = vmatmul.mubr.bf16.vlgmr.msra.gmra.mxu1 %v6707_v0  ;;  %7683 = vmatprep.subr.bf16.mxu0 %v8315_v6  ;;  %v8351_v0 = vld [vmem:[#allocation6 + $0x2a4] ss:$84 sps:$4 sm:$0xff]  }
 0x169   :  { %v7391_v62 = vadd.f32 %v7390_v59, %v7389_v54  ;;  %v8334_v54 = vld [vmem:[#allocation6 + $0x4a0] ss:$84 sps:$4 sm:$0xff]   ;;  %4271 = vmatpush1.bf16.msra.mxu1 %v8331_v52  ;;  %v8340_v59 = vld [vmem:[#allocation6 + $0x3f8] ss:$84 sps:$4 sm:$0xff]  }
 0x16a   :  { %v7392_v3 = vpop.f32.mrf.mxu0  ;;  %v7412_v5 = vpop.f32.mrf.mxu1  ;;  %4272 = vmatprep.subr.bf16.mxu1 %v8339_v56  ;;  %v8355_v6 = vld [vmem:[#allocation6 + $0x1f8] ss:$84 sps:$4 sm:$0xff]  }
 0x16b   :  { %v2568_v4 = vadd.f32 %v7391_v62, %v9065_v26  ;;  %v7413_v7 = vadd.f32 %v7412_v5, %v7411_v63  ;;  %7684 = vmatpush3.bf16.msra.mxu0 %v8316_v8  ;;  %v8328_v26 = vld [vmem:[#allocation2 + $0x800] sm:$0xff]   ;;  %v8363_v8 = vld [vmem:[#allocation6 + $0x154] ss:$84 sps:$4 sm:$0xff]  }
 0x16c   :  { %v7393_v9 = vpop.f32.mrf.mxu0  ;;  %v7414_v11 = vpop.f32.mrf.mxu1  ;;  %7685 = vmatprep.subr.bf16.mxu0 %v8317_v10  ;;  %v8343_v62 = vld [vmem:[#allocation6 + $0x348] ss:$84 sps:$4 sm:$0xff]   ;;  %v8346_v63 = vld [vmem:[#allocation6 + $0x350] ss:$84 sps:$4 sm:$0xff]  }
 0x16d   :  { %v2608_v12 = vadd.f32 %v7413_v7, %v2568_v4  ;;  %4273 = vmatpush1.bf16.msra.mxu1 %v8337_v58  ;;  %v8352_v3 = vld [vmem:[#allocation6 + $0x2a8] ss:$84 sps:$4 sm:$0xff]   ;;  %v8360_v5 = vld [vmem:[#allocation6 + $0x204] ss:$84 sps:$4 sm:$0xff]   ;;  %v8358_v7 = vld [vmem:[#allocation6 + $0x200] ss:$84 sps:$4 sm:$0xff]  }
 0x16e   :  { %v7415_v13 = vpop.f32.mrf.mxu1  ;;  %4274 = vmatprep.subr.bf16.mxu1 %v8345_v60  ;;  %v8357_v4 = vld [vmem:[#allocation6 + $0x1fc] ss:$84 sps:$4 sm:$0xff]   ;;  %v8364_v11 = vld [vmem:[#allocation6 + $0x158] ss:$84 sps:$4 sm:$0xff]  }
 0x16f   :  { %7686 = vmatpush3.bf16.msra.mxu0 %v8318_v14  ;;  %v8366_v9 = vld [vmem:[#allocation6 + $0x15c] ss:$84 sps:$4 sm:$0xff]  }
 0x170   :  { %7687 = vmatprep.subr.bf16.mxu0 %v8319_v15  ;;  %v8361_v10 = vld [vmem:[#allocation6 + $0x150] ss:$84 sps:$4 sm:$0xff]  }
 0x171   :  { %4275 = vmatpush1.bf16.msra.mxu1 %v8343_v62 }
 0x172   :  { %4276 = vmatprep.subr.bf16.mxu1 %v8351_v0 }
 0x173   :  { %7688 = vmatpush3.bf16.msra.mxu0 %v8320_v16  ;;  %v8369_v16 = vld [vmem:[#allocation6 + $0xac] ss:$84 sps:$4 sm:$0xff]  }
 0x174   :  { %7689 = vmatprep.subr.bf16.mxu0 %v8321_v17  ;;  %v8372_v17 = vld [vmem:[#allocation6 + $0xb4] ss:$84 sps:$4 sm:$0xff]  }
 0x175   :  { %4277 = vmatpush1.bf16.msra.mxu1 %v8349_v2 }
 0x176   :  { %4278 = vmatprep.subr.bf16.mxu1 %v8357_v4 }
 0x177   :  { %7690 = vmatpush3.bf16.msra.mxu0 %v8322_v18 }
 0x178   :  { %7691 = vmatprep.subr.bf16.mxu0 %v8323_v19  ;;  %v8367_v19 = vld [vmem:[#allocation6 + $0xa8] ss:$84 sps:$4 sm:$0xff]  }
 0x179   :  { %4279 = vmatpush1.bf16.msra.mxu1 %v8355_v6 }
 0x17a   :  { %4280 = vmatprep.subr.bf16.mxu1 %v8363_v8 }
 0x17b   :  { %7692 = vmatpush3.bf16.msra.mxu0 %v8324_v22 }
 0x17c   :  { %7693 = vmatprep.subr.bf16.mxu0 %v8325_v23 }
 0x17d   :  { %4281 = vmatpush1.bf16.msra.mxu1 %v8361_v10 }
 0x17e   :  { %4282 = vmatprep.subr.bf16.mxu1 %v8369_v16  ;;  %v8387_v16 = vld [vmem:[#allocation6 + $0x404] ss:$84 sps:$4 sm:$0xff]  }
 0x17f   :  { %7694 = vmatpush3.bf16.msra.mxu0 %v8326_v24 }
 0x180   :  { %7695 = vmatprep.subr.bf16.mxu0 %v8327_v25 }
 0x181   :  { %4283 = vmatpush1.bf16.msra.mxu1 %v8367_v19  ;;  %v8385_v19 = vld [vmem:[#allocation6 + $0x400] ss:$84 sps:$4 sm:$0xff]  }
 0x183   :  { %7696 = vmatpush3.bf16.msra.mxu0 %v8328_v26  ;;  %v8375_v26 = vld [vmem:[#allocation6 + $0x4] ss:$84 sps:$4 sm:$0xff]  }
 0x184   :  { %4311 = vmatprep.subr.bf16.mxu0 %v8336_v55  ;;  %4284 = vmatprep.subr.bf16.mxu1 %v8375_v26  ;;  %v8402_v26 = vld [vmem:[#allocation6 + $0x2bc] ss:$84 sps:$4 sm:$0xff]  }
 0x186   :  { %v7433_v28 = vpop.f32.mrf.mxu0  ;;  %3126 = vmatmul.mubr.bf16.vlgmr.msra.gmra.mxu0 %v6709_v27  ;;  %v8378_v27 = vld [vmem:[#allocation6 + $0xc] ss:$84 sps:$4 sm:$0xff]  }
 0x187   :  { %4312 = vmatpush1.bf16.msra.mxu0 %v8334_v54 }
 0x188   :  { %v7434_v29 = vpop.f32.mrf.mxu0  ;;  %v7455_v30 = vpop.f32.mrf.mxu1  ;;  %4313 = vmatprep.subr.bf16.mxu0 %v8342_v57 }
 0x189   :  { %v7435_v31 = vadd.f32 %v7434_v29, %v7433_v28  ;;  %v8373_v29 = vld [vmem:[#allocation6] ss:$84 sps:$4 sm:$0xff]  }
 0x18a   :  { %v7436_v32 = vpop.f32.mrf.mxu0  ;;  %v7456_v33 = vpop.f32.mrf.mxu1  ;;  %4285 = vmatpush1.bf16.msra.mxu1 %v8373_v29  ;;  %v8405_v29 = vld [vmem:[#allocation6 + $0x20c] ss:$84 sps:$4 sm:$0xff]  }
 0x18b   :  { %v2648_v34 = vadd.f32 %v7435_v31, %v2608_v12  ;;  %v7457_v35 = vadd.f32 %v7456_v33, %v7455_v30  ;;  %4314 = vmatpush1.bf16.msra.mxu0 %v8340_v59  ;;  %v8376_v30 = vld [vmem:[#allocation6 + $0x8] ss:$84 sps:$4 sm:$0xff]   ;;  %v8381_v32 = vld [vmem:[#allocation6 + $0x4ac] ss:$84 sps:$4 sm:$0xff]  }
 0x18c   :  { %v7437_v36 = vpop.f32.mrf.mxu0  ;;  %v7458_v37 = vpop.f32.mrf.mxu1  ;;  %4315 = vmatprep.subr.bf16.mxu0 %v8348_v61  ;;  %v8384_v33 = vld [vmem:[#allocation6 + $0x4b4] ss:$84 sps:$4 sm:$0xff]   ;;  %4352 = vmatprep.subr.bf16.mxu1 %v8381_v32  ;;  %v8406_v32 = vld [vmem:[#allocation6 + $0x210] ss:$84 sps:$4 sm:$0xff]  }
 0x18d   :  { %v2688_v38 = vadd.f32 %v7457_v35, %v2648_v34  ;;  %v8937_v34 = vmov 0  }
 0x18e   :  { %v7459_v39 = vpop.f32.mrf.mxu1  ;;  %4302 = vmatprep.mubr.bf16.mxu1 %v8937_v34  ;;  %4343 = vmatprep.mubr.bf16.mxu0 %v8937_v34 }
 0x18f   :  { %4316 = vmatpush1.bf16.msra.mxu0 %v8346_v63 }
 0x190   :  { %4317 = vmatprep.subr.bf16.mxu0 %v8354_v1 }
 0x193   :  { %4318 = vmatpush1.bf16.msra.mxu0 %v8352_v3 }
 0x194   :  { %4319 = vmatprep.subr.bf16.mxu0 %v8360_v5 }
 0x197   :  { %4320 = vmatpush1.bf16.msra.mxu0 %v8358_v7 }
 0x198   :  { %4321 = vmatprep.subr.bf16.mxu0 %v8366_v9 }
 0x19b   :  { %4322 = vmatpush1.bf16.msra.mxu0 %v8364_v11 }
 0x19c   :  { %4323 = vmatprep.subr.bf16.mxu0 %v8372_v17  ;;  %v8390_v17 = vld [vmem:[#allocation6 + $0x40c] ss:$84 sps:$4 sm:$0xff]  }
 0x19f   :  { %4324 = vmatpush1.bf16.msra.mxu0 %v8370_v20  ;;  %v8388_v20 = vld [vmem:[#allocation6 + $0x408] ss:$84 sps:$4 sm:$0xff]  }
 0x1a0   :  { %4325 = vmatprep.subr.bf16.mxu0 %v8378_v27  ;;  %v8397_v27 = vld [vmem:[#allocation6 + $0x2b0] ss:$84 sps:$4 sm:$0xff]  }
 0x1a3   :  { %4326 = vmatpush1.bf16.msra.mxu0 %v8376_v30  ;;  %v8408_v30 = vld [vmem:[#allocation6 + $0x214] ss:$84 sps:$4 sm:$0xff]  }
 0x1a4   :  { %4393 = vmatprep.subr.bf16.mxu0 %v8384_v33  ;;  %v8411_v33 = vld [vmem:[#allocation6 + $0x164] ss:$84 sps:$4 sm:$0xff]  }
 0x1a6   :  { %v7477_v40 = vpop.f32.mrf.mxu0 }
 0x1a8   :  { %v7478_v41 = vpop.f32.mrf.mxu0  ;;  %v7499_v42 = vpop.f32.mrf.mxu1 }
 0x1a9   :  { %v7479_v43 = vadd.f32 %v7478_v41, %v7477_v40 }
 0x1aa   :  { %v7480_v44 = vpop.f32.mrf.mxu0  ;;  %v7500_v45 = vpop.f32.mrf.mxu1 }
 0x1ab   :  { %v2728_v46 = vadd.f32 %v7479_v43, %v2688_v38  ;;  %v7501_v47 = vadd.f32 %v7500_v45, %v7499_v42 }
 0x1ac   :  { %v7481_v48 = vpop.f32.mrf.mxu0  ;;  %v7502_v49 = vpop.f32.mrf.mxu1 }
 0x1ad   :  { %v2768_v50 = vadd.f32 %v7501_v47, %v2728_v46 }
 0x1ae   :  { %v7503_v51 = vpop.f32.mrf.mxu1 }
 0x1c6   :  { %v7521_v12 = vpop.f32.mrf.mxu0 }
 0x1c8   :  { %v7522_v13 = vpop.f32.mrf.mxu0  ;;  %v7543_v15 = vpop.f32.mrf.mxu1 }
 0x1c9   :  { %v7523_v14 = vadd.f32 %v7522_v13, %v7521_v12  ;;  %v8379_v13 = vld [vmem:[#allocation6 + $0x4a8] ss:$84 sps:$4 sm:$0xff]  }
 0x1ca   :  { %v7524_v18 = vpop.f32.mrf.mxu0  ;;  %v7544_v22 = vpop.f32.mrf.mxu1 }
 0x1cb   :  { %v2808_v21 = vadd.f32 %v7523_v14, %v2768_v50  ;;  %v7545_v23 = vadd.f32 %v7544_v22, %v7543_v15  ;;  %v8382_v14 = vld [vmem:[#allocation6 + $0x4b0] ss:$84 sps:$4 sm:$0xff]  }
 0x1cc   :  { %v7525_v24 = vpop.f32.mrf.mxu0  ;;  %v7546_v25 = vpop.f32.mrf.mxu1  ;;  %v8396_v22 = vld [vmem:[#allocation6 + $0x364] ss:$84 sps:$4 sm:$0xff]  }
 0x1cd   :  { %v2848_v28 = vadd.f32 %v7545_v23, %v2808_v21  ;;  %v8393_v21 = vld [vmem:[#allocation6 + $0x35c] ss:$84 sps:$4 sm:$0xff]   ;;  %v8391_v23 = vld [vmem:[#allocation6 + $0x358] ss:$84 sps:$4 sm:$0xff]   ;;  %v8394_v24 = vld [vmem:[#allocation6 + $0x360] ss:$84 sps:$4 sm:$0xff]  }
 0x1ce   :  { %v7547_v31 = vpop.f32.mrf.mxu1  ;;  %v8399_v25 = vld [vmem:[#allocation6 + $0x2b4] ss:$84 sps:$4 sm:$0xff]  }
 0x1cf   :  { %v8403_v31 = vld [vmem:[#allocation6 + $0x208] ss:$84 sps:$4 sm:$0xff]  }
 0x1e6   :  { %v7565_v35 = vpop.f32.mrf.mxu0 }
 0x1e8   :  { %v7566_v36 = vpop.f32.mrf.mxu0  ;;  %v7587_v37 = vpop.f32.mrf.mxu1 }
 0x1e9   :  { %v7567_v38 = vadd.f32 %v7566_v36, %v7565_v35  ;;  %v8414_v35 = vld [vmem:[#allocation6 + $0x16c] ss:$84 sps:$4 sm:$0xff]  }
 0x1ea   :  { %v7568_v39 = vpop.f32.mrf.mxu0  ;;  %v7588_v40 = vpop.f32.mrf.mxu1  ;;  %v8409_v36 = vld [vmem:[#allocation6 + $0x160] ss:$84 sps:$4 sm:$0xff]  }
 0x1eb   :  { %v2888_v41 = vadd.f32 %v7567_v38, %v2848_v28  ;;  %v7589_v42 = vadd.f32 %v7588_v40, %v7587_v37  ;;  %v8400_v28 = vld [vmem:[#allocation6 + $0x2b8] ss:$84 sps:$4 sm:$0xff]   ;;  %v8412_v37 = vld [vmem:[#allocation6 + $0x168] ss:$84 sps:$4 sm:$0xff]  }
 0x1ec   :  { %v7569_v43 = vpop.f32.mrf.mxu0  ;;  %v7590_v44 = vpop.f32.mrf.mxu1  ;;  %v8417_v38 = vld [vmem:[#allocation6 + $0xbc] ss:$84 sps:$4 sm:$0xff]   ;;  %v8420_v39 = vld [vmem:[#allocation6 + $0xc4] ss:$84 sps:$4 sm:$0xff]  }
 0x1ed   :  { %v2928_v45 = vadd.f32 %v7589_v42, %v2888_v41  ;;  %v8415_v40 = vld [vmem:[#allocation6 + $0xb8] ss:$84 sps:$4 sm:$0xff]   ;;  %v8418_v41 = vld [vmem:[#allocation6 + $0xc0] ss:$84 sps:$4 sm:$0xff]   ;;  %v8426_v43 = vld [vmem:[#allocation6 + $0x1c] ss:$84 sps:$4 sm:$0xff]  }
 0x1ee   :  { %v7591_v46 = vpop.f32.mrf.mxu1  ;;  %v8423_v42 = vld [vmem:[#allocation6 + $0x14] ss:$84 sps:$4 sm:$0xff]   ;;  %v8421_v44 = vld [vmem:[#allocation6 + $0x10] ss:$84 sps:$4 sm:$0xff]  }
 0x1ef   :  { %v8429_v46 = vld [vmem:[#allocation6 + $0x4bc] ss:$84 sps:$4 sm:$0xff]  }
 0x206   :  { %v7609_v47 = vpop.f32.mrf.mxu0 }
 0x208   :  { %v7610_v48 = vpop.f32.mrf.mxu0  ;;  %v7631_v49 = vpop.f32.mrf.mxu1 }
 0x209   :  { %v7611_v63 = vadd.f32 %v7610_v48, %v7609_v47  ;;  %v8432_v47 = vld [vmem:[#allocation6 + $0x4c4] ss:$84 sps:$4 sm:$0xff]  }
 0x20a   :  { %v7612_v50 = vpop.f32.mrf.mxu0  ;;  %v7632_v51 = vpop.f32.mrf.mxu1  ;;  %v8427_v48 = vld [vmem:[#allocation6 + $0x4b8] ss:$84 sps:$4 sm:$0xff]  }
 0x20b   :  { %v2968_v0 = vadd.f32 %v7611_v63, %v2928_v45  ;;  %v7633_v1 = vadd.f32 %v7632_v51, %v7631_v49  ;;  %v8424_v45 = vld [vmem:[#allocation6 + $0x18] ss:$84 sps:$4 sm:$0xff]   ;;  %v8430_v49 = vld [vmem:[#allocation6 + $0x4c0] ss:$84 sps:$4 sm:$0xff]   ;;  %v8438_v51 = vld [vmem:[#allocation6 + $0x41c] ss:$84 sps:$4 sm:$0xff]  }
 0x20c   :  { %v7613_v52 = vpop.f32.mrf.mxu0  ;;  %v7634_v53 = vpop.f32.mrf.mxu1  ;;  %v8435_v50 = vld [vmem:[#allocation6 + $0x414] ss:$84 sps:$4 sm:$0xff]   ;;  %v8456_v63 = vld [vmem:[#allocation6 + $0x224] ss:$84 sps:$4 sm:$0xff]  }
 0x20d   :  { %v3008_v3 = vadd.f32 %v7633_v1, %v2968_v0  ;;  %v8433_v52 = vld [vmem:[#allocation6 + $0x410] ss:$84 sps:$4 sm:$0xff]   ;;  %v8436_v53 = vld [vmem:[#allocation6 + $0x418] ss:$84 sps:$4 sm:$0xff]   ;;  %v8454_v1 = vld [vmem:[#allocation6 + $0x220] ss:$84 sps:$4 sm:$0xff]  }
 0x20e   :  { %v7635_v54 = vpop.f32.mrf.mxu1  ;;  %v8451_v0 = vld [vmem:[#allocation6 + $0x218] ss:$84 sps:$4 sm:$0xff]  }
 0x20f   :  { %v8441_v54 = vld [vmem:[#allocation6 + $0x36c] ss:$84 sps:$4 sm:$0xff]  }
 0x226   :  { %v7653_v55 = vpop.f32.mrf.mxu0 }
 0x228   :  { %v7654_v56 = vpop.f32.mrf.mxu0  ;;  %v7675_v57 = vpop.f32.mrf.mxu1 }
 0x229   :  { %v7655_v2 = vadd.f32 %v7654_v56, %v7653_v55  ;;  %v8444_v55 = vld [vmem:[#allocation6 + $0x374] ss:$84 sps:$4 sm:$0xff]  }
 0x22a   :  { %v7656_v58 = vpop.f32.mrf.mxu0  ;;  %v7676_v59 = vpop.f32.mrf.mxu1  ;;  %v8439_v56 = vld [vmem:[#allocation6 + $0x368] ss:$84 sps:$4 sm:$0xff]  }
 0x22b   :  { %v3048_v4 = vadd.f32 %v7655_v2, %v3008_v3  ;;  %v7677_v5 = vadd.f32 %v7676_v59, %v7675_v57  ;;  %v8442_v57 = vld [vmem:[#allocation6 + $0x370] ss:$84 sps:$4 sm:$0xff]   ;;  %v8450_v59 = vld [vmem:[#allocation6 + $0x2cc] ss:$84 sps:$4 sm:$0xff]   ;;  %v8459_v2 = vld [vmem:[#allocation6 + $0x174] ss:$84 sps:$4 sm:$0xff]  }
 0x22c   :  { %v7657_v60 = vpop.f32.mrf.mxu0  ;;  %v7678_v61 = vpop.f32.mrf.mxu1  ;;  %v8447_v58 = vld [vmem:[#allocation6 + $0x2c4] ss:$84 sps:$4 sm:$0xff]   ;;  %v8462_v3 = vld [vmem:[#allocation6 + $0x17c] ss:$84 sps:$4 sm:$0xff]  }
 0x22d   :  { %v3088_v8 = vadd.f32 %v7677_v5, %v3048_v4  ;;  %v8445_v60 = vld [vmem:[#allocation6 + $0x2c0] ss:$84 sps:$4 sm:$0xff]   ;;  %v8448_v61 = vld [vmem:[#allocation6 + $0x2c8] ss:$84 sps:$4 sm:$0xff]   ;;  %v8457_v4 = vld [vmem:[#allocation6 + $0x170] ss:$84 sps:$4 sm:$0xff]  }
 0x22e   :  { %v7679_v62 = vpop.f32.mrf.mxu1  ;;  %v8460_v5 = vld [vmem:[#allocation6 + $0x178] ss:$84 sps:$4 sm:$0xff]  }
 0x22f   :  { %v8453_v62 = vld [vmem:[#allocation6 + $0x21c] ss:$84 sps:$4 sm:$0xff]  }
 0x246   :  { %v7697_v6 = vpop.f32.mrf.mxu0 }
 0x248   :  { %v7698_v7 = vpop.f32.mrf.mxu0 }
 0x249   :  { %v7699_v9 = vadd.f32 %v7698_v7, %v7697_v6  ;;  %v8465_v6 = vld [vmem:[#allocation6 + $0xcc] ss:$84 sps:$4 sm:$0xff]   ;;  %v8468_v7 = vld [vmem:[#allocation6 + $0xd4] ss:$84 sps:$4 sm:$0xff]  }
 0x24a   :  { %v7700_v10 = vpop.f32.mrf.mxu0 }
 0x24b   :  { %v3128_v11 = vadd.f32 %v7699_v9, %v3088_v8  ;;  %v8463_v8 = vld [vmem:[#allocation6 + $0xc8] ss:$84 sps:$4 sm:$0xff]   ;;  %v8466_v9 = vld [vmem:[#allocation6 + $0xd0] ss:$84 sps:$4 sm:$0xff]  }
 0x24c   :  { %v7701_v12 = vpop.f32.mrf.mxu0  ;;  %v8471_v10 = vld [vmem:[#allocation6 + $0x24] ss:$84 sps:$4 sm:$0xff]  }
 0x24d   :  { %v3133_v15 = vmax.f32 %v3128_v11, 0.0  ;;  %v8474_v11 = vld [vmem:[#allocation6 + $0x2c] ss:$84 sps:$4 sm:$0xff]  }
 0x24e   :  { %v8469_v12 = vld [vmem:[#allocation6 + $0x20] ss:$84 sps:$4 sm:$0xff]  }
 0x24f   :  { %v9079_v18 = vpack.c.bf16 %v3133_v15, %v3133_v15  ;;  %v8480_v15 = vld [vmem:[#allocation6 + $0x4d4] ss:$84 sps:$4 sm:$0xff]  }
 0x251   :  { %4303 = vmatmul.mubr.bf16.vlgmr.msra.gmra.mxu1 %v9079_v18  ;;  %4344 = vmatmul.mubr.bf16.vlgmr.msra.gmra.mxu0 %v9079_v18 }
 0x252   :  { %4353 = vmatpush1.bf16.msra.mxu1 %v8379_v13  ;;  %4394 = vmatpush1.bf16.msra.mxu0 %v8382_v14  ;;  %v8472_v13 = vld [vmem:[#allocation6 + $0x28] ss:$84 sps:$4 sm:$0xff]   ;;  %v8477_v14 = vld [vmem:[#allocation6 + $0x4cc] ss:$84 sps:$4 sm:$0xff]  }
 0x253   :  { %4354 = vmatprep.subr.bf16.mxu1 %v8387_v16  ;;  %4395 = vmatprep.subr.bf16.mxu0 %v8390_v17  ;;  %v8475_v16 = vld [vmem:[#allocation6 + $0x4c8] ss:$84 sps:$4 sm:$0xff]   ;;  %v8478_v17 = vld [vmem:[#allocation6 + $0x4d0] ss:$84 sps:$4 sm:$0xff]  }
 0x254   :  { %4384 = vmatprep.mubr.bf16.mxu1 %v8937_v34  ;;  %4425 = vmatprep.mubr.bf16.mxu0 %v8937_v34 }
 0x256   :  { %4355 = vmatpush1.bf16.msra.mxu1 %v8385_v19  ;;  %4396 = vmatpush1.bf16.msra.mxu0 %v8388_v20  ;;  %v8483_v19 = vld [vmem:[#allocation6 + $0x424] ss:$84 sps:$4 sm:$0xff]   ;;  %v8486_v20 = vld [vmem:[#allocation6 + $0x42c] ss:$84 sps:$4 sm:$0xff]  }
 0x257   :  { %4356 = vmatprep.subr.bf16.mxu1 %v8393_v21  ;;  %4397 = vmatprep.subr.bf16.mxu0 %v8396_v22  ;;  %v8481_v21 = vld [vmem:[#allocation6 + $0x420] ss:$84 sps:$4 sm:$0xff]   ;;  %v8484_v22 = vld [vmem:[#allocation6 + $0x428] ss:$84 sps:$4 sm:$0xff]  }
 0x25a   :  { %4357 = vmatpush1.bf16.msra.mxu1 %v8391_v23  ;;  %4398 = vmatpush1.bf16.msra.mxu0 %v8394_v24  ;;  %v8489_v23 = vld [vmem:[#allocation6 + $0x37c] ss:$84 sps:$4 sm:$0xff]   ;;  %v8492_v24 = vld [vmem:[#allocation6 + $0x384] ss:$84 sps:$4 sm:$0xff]  }
 0x25b   :  { %4358 = vmatprep.subr.bf16.mxu1 %v8399_v25  ;;  %4399 = vmatprep.subr.bf16.mxu0 %v8402_v26  ;;  %v8487_v25 = vld [vmem:[#allocation6 + $0x378] ss:$84 sps:$4 sm:$0xff]   ;;  %v8490_v26 = vld [vmem:[#allocation6 + $0x380] ss:$84 sps:$4 sm:$0xff]  }
 0x25e   :  { %4359 = vmatpush1.bf16.msra.mxu1 %v8397_v27  ;;  %4400 = vmatpush1.bf16.msra.mxu0 %v8400_v28  ;;  %v8495_v27 = vld [vmem:[#allocation6 + $0x2d4] ss:$84 sps:$4 sm:$0xff]   ;;  %v8498_v28 = vld [vmem:[#allocation6 + $0x2dc] ss:$84 sps:$4 sm:$0xff]  }
 0x25f   :  { %4360 = vmatprep.subr.bf16.mxu1 %v8405_v29  ;;  %4401 = vmatprep.subr.bf16.mxu0 %v8408_v30  ;;  %v8493_v29 = vld [vmem:[#allocation6 + $0x2d0] ss:$84 sps:$4 sm:$0xff]   ;;  %v8496_v30 = vld [vmem:[#allocation6 + $0x2d8] ss:$84 sps:$4 sm:$0xff]  }
 0x262   :  { %4361 = vmatpush1.bf16.msra.mxu1 %v8403_v31  ;;  %4402 = vmatpush1.bf16.msra.mxu0 %v8406_v32  ;;  %v8501_v31 = vld [vmem:[#allocation6 + $0x22c] ss:$84 sps:$4 sm:$0xff]   ;;  %v8504_v32 = vld [vmem:[#allocation6 + $0x234] ss:$84 sps:$4 sm:$0xff]  }
 0x263   :  { %4362 = vmatprep.subr.bf16.mxu1 %v8411_v33  ;;  %4403 = vmatprep.subr.bf16.mxu0 %v8414_v35  ;;  %v8499_v33 = vld [vmem:[#allocation6 + $0x228] ss:$84 sps:$4 sm:$0xff]   ;;  %v8502_v35 = vld [vmem:[#allocation6 + $0x230] ss:$84 sps:$4 sm:$0xff]  }
 0x266   :  { %4363 = vmatpush1.bf16.msra.mxu1 %v8409_v36  ;;  %4404 = vmatpush1.bf16.msra.mxu0 %v8412_v37  ;;  %v8507_v36 = vld [vmem:[#allocation6 + $0x184] ss:$84 sps:$4 sm:$0xff]   ;;  %v8510_v37 = vld [vmem:[#allocation6 + $0x18c] ss:$84 sps:$4 sm:$0xff]  }
 0x267   :  { %4364 = vmatprep.subr.bf16.mxu1 %v8417_v38  ;;  %4405 = vmatprep.subr.bf16.mxu0 %v8420_v39  ;;  %v8505_v38 = vld [vmem:[#allocation6 + $0x180] ss:$84 sps:$4 sm:$0xff]   ;;  %v8508_v39 = vld [vmem:[#allocation6 + $0x188] ss:$84 sps:$4 sm:$0xff]  }
 0x26a   :  { %4365 = vmatpush1.bf16.msra.mxu1 %v8415_v40  ;;  %4406 = vmatpush1.bf16.msra.mxu0 %v8418_v41  ;;  %v8513_v40 = vld [vmem:[#allocation6 + $0xdc] ss:$84 sps:$4 sm:$0xff]   ;;  %v8516_v41 = vld [vmem:[#allocation6 + $0xe4] ss:$84 sps:$4 sm:$0xff]  }
 0x26b   :  { %4366 = vmatprep.subr.bf16.mxu1 %v8423_v42  ;;  %4407 = vmatprep.subr.bf16.mxu0 %v8426_v43  ;;  %v8511_v42 = vld [vmem:[#allocation6 + $0xd8] ss:$84 sps:$4 sm:$0xff]   ;;  %v8514_v43 = vld [vmem:[#allocation6 + $0xe0] ss:$84 sps:$4 sm:$0xff]  }
 0x26e   :  { %4367 = vmatpush1.bf16.msra.mxu1 %v8421_v44  ;;  %4408 = vmatpush1.bf16.msra.mxu0 %v8424_v45  ;;  %v8519_v44 = vld [vmem:[#allocation6 + $0x34] ss:$84 sps:$4 sm:$0xff]   ;;  %v8522_v45 = vld [vmem:[#allocation6 + $0x3c] ss:$84 sps:$4 sm:$0xff]  }
 0x26f   :  { %4434 = vmatprep.subr.bf16.mxu1 %v8429_v46  ;;  %4475 = vmatprep.subr.bf16.mxu0 %v8432_v47  ;;  %v8517_v46 = vld [vmem:[#allocation6 + $0x30] ss:$84 sps:$4 sm:$0xff]   ;;  %v8520_v47 = vld [vmem:[#allocation6 + $0x38] ss:$84 sps:$4 sm:$0xff]  }
 0x271   :  { %4385 = vmatmul.mubr.bf16.vlgmr.msra.gmra.mxu1 %v9079_v18  ;;  %4426 = vmatmul.mubr.bf16.vlgmr.msra.gmra.mxu0 %v9079_v18 }
 0x272   :  { %4435 = vmatpush1.bf16.msra.mxu1 %v8427_v48  ;;  %4476 = vmatpush1.bf16.msra.mxu0 %v8430_v49  ;;  %v8525_v48 = vld [vmem:[#allocation6 + $0x4dc] ss:$84 sps:$4 sm:$0xff]   ;;  %v8528_v49 = vld [vmem:[#allocation6 + $0x4e4] ss:$84 sps:$4 sm:$0xff]  }
 0x273   :  { %4436 = vmatprep.subr.bf16.mxu1 %v8435_v50  ;;  %4477 = vmatprep.subr.bf16.mxu0 %v8438_v51  ;;  %v8523_v50 = vld [vmem:[#allocation6 + $0x4d8] ss:$84 sps:$4 sm:$0xff]   ;;  %v8526_v51 = vld [vmem:[#allocation6 + $0x4e0] ss:$84 sps:$4 sm:$0xff]  }
 0x274   :  { %4466 = vmatprep.mubr.bf16.mxu1 %v8937_v34  ;;  %4507 = vmatprep.mubr.bf16.mxu0 %v8937_v34 }
 0x276   :  { %4437 = vmatpush1.bf16.msra.mxu1 %v8433_v52  ;;  %4478 = vmatpush1.bf16.msra.mxu0 %v8436_v53  ;;  %v8531_v52 = vld [vmem:[#allocation6 + $0x434] ss:$84 sps:$4 sm:$0xff]   ;;  %v8534_v53 = vld [vmem:[#allocation6 + $0x43c] ss:$84 sps:$4 sm:$0xff]  }
 0x277   :  { %4438 = vmatprep.subr.bf16.mxu1 %v8441_v54  ;;  %4479 = vmatprep.subr.bf16.mxu0 %v8444_v55  ;;  %v8529_v54 = vld [vmem:[#allocation6 + $0x430] ss:$84 sps:$4 sm:$0xff]   ;;  %v8532_v55 = vld [vmem:[#allocation6 + $0x438] ss:$84 sps:$4 sm:$0xff]  }
 0x27a   :  { %4439 = vmatpush1.bf16.msra.mxu1 %v8439_v56  ;;  %4480 = vmatpush1.bf16.msra.mxu0 %v8442_v57  ;;  %v8537_v56 = vld [vmem:[#allocation6 + $0x38c] ss:$84 sps:$4 sm:$0xff]   ;;  %v8540_v57 = vld [vmem:[#allocation6 + $0x394] ss:$84 sps:$4 sm:$0xff]  }
 0x27b   :  { %4440 = vmatprep.subr.bf16.mxu1 %v8447_v58  ;;  %4481 = vmatprep.subr.bf16.mxu0 %v8450_v59  ;;  %v8535_v58 = vld [vmem:[#allocation6 + $0x388] ss:$84 sps:$4 sm:$0xff]   ;;  %v8538_v59 = vld [vmem:[#allocation6 + $0x390] ss:$84 sps:$4 sm:$0xff]  }
 0x27e   :  { %4441 = vmatpush1.bf16.msra.mxu1 %v8445_v60  ;;  %4482 = vmatpush1.bf16.msra.mxu0 %v8448_v61  ;;  %v8543_v60 = vld [vmem:[#allocation6 + $0x2e4] ss:$84 sps:$4 sm:$0xff]   ;;  %v8546_v61 = vld [vmem:[#allocation6 + $0x2ec] ss:$84 sps:$4 sm:$0xff]  }
 0x27f   :  { %4442 = vmatprep.subr.bf16.mxu1 %v8453_v62  ;;  %4483 = vmatprep.subr.bf16.mxu0 %v8456_v63  ;;  %v8541_v62 = vld [vmem:[#allocation6 + $0x2e0] ss:$84 sps:$4 sm:$0xff]   ;;  %v8544_v63 = vld [vmem:[#allocation6 + $0x2e8] ss:$84 sps:$4 sm:$0xff]  }
 0x282   :  { %4443 = vmatpush1.bf16.msra.mxu1 %v8451_v0  ;;  %4484 = vmatpush1.bf16.msra.mxu0 %v8454_v1  ;;  %v8549_v0 = vld [vmem:[#allocation6 + $0x23c] ss:$84 sps:$4 sm:$0xff]   ;;  %v8552_v1 = vld [vmem:[#allocation6 + $0x244] ss:$84 sps:$4 sm:$0xff]  }
 0x283   :  { %4444 = vmatprep.subr.bf16.mxu1 %v8459_v2  ;;  %4485 = vmatprep.subr.bf16.mxu0 %v8462_v3  ;;  %v8547_v2 = vld [vmem:[#allocation6 + $0x238] ss:$84 sps:$4 sm:$0xff]   ;;  %v8555_v3 = vld [vmem:[#allocation6 + $0x194] ss:$84 sps:$4 sm:$0xff]  }
 0x286   :  { %4445 = vmatpush1.bf16.msra.mxu1 %v8457_v4  ;;  %4486 = vmatpush1.bf16.msra.mxu0 %v8460_v5  ;;  %v8558_v4 = vld [vmem:[#allocation6 + $0x19c] ss:$84 sps:$4 sm:$0xff]  }
 0x287   :  { %4446 = vmatprep.subr.bf16.mxu1 %v8465_v6  ;;  %4487 = vmatprep.subr.bf16.mxu0 %v8468_v7  ;;  %v8553_v5 = vld [vmem:[#allocation6 + $0x190] ss:$84 sps:$4 sm:$0xff]   ;;  %v8556_v6 = vld [vmem:[#allocation6 + $0x198] ss:$84 sps:$4 sm:$0xff]  }
 0x288   :  { %v8561_v7 = vld [vmem:[#allocation6 + $0xec] ss:$84 sps:$4 sm:$0xff]  }
 0x28a   :  { %4447 = vmatpush1.bf16.msra.mxu1 %v8463_v8  ;;  %4488 = vmatpush1.bf16.msra.mxu0 %v8466_v9  ;;  %v8564_v8 = vld [vmem:[#allocation6 + $0xf4] ss:$84 sps:$4 sm:$0xff]  }
 0x28b   :  { %4448 = vmatprep.subr.bf16.mxu1 %v8471_v10  ;;  %4489 = vmatprep.subr.bf16.mxu0 %v8474_v11  ;;  %v8559_v9 = vld [vmem:[#allocation6 + $0xe8] ss:$84 sps:$4 sm:$0xff]   ;;  %v8562_v10 = vld [vmem:[#allocation6 + $0xf0] ss:$84 sps:$4 sm:$0xff]  }
 0x28c   :  { %v8567_v11 = vld [vmem:[#allocation6 + $0x44] ss:$84 sps:$4 sm:$0xff]  }
 0x28e   :  { %4449 = vmatpush1.bf16.msra.mxu1 %v8469_v12  ;;  %4490 = vmatpush1.bf16.msra.mxu0 %v8472_v13  ;;  %v8570_v12 = vld [vmem:[#allocation6 + $0x4c] ss:$84 sps:$4 sm:$0xff]  }
 0x28f   :  { %4516 = vmatprep.subr.bf16.mxu1 %v8477_v14  ;;  %4557 = vmatprep.subr.bf16.mxu0 %v8480_v15  ;;  %v8565_v13 = vld [vmem:[#allocation6 + $0x40] ss:$84 sps:$4 sm:$0xff]   ;;  %v8568_v14 = vld [vmem:[#allocation6 + $0x48] ss:$84 sps:$4 sm:$0xff]  }
 0x290   :  { %v8579_v15 = vld [vmem:[#allocation9 + $0x78] sm:$0xff]  }
 0x291   :  { %4467 = vmatmul.mubr.bf16.vlgmr.msra.gmra.mxu1 %v9079_v18  ;;  %4508 = vmatmul.mubr.bf16.vlgmr.msra.gmra.mxu0 %v9079_v18 }
 0x292   :  { %4517 = vmatpush1.bf16.msra.mxu1 %v8475_v16  ;;  %4558 = vmatpush1.bf16.msra.mxu0 %v8478_v17  ;;  %v8571_v16 = vld [vmem:[#allocation6 + $0x4e8] ss:$84 sps:$4 sm:$0xff]   ;;  %v8938_v17 = vmov 0.0  }
 0x293   :  { %4518 = vmatprep.subr.bf16.mxu1 %v8483_v19  ;;  %4559 = vmatprep.subr.bf16.mxu0 %v8486_v20  ;;  %v8581_v19 = vld [vmem:[#allocation9 + $0x38] sm:$0xff]   ;;  %v8583_v20 = vld [vmem:[#allocation9 + $0x70] sm:$0xff]  }
 0x294   :  { %4548 = vmatprep.mubr.bf16.mxu1 %v8937_v34  ;;  %4589 = vmatprep.mubr.bf16.mxu0 %v8937_v34 }
 0x296   :  { %4519 = vmatpush1.bf16.msra.mxu1 %v8481_v21  ;;  %4560 = vmatpush1.bf16.msra.mxu0 %v8484_v22  ;;  %v8572_v21 = vld [vmem:[#allocation6 + $0x440] ss:$84 sps:$4 sm:$0xff]   ;;  %v8585_v22 = vld [vmem:[#allocation9 + $0x30] sm:$0xff]  }
 0x297   :  { %4520 = vmatprep.subr.bf16.mxu1 %v8489_v23  ;;  %4561 = vmatprep.subr.bf16.mxu0 %v8492_v24  ;;  %v8587_v23 = vld [vmem:[#allocation9 + $0x68] sm:$0xff]   ;;  %v8573_v24 = vld [vmem:[#allocation6 + $0x398] ss:$84 sps:$4 sm:$0xff]  }
 0x29a   :  { %4521 = vmatpush1.bf16.msra.mxu1 %v8487_v25  ;;  %4562 = vmatpush1.bf16.msra.mxu0 %v8490_v26  ;;  %v8589_v25 = vld [vmem:[#allocation9 + $0x28] sm:$0xff]   ;;  %v8591_v26 = vld [vmem:[#allocation9 + $0x60] sm:$0xff]  }
 0x29b   :  { %4522 = vmatprep.subr.bf16.mxu1 %v8495_v27  ;;  %4563 = vmatprep.subr.bf16.mxu0 %v8498_v28  ;;  %v8574_v27 = vld [vmem:[#allocation6 + $0x2f0] ss:$84 sps:$4 sm:$0xff]   ;;  %v8593_v28 = vld [vmem:[#allocation9 + $0x20] sm:$0xff]  }
 0x29e   :  { %4523 = vmatpush1.bf16.msra.mxu1 %v8493_v29  ;;  %4564 = vmatpush1.bf16.msra.mxu0 %v8496_v30  ;;  %v8595_v29 = vld [vmem:[#allocation9 + $0x58] sm:$0xff]   ;;  %v8575_v30 = vld [vmem:[#allocation6 + $0x248] ss:$84 sps:$4 sm:$0xff]  }
 0x29f   :  { %4524 = vmatprep.subr.bf16.mxu1 %v8501_v31  ;;  %4565 = vmatprep.subr.bf16.mxu0 %v8504_v32  ;;  %v8597_v31 = vld [vmem:[#allocation9 + $0x18] sm:$0xff]   ;;  %v8599_v32 = vld [vmem:[#allocation9 + $0x50] sm:$0xff]  }
 0x2a2   :  { %4525 = vmatpush1.bf16.msra.mxu1 %v8499_v33  ;;  %4566 = vmatpush1.bf16.msra.mxu0 %v8502_v35  ;;  %v8576_v33 = vld [vmem:[#allocation6 + $0x1a0] ss:$84 sps:$4 sm:$0xff]   ;;  %v8601_v35 = vld [vmem:[#allocation9 + $0x10] sm:$0xff]  }
 0x2a3   :  { %4526 = vmatprep.subr.bf16.mxu1 %v8507_v36  ;;  %4567 = vmatprep.subr.bf16.mxu0 %v8510_v37  ;;  %v8603_v36 = vld [vmem:[#allocation9 + $0x48] sm:$0xff]   ;;  %v8577_v37 = vld [vmem:[#allocation6 + $0xf8] ss:$84 sps:$4 sm:$0xff]  }
 0x2a6   :  { %4527 = vmatpush1.bf16.msra.mxu1 %v8505_v38  ;;  %4568 = vmatpush1.bf16.msra.mxu0 %v8508_v39  ;;  %v8605_v38 = vld [vmem:[#allocation9 + $0x8] sm:$0xff]   ;;  %v8607_v39 = vld [vmem:[#allocation9 + $0x40] sm:$0xff]  }
 0x2a7   :  { %4528 = vmatprep.subr.bf16.mxu1 %v8513_v40  ;;  %4569 = vmatprep.subr.bf16.mxu0 %v8516_v41  ;;  %v8578_v40 = vld [vmem:[#allocation6 + $0x50] ss:$84 sps:$4 sm:$0xff]  }
 0x2a8   :  { %v8580_v41 = vld [vmem:[#allocation9 + $0xf8] sm:$0xff]  }
 0x2aa   :  { %4529 = vmatpush1.bf16.msra.mxu1 %v8511_v42  ;;  %4570 = vmatpush1.bf16.msra.mxu0 %v8514_v43  ;;  %v8609_v42 = vld [vmem:[#allocation9] sm:$0xff]   ;;  %v8611_v43 = vld [vmem:[#allocation9 + $0x178] sm:$0xff]  }
 0x2ab   :  { %4530 = vmatprep.subr.bf16.mxu1 %v8519_v44  ;;  %4571 = vmatprep.subr.bf16.mxu0 %v8522_v45  ;;  %v8582_v44 = vld [vmem:[#allocation9 + $0xb8] sm:$0xff]   ;;  %v8584_v45 = vld [vmem:[#allocation9 + $0xf0] sm:$0xff]  }
 0x2ae   :  { %4531 = vmatpush1.bf16.msra.mxu1 %v8517_v46  ;;  %4572 = vmatpush1.bf16.msra.mxu0 %v8520_v47  ;;  %v8586_v46 = vld [vmem:[#allocation9 + $0xb0] sm:$0xff]   ;;  %v8588_v47 = vld [vmem:[#allocation9 + $0xe8] sm:$0xff]  }
 0x2af   :  { %4598 = vmatprep.subr.bf16.mxu1 %v8525_v48  ;;  %4639 = vmatprep.subr.bf16.mxu0 %v8528_v49  ;;  %v8590_v48 = vld [vmem:[#allocation9 + $0xa8] sm:$0xff]   ;;  %v8592_v49 = vld [vmem:[#allocation9 + $0xe0] sm:$0xff]  }
 0x2b1   :  { %4549 = vmatmul.mubr.bf16.vlgmr.msra.gmra.mxu1 %v9079_v18  ;;  %4590 = vmatmul.mubr.bf16.vlgmr.msra.gmra.mxu0 %v9079_v18 }
 0x2b2   :  { %4599 = vmatpush1.bf16.msra.mxu1 %v8523_v50  ;;  %4640 = vmatpush1.bf16.msra.mxu0 %v8526_v51  ;;  %v8594_v50 = vld [vmem:[#allocation9 + $0xa0] sm:$0xff]   ;;  %v8596_v51 = vld [vmem:[#allocation9 + $0xd8] sm:$0xff]  }
 0x2b3   :  { %4600 = vmatprep.subr.bf16.mxu1 %v8531_v52  ;;  %4641 = vmatprep.subr.bf16.mxu0 %v8534_v53  ;;  %v8598_v52 = vld [vmem:[#allocation9 + $0x98] sm:$0xff]   ;;  %v8600_v53 = vld [vmem:[#allocation9 + $0xd0] sm:$0xff]  }
 0x2b4   :  { %4630 = vmatprep.mubr.bf16.mxu1 %v8937_v34  ;;  %4671 = vmatprep.mubr.bf16.mxu0 %v8937_v34  ;;  %v8550_v34 = vld [vmem:[#allocation6 + $0x240] ss:$84 sps:$4 sm:$0xff]  }
 0x2b6   :  { %4601 = vmatpush1.bf16.msra.mxu1 %v8529_v54  ;;  %4642 = vmatpush1.bf16.msra.mxu0 %v8532_v55  ;;  %v8602_v54 = vld [vmem:[#allocation9 + $0x90] sm:$0xff]   ;;  %v3317_v55 = vlaneseq }
 0x2b7   :  { %4602 = vmatprep.subr.bf16.mxu1 %v8537_v56  ;;  %4643 = vmatprep.subr.bf16.mxu0 %v8540_v57  ;;  %v8606_v57 = vld [vmem:[#allocation9 + $0x88] sm:$0xff]  }
 0x2b8   :  { %v9110_v56 = vshrl.u32 %v3317_v55, 7  ;;  %v8636_v55 = vld [vmem:[#allocation9 + $0x1c8] sm:$0xff]  }
 0x2ba   :  { %4603 = vmatpush1.bf16.msra.mxu1 %v8535_v58  ;;  %4644 = vmatpush1.bf16.msra.mxu0 %v8538_v59  ;;  %v8608_v58 = vld [vmem:[#allocation9 + $0xc0] sm:$0xff]   ;;  %v9113_v59 = vsub.s32 0, %v9110_v56 }
 0x2bb   :  { %4604 = vmatprep.subr.bf16.mxu1 %v8543_v60  ;;  %4645 = vmatprep.subr.bf16.mxu0 %v8546_v61  ;;  %v9116_v60 = vsub.s32 2, %v9110_v56  ;;  %v8610_v61 = vld [vmem:[#allocation9 + $0x80] sm:$0xff]  }
 0x2be   :  { %4605 = vmatpush1.bf16.msra.mxu1 %v8541_v62  ;;  %4646 = vmatpush1.bf16.msra.mxu0 %v8544_v63  ;;  %v9118_v62 = vld [vmem:[#allocation7] sm:$0xff]  ;;  %v8612_v63 = vld [vmem:[#allocation9 + $0x1f8] sm:$0xff]  }
 0x2bf   :  { %4606 = vmatprep.subr.bf16.mxu1 %v8549_v0  ;;  %4647 = vmatprep.subr.bf16.mxu0 %v8552_v1  ;;  %v9121_v0 = vsub.s32 1, %v9110_v56  ;;  %v9124_v1 = vsub.s32 3, %v9110_v56 }
 0x2c2   :  { %4607 = vmatpush1.bf16.msra.mxu1 %v8547_v2  ;;  %4648 = vmatpush1.bf16.msra.mxu0 %v8550_v34  ;;  %v3320_v2 = vrot.slane %v9118_v62, %v9113_v59  ;;  %v3328_v34 = vrot.slane %v9118_v62, %v9116_v60 }
 0x2c3   :  { %4608 = vmatprep.subr.bf16.mxu1 %v8555_v3  ;;  %4649 = vmatprep.subr.bf16.mxu0 %v8558_v4  ;;  %v3324_v3 = vrot.slane %v9118_v62, %v9121_v0  ;;  %v3332_v4 = vrot.slane %v9118_v62, %v9124_v1 }
 0x2c6   :  { %4609 = vmatpush1.bf16.msra.mxu1 %v8553_v5  ;;  %4650 = vmatpush1.bf16.msra.mxu0 %v8556_v6 }
 0x2c7   :  { %4610 = vmatprep.subr.bf16.mxu1 %v8561_v7  ;;  %4651 = vmatprep.subr.bf16.mxu0 %v8564_v8 }
 0x2ca   :  { %4611 = vmatpush1.bf16.msra.mxu1 %v8559_v9  ;;  %4652 = vmatpush1.bf16.msra.mxu0 %v8562_v10 }
 0x2cb   :  { %4612 = vmatprep.subr.bf16.mxu1 %v8567_v11  ;;  %4653 = vmatprep.subr.bf16.mxu0 %v8570_v12 }
 0x2ce   :  { %4613 = vmatpush1.bf16.msra.mxu1 %v8565_v13  ;;  %4654 = vmatpush1.bf16.msra.mxu0 %v8568_v14 }
 0x2cf   :  { %7950 = vmatprep.subr.bf16.mxu1 %v8938_v17  ;;  %7712 = vmatprep.subr.bf16.mxu0 %v8579_v15 }
 0x2d1   :  { %4631 = vmatmul.mubr.bf16.vlgmr.msra.gmra.mxu1 %v9079_v18  ;;  %4672 = vmatmul.mubr.bf16.vlgmr.msra.gmra.mxu0 %v9079_v18 }
 0x2d2   :  { %7951 = vmatpush3.bf16.msra.mxu1 %v8571_v16  ;;  %7966 = vmatprep.mubr.msk.bf16.mxu1 %vm8939_vm0, %v8938_v17 }
 0x2d3   :  { %7952 = vmatprep.subr.bf16.mxu1 %v8938_v17  ;;  %7713 = vmatpush3.bf16.msra.mxu0 %v8581_v19 }
 0x2d4   :  { %7714 = vmatprep.subr.bf16.mxu0 %v8583_v20 }
 0x2d6   :  { %7953 = vmatpush3.bf16.msra.mxu1 %v8572_v21 }
 0x2d7   :  { %7954 = vmatprep.subr.bf16.mxu1 %v8938_v17  ;;  %7715 = vmatpush3.bf16.msra.mxu0 %v8585_v22 }
 0x2d8   :  { %7716 = vmatprep.subr.bf16.mxu0 %v8587_v23 }
 0x2da   :  { %7955 = vmatpush3.bf16.msra.mxu1 %v8573_v24 }
 0x2db   :  { %7956 = vmatprep.subr.bf16.mxu1 %v8938_v17  ;;  %7717 = vmatpush3.bf16.msra.mxu0 %v8589_v25  ;;  %v8613_v25 = vld [vmem:[#allocation9 + $0x138] sm:$0xff]  }
 0x2dc   :  { %7718 = vmatprep.subr.bf16.mxu0 %v8591_v26  ;;  %v8614_v26 = vld [vmem:[#allocation9 + $0x1b8] sm:$0xff]  }
 0x2de   :  { %7957 = vmatpush3.bf16.msra.mxu1 %v8574_v27 }
 0x2df   :  { %7958 = vmatprep.subr.bf16.mxu1 %v8938_v17  ;;  %7719 = vmatpush3.bf16.msra.mxu0 %v8593_v28 }
 0x2e0   :  { %7720 = vmatprep.subr.bf16.mxu0 %v8595_v29  ;;  %v8615_v29 = vld [vmem:[#allocation9 + $0x170] sm:$0xff]  }
 0x2e2   :  { %7959 = vmatpush3.bf16.msra.mxu1 %v8575_v30  ;;  %v8616_v30 = vld [vmem:[#allocation9 + $0x1f0] sm:$0xff]  }
 0x2e3   :  { %7960 = vmatprep.subr.bf16.mxu1 %v8938_v17  ;;  %7721 = vmatpush3.bf16.msra.mxu0 %v8597_v31  ;;  %v8617_v31 = vld [vmem:[#allocation9 + $0x130] sm:$0xff]  }
 0x2e4   :  { %7722 = vmatprep.subr.bf16.mxu0 %v8599_v32  ;;  %v8618_v32 = vld [vmem:[#allocation9 + $0x1b0] sm:$0xff]  }
 0x2e6   :  { %7961 = vmatpush3.bf16.msra.mxu1 %v8576_v33  ;;  %v8619_v33 = vld [vmem:[#allocation9 + $0x168] sm:$0xff]  }
 0x2e7   :  { %7962 = vmatprep.subr.bf16.mxu1 %v8938_v17  ;;  %7723 = vmatpush3.bf16.msra.mxu0 %v8601_v35  ;;  %v8620_v35 = vld [vmem:[#allocation9 + $0x1e8] sm:$0xff]  }
 0x2e8   :  { %7724 = vmatprep.subr.bf16.mxu0 %v8603_v36  ;;  %v8621_v36 = vld [vmem:[#allocation9 + $0x128] sm:$0xff]  }
 0x2ea   :  { %7963 = vmatpush3.bf16.msra.mxu1 %v8577_v37  ;;  %v8622_v37 = vld [vmem:[#allocation9 + $0x1a8] sm:$0xff]  }
 0x2eb   :  { %7964 = vmatprep.subr.bf16.mxu1 %v8938_v17  ;;  %7725 = vmatpush3.bf16.msra.mxu0 %v8605_v38  ;;  %v8623_v38 = vld [vmem:[#allocation9 + $0x160] sm:$0xff]  }
 0x2ec   :  { %7726 = vmatprep.subr.bf16.mxu0 %v8607_v39  ;;  %v8624_v39 = vld [vmem:[#allocation9 + $0x1e0] sm:$0xff]  }
 0x2ee   :  { %7965 = vmatpush3.bf16.msra.mxu1 %v8578_v40  ;;  %v8625_v40 = vld [vmem:[#allocation9 + $0x120] sm:$0xff]  }
 0x2ef   :  { %7734 = vmatprep.subr.bf16.mxu1 %v8580_v41  ;;  %7727 = vmatpush3.bf16.msra.mxu0 %v8609_v42  ;;  %v8626_v41 = vld [vmem:[#allocation9 + $0x1a0] sm:$0xff]   ;;  %v8627_v42 = vld [vmem:[#allocation9 + $0x158] sm:$0xff]  }
 0x2f0   :  { %7756 = vmatprep.subr.bf16.mxu0 %v8611_v43  ;;  %v8628_v43 = vld [vmem:[#allocation9 + $0x1d8] sm:$0xff]  }
 0x2f1   :  { %7967 = vmatmul.mubr.bf16.vlgmr.msra.gmra.mxu1 %v9079_v18  ;;  %v8604_v18 = vld [vmem:[#allocation9 + $0xc8] sm:$0xff]  }
 0x2f2   :  { %7735 = vmatpush3.bf16.msra.mxu1 %v8582_v44  ;;  %v8629_v44 = vld [vmem:[#allocation9 + $0x118] sm:$0xff]  }
 0x2f3   :  { %7736 = vmatprep.subr.bf16.mxu1 %v8584_v45  ;;  %v8630_v45 = vld [vmem:[#allocation9 + $0x198] sm:$0xff]  }
 0x2f6   :  { %7737 = vmatpush3.bf16.msra.mxu1 %v8586_v46  ;;  %v8631_v46 = vld [vmem:[#allocation9 + $0x150] sm:$0xff]  }
 0x2f7   :  { %7738 = vmatprep.subr.bf16.mxu1 %v8588_v47  ;;  %v8632_v47 = vld [vmem:[#allocation9 + $0x1d0] sm:$0xff]  }
 0x2fa   :  { %7739 = vmatpush3.bf16.msra.mxu1 %v8590_v48  ;;  %v9135_v48 = vsub.s32 4, %v9110_v56 }
 0x2fb   :  { %7740 = vmatprep.subr.bf16.mxu1 %v8592_v49  ;;  %v3343_v49 = vsub.s32 6, %v9110_v56 }
 0x2fe   :  { %7741 = vmatpush3.bf16.msra.mxu1 %v8594_v50  ;;  %v8633_v50 = vld [vmem:[#allocation9 + $0x110] sm:$0xff]  }
 0x2ff   :  { %7742 = vmatprep.subr.bf16.mxu1 %v8596_v51  ;;  %v8634_v51 = vld [vmem:[#allocation9 + $0x190] sm:$0xff]  }
 0x302   :  { %7743 = vmatpush3.bf16.msra.mxu1 %v8598_v52  ;;  %v3339_v52 = vsub.s32 5, %v9110_v56 }
 0x303   :  { %7744 = vmatprep.subr.bf16.mxu1 %v8600_v53  ;;  %v3347_v53 = vsub.s32 7, %v9110_v56  ;;  %v8706_v56 = vld [vmem:[#allocation9 + $0x380] sm:$0xff]  }
 0x306   :  { %7745 = vmatpush3.bf16.msra.mxu1 %v8602_v54  ;;  %v8635_v54 = vld [vmem:[#allocation9 + $0x148] sm:$0xff]  }
 0x307   :  { %7746 = vmatprep.subr.bf16.mxu1 %v8604_v18  ;;  %v3336_v18 = vrot.slane %v9118_v62, %v9135_v48 }
 0x30a   :  { %7747 = vmatpush3.bf16.msra.mxu1 %v8606_v57  ;;  %v3344_v57 = vrot.slane %v9118_v62, %v3343_v49 }
 0x30b   :  { %7748 = vmatprep.subr.bf16.mxu1 %v8608_v58  ;;  %v3340_v58 = vrot.slane %v9118_v62, %v3339_v52 }
 0x30e   :  { %7749 = vmatpush3.bf16.msra.mxu1 %v8610_v61  ;;  %v3348_v61 = vrot.slane %v9118_v62, %v3347_v53 }
 0x30f   :  { %7778 = vmatprep.subr.bf16.mxu1 %v8612_v63  ;;  %v8637_v63 = vld [vmem:[#allocation9 + $0x108] sm:$0xff]  }
 0x311   :  { %v4304_v5 = vpop.f32.mrf.mxu1  ;;  %v4345_v6 = vpop.f32.mrf.mxu0 }
 0x312   :  { %v4305_v7 = vadd.f32 %v4304_v5, %v3320_v2  ;;  %v4346_v8 = vadd.f32 %v4345_v6, %v3328_v34  ;;  %v8638_v2 = vld [vmem:[#allocation9 + $0x188] sm:$0xff]   ;;  %v8640_v5 = vld [vmem:[#allocation9 + $0x1c0] sm:$0xff]  }
 0x313   :  { %v4306_v9 = vpop.f32.mrf.mxu1  ;;  %v4347_v10 = vpop.f32.mrf.mxu0 }
 0x314   :  { %v4307_v11 = vadd.f32 %v4306_v9, %v3324_v3  ;;  %v4348_v12 = vadd.f32 %v4347_v10, %v3332_v4  ;;  %v4720_v13 = vmax.f32 %v4305_v7, 0.0  ;;  %v4722_v14 = vmax.f32 %v4346_v8, 0.0  ;;  %v8639_v4 = vld [vmem:[#allocation9 + $0x140] sm:$0xff]  }
 0x315   :  { %v4308_v15 = vpop.f32.mrf.mxu1  ;;  %v4349_v16 = vpop.f32.mrf.mxu0 }
 0x316   :  { %v4721_v19 = vmax.f32 %v4307_v11, 0.0  ;;  %v4723_v20 = vmax.f32 %v4348_v12, 0.0  ;;  %v4741_v27 = vpack.c.bf16 %v4720_v13, %v4720_v13  ;;  %v4743_v28 = vpack.c.bf16 %v4722_v14, %v4722_v14  ;;  %v8641_v12 = vld [vmem:[#allocation9 + $0x100] sm:$0xff]  }
 0x317   :  { %v4309_v21 = vpop.f32.mrf.mxu1  ;;  %v4350_v22 = vpop.f32.mrf.mxu0  ;;  %v8642_v13 = vld [vmem:[#allocation9 + $0x180] sm:$0xff]  }
 0x318   :  { %v4742_v23 = vpack.c.bf16 %v4721_v19, %v4721_v19  ;;  %v4744_v24 = vpack.c.bf16 %v4723_v20, %v4723_v20  ;;  %v8643_v19 = vld [vmem:[#allocation9 + $0x278] sm:$0xff]  }
 0x319   :  { %v8644_v20 = vld [vmem:[#allocation9 + $0x2f8] sm:$0xff]  }
 0x31a   :  { %6145 = vmatprep.mubr.bf16.mxu0 %v4742_v23  ;;  %6185 = vmatprep.mubr.bf16.mxu1 %v4744_v24 }
 0x31b   :  { %6146 = vmatmul.mubr.bf16.vlgmr.msra.gmra.mxu0 %v4741_v27  ;;  %6186 = vmatmul.mubr.bf16.vlgmr.msra.gmra.mxu1 %v4743_v28  ;;  %v8645_v27 = vld [vmem:[#allocation9 + $0x238] sm:$0xff]  }
 0x31c   :  { %7757 = vmatpush3.bf16.msra.mxu0 %v8613_v25  ;;  %7779 = vmatpush3.bf16.msra.mxu1 %v8614_v26  ;;  %v8646_v28 = vld [vmem:[#allocation9 + $0x2b8] sm:$0xff]  }
 0x31d   :  { %7758 = vmatprep.subr.bf16.mxu0 %v8615_v29  ;;  %7780 = vmatprep.subr.bf16.mxu1 %v8616_v30 }
 0x320   :  { %7759 = vmatpush3.bf16.msra.mxu0 %v8617_v31  ;;  %7781 = vmatpush3.bf16.msra.mxu1 %v8618_v32  ;;  %v8647_v31 = vld [vmem:[#allocation9 + $0x270] sm:$0xff]  }
 0x321   :  { %7760 = vmatprep.subr.bf16.mxu0 %v8619_v33  ;;  %7782 = vmatprep.subr.bf16.mxu1 %v8620_v35  ;;  %v8648_v32 = vld [vmem:[#allocation9 + $0x2f0] sm:$0xff]  }
 0x322   :  { %v8649_v33 = vld [vmem:[#allocation9 + $0x230] sm:$0xff]  }
 0x323   :  { %v8650_v35 = vld [vmem:[#allocation9 + $0x2b0] sm:$0xff]  }
 0x324   :  { %7761 = vmatpush3.bf16.msra.mxu0 %v8621_v36  ;;  %7783 = vmatpush3.bf16.msra.mxu1 %v8622_v37  ;;  %v8651_v36 = vld [vmem:[#allocation9 + $0x268] sm:$0xff]  }
 0x325   :  { %7762 = vmatprep.subr.bf16.mxu0 %v8623_v38  ;;  %7784 = vmatprep.subr.bf16.mxu1 %v8624_v39  ;;  %v8652_v37 = vld [vmem:[#allocation9 + $0x2e8] sm:$0xff]  }
 0x326   :  { %v8653_v38 = vld [vmem:[#allocation9 + $0x228] sm:$0xff]  }
 0x327   :  { %v8654_v39 = vld [vmem:[#allocation9 + $0x2a8] sm:$0xff]  }
 0x328   :  { %7763 = vmatpush3.bf16.msra.mxu0 %v8625_v40  ;;  %7785 = vmatpush3.bf16.msra.mxu1 %v8626_v41  ;;  %v8655_v40 = vld [vmem:[#allocation9 + $0x260] sm:$0xff]  }
 0x329   :  { %7764 = vmatprep.subr.bf16.mxu0 %v8627_v42  ;;  %7786 = vmatprep.subr.bf16.mxu1 %v8628_v43  ;;  %v8656_v41 = vld [vmem:[#allocation9 + $0x2e0] sm:$0xff]  }
 0x32a   :  { %v8657_v42 = vld [vmem:[#allocation9 + $0x220] sm:$0xff]  }
 0x32b   :  { %v8658_v43 = vld [vmem:[#allocation9 + $0x2a0] sm:$0xff]  }
 0x32c   :  { %7765 = vmatpush3.bf16.msra.mxu0 %v8629_v44  ;;  %7787 = vmatpush3.bf16.msra.mxu1 %v8630_v45  ;;  %v8659_v44 = vld [vmem:[#allocation9 + $0x258] sm:$0xff]  }
 0x32d   :  { %7766 = vmatprep.subr.bf16.mxu0 %v8631_v46  ;;  %7788 = vmatprep.subr.bf16.mxu1 %v8632_v47  ;;  %v8660_v45 = vld [vmem:[#allocation9 + $0x2d8] sm:$0xff]  }
 0x32e   :  { %v8661_v46 = vld [vmem:[#allocation9 + $0x218] sm:$0xff]  }
 0x32f   :  { %v8662_v47 = vld [vmem:[#allocation9 + $0x298] sm:$0xff]  }
 0x330   :  { %7767 = vmatpush3.bf16.msra.mxu0 %v8633_v50  ;;  %7789 = vmatpush3.bf16.msra.mxu1 %v8634_v51  ;;  %v8663_v50 = vld [vmem:[#allocation9 + $0x250] sm:$0xff]  }
 0x331   :  { %v4386_v34 = vpop.f32.mrf.mxu1  ;;  %v4427_v3 = vpop.f32.mrf.mxu0  ;;  %7768 = vmatprep.subr.bf16.mxu0 %v8635_v54  ;;  %7790 = vmatprep.subr.bf16.mxu1 %v8636_v55  ;;  %v8664_v51 = vld [vmem:[#allocation9 + $0x2d0] sm:$0xff]  }
 0x332   :  { %v4387_v6 = vadd.f32 %v4386_v34, %v3336_v18  ;;  %v4428_v7 = vadd.f32 %v4427_v3, %v3344_v57  ;;  %v9151_v54 = vld [vmem:[#allocation7 + $0x8] sm:$0xff]  ;;  %v8667_v57 = vld [vmem:[#allocation9 + $0x248] sm:$0xff]  }
 0x333   :  { %v4388_v8 = vpop.f32.mrf.mxu1  ;;  %v4429_v9 = vpop.f32.mrf.mxu0  ;;  %v8665_v55 = vld [vmem:[#allocation9 + $0x210] sm:$0xff]   ;;  %v3364_v34 = vrot.slane %v9151_v54, %v9124_v1  ;;  %v8669_v3 = vld [vmem:[#allocation9 + $0x208] sm:$0xff]  }
 0x334   :  { %v4389_v10 = vadd.f32 %v4388_v8, %v3340_v58  ;;  %v4430_v11 = vadd.f32 %v4429_v9, %v3348_v61  ;;  %7769 = vmatpush3.bf16.msra.mxu0 %v8637_v63  ;;  %7791 = vmatpush3.bf16.msra.mxu1 %v8638_v2  ;;  %v4724_v14 = vmax.f32 %v4387_v6, 0.0  ;;  %v4726_v62 = vmax.f32 %v4428_v7, 0.0  ;;  %v8666_v18 = vld [vmem:[#allocation9 + $0x290] sm:$0xff]   ;;  %v8668_v58 = vld [vmem:[#allocation9 + $0x2c8] sm:$0xff]   ;;  %v8671_v7 = vld [vmem:[#allocation9 + $0x240] sm:$0xff]  }
 0x335   :  { %v4390_v15 = vpop.f32.mrf.mxu1  ;;  %v4431_v16 = vpop.f32.mrf.mxu0  ;;  %7770 = vmatprep.subr.bf16.mxu0 %v8639_v4  ;;  %7792 = vmatprep.subr.bf16.mxu1 %v8640_v5  ;;  %v3352_v61 = vrot.slane %v9151_v54, %v9113_v59  ;;  %v3360_v63 = vrot.slane %v9151_v54, %v9116_v60  ;;  %v3356_v2 = vrot.slane %v9151_v54, %v9121_v0  ;;  %v8670_v4 = vld [vmem:[#allocation9 + $0x288] sm:$0xff]   ;;  %v8672_v8 = vld [vmem:[#allocation9 + $0x2c0] sm:$0xff]  }
 0x336   :  { %v4725_v21 = vmax.f32 %v4389_v10, 0.0  ;;  %v4727_v22 = vmax.f32 %v4430_v11, 0.0  ;;  %v4745_v29 = vpack.c.bf16 %v4724_v14, %v4724_v14  ;;  %v4747_v30 = vpack.c.bf16 %v4726_v62, %v4726_v62  ;;  %v8673_v62 = vld [vmem:[#allocation9 + $0x200] sm:$0xff]  }
 0x337   :  { %v4391_v23 = vpop.f32.mrf.mxu1  ;;  %v4432_v24 = vpop.f32.mrf.mxu0  ;;  %v8674_v15 = vld [vmem:[#allocation9 + $0x280] sm:$0xff]  }
 0x338   :  { %v4746_v25 = vpack.c.bf16 %v4725_v21, %v4725_v21  ;;  %v4748_v26 = vpack.c.bf16 %v4727_v22, %v4727_v22  ;;  %7771 = vmatpush3.bf16.msra.mxu0 %v8641_v12  ;;  %7793 = vmatpush3.bf16.msra.mxu1 %v8642_v13  ;;  %v8675_v22 = vld [vmem:[#allocation9 + $0x378] sm:$0xff]  }
 0x339   :  { %7800 = vmatprep.subr.bf16.mxu0 %v8643_v19  ;;  %7822 = vmatprep.subr.bf16.mxu1 %v8644_v20  ;;  %v8676_v23 = vld [vmem:[#allocation9 + $0x3f8] sm:$0xff]  }
 0x33a   :  { %6225 = vmatprep.mubr.bf16.mxu0 %v4746_v25  ;;  %6265 = vmatprep.mubr.bf16.mxu1 %v4748_v26 }
 0x33b   :  { %6226 = vmatmul.mubr.bf16.vlgmr.msra.gmra.mxu0 %v4745_v29  ;;  %6266 = vmatmul.mubr.bf16.vlgmr.msra.gmra.mxu1 %v4747_v30  ;;  %v8677_v30 = vld [vmem:[#allocation9 + $0x338] sm:$0xff]  }
 0x33c   :  { %7801 = vmatpush3.bf16.msra.mxu0 %v8645_v27  ;;  %7823 = vmatpush3.bf16.msra.mxu1 %v8646_v28 }
 0x33d   :  { %7802 = vmatprep.subr.bf16.mxu0 %v8647_v31  ;;  %7824 = vmatprep.subr.bf16.mxu1 %v8648_v32  ;;  %v8678_v31 = vld [vmem:[#allocation9 + $0x3b8] sm:$0xff]  }
 0x340   :  { %7803 = vmatpush3.bf16.msra.mxu0 %v8649_v33  ;;  %7825 = vmatpush3.bf16.msra.mxu1 %v8650_v35  ;;  %v8679_v35 = vld [vmem:[#allocation9 + $0x370] sm:$0xff]  }
 0x341   :  { %7804 = vmatprep.subr.bf16.mxu0 %v8651_v36  ;;  %7826 = vmatprep.subr.bf16.mxu1 %v8652_v37  ;;  %v8680_v36 = vld [vmem:[#allocation9 + $0x3f0] sm:$0xff]  }
 0x342   :  { %v8681_v37 = vld [vmem:[#allocation9 + $0x330] sm:$0xff]  }
 0x344   :  { %7805 = vmatpush3.bf16.msra.mxu0 %v8653_v38  ;;  %7827 = vmatpush3.bf16.msra.mxu1 %v8654_v39  ;;  %v8682_v38 = vld [vmem:[#allocation9 + $0x3b0] sm:$0xff]   ;;  %v8683_v39 = vld [vmem:[#allocation9 + $0x368] sm:$0xff]  }
 0x345   :  { %7806 = vmatprep.subr.bf16.mxu0 %v8655_v40  ;;  %7828 = vmatprep.subr.bf16.mxu1 %v8656_v41  ;;  %v8684_v40 = vld [vmem:[#allocation9 + $0x3e8] sm:$0xff]  }
 0x346   :  { %v8685_v41 = vld [vmem:[#allocation9 + $0x328] sm:$0xff]  }
 0x348   :  { %7807 = vmatpush3.bf16.msra.mxu0 %v8657_v42  ;;  %7829 = vmatpush3.bf16.msra.mxu1 %v8658_v43  ;;  %v8686_v42 = vld [vmem:[#allocation9 + $0x3a8] sm:$0xff]   ;;  %v8687_v43 = vld [vmem:[#allocation9 + $0x360] sm:$0xff]  }
 0x349   :  { %7808 = vmatprep.subr.bf16.mxu0 %v8659_v44  ;;  %7830 = vmatprep.subr.bf16.mxu1 %v8660_v45  ;;  %v8688_v44 = vld [vmem:[#allocation9 + $0x3e0] sm:$0xff]  }
 0x34a   :  { %v8689_v45 = vld [vmem:[#allocation9 + $0x320] sm:$0xff]  }
 0x34c   :  { %7809 = vmatpush3.bf16.msra.mxu0 %v8661_v46  ;;  %7831 = vmatpush3.bf16.msra.mxu1 %v8662_v47  ;;  %v8690_v46 = vld [vmem:[#allocation9 + $0x3a0] sm:$0xff]   ;;  %v8691_v47 = vld [vmem:[#allocation9 + $0x358] sm:$0xff]  }
 0x34d   :  { %7810 = vmatprep.subr.bf16.mxu0 %v8663_v50  ;;  %7832 = vmatprep.subr.bf16.mxu1 %v8664_v51  ;;  %v8692_v50 = vld [vmem:[#allocation9 + $0x3d8] sm:$0xff]  }
 0x34e   :  { %v8693_v51 = vld [vmem:[#allocation9 + $0x318] sm:$0xff]  }
 0x350   :  { %7811 = vmatpush3.bf16.msra.mxu0 %v8665_v55  ;;  %7833 = vmatpush3.bf16.msra.mxu1 %v8666_v18  ;;  %v8694_v55 = vld [vmem:[#allocation9 + $0x398] sm:$0xff]   ;;  %v8695_v18 = vld [vmem:[#allocation9 + $0x350] sm:$0xff]  }
 0x351   :  { %v4468_v5 = vpop.f32.mrf.mxu1  ;;  %v4509_v6 = vpop.f32.mrf.mxu0  ;;  %7812 = vmatprep.subr.bf16.mxu0 %v8667_v57  ;;  %7834 = vmatprep.subr.bf16.mxu1 %v8668_v58  ;;  %v8696_v57 = vld [vmem:[#allocation9 + $0x3d0] sm:$0xff]  }
 0x352   :  { %v4469_v9 = vadd.f32 %v4468_v5, %v3352_v61  ;;  %v4510_v10 = vadd.f32 %v4509_v6, %v3360_v63  ;;  %v8697_v58 = vld [vmem:[#allocation9 + $0x310] sm:$0xff]   ;;  %v8699_v63 = vld [vmem:[#allocation9 + $0x348] sm:$0xff]   ;;  %v3380_v5 = vrot.slane %v9151_v54, %v3347_v53 }
 0x353   :  { %v4470_v11 = vpop.f32.mrf.mxu1  ;;  %v4511_v12 = vpop.f32.mrf.mxu0  ;;  %v8698_v61 = vld [vmem:[#allocation9 + $0x390] sm:$0xff]   ;;  %v8701_v6 = vld [vmem:[#allocation9 + $0x308] sm:$0xff]  }
 0x354   :  { %v4471_v13 = vadd.f32 %v4470_v11, %v3356_v2  ;;  %v4512_v14 = vadd.f32 %v4511_v12, %v3364_v34  ;;  %7813 = vmatpush3.bf16.msra.mxu0 %v8669_v3  ;;  %7835 = vmatpush3.bf16.msra.mxu1 %v8670_v4  ;;  %v4728_v16 = vmax.f32 %v4469_v9, 0.0  ;;  %v4730_v19 = vmax.f32 %v4510_v10, 0.0  ;;  %v8700_v2 = vld [vmem:[#allocation9 + $0x3c8] sm:$0xff]   ;;  %v8703_v10 = vld [vmem:[#allocation9 + $0x340] sm:$0xff]  }
 0x355   :  { %v4472_v20 = vpop.f32.mrf.mxu1  ;;  %v4513_v21 = vpop.f32.mrf.mxu0  ;;  %7814 = vmatprep.subr.bf16.mxu0 %v8671_v7  ;;  %7836 = vmatprep.subr.bf16.mxu1 %v8672_v8  ;;  %v3368_v34 = vrot.slane %v9151_v54, %v9135_v48  ;;  %v3376_v3 = vrot.slane %v9151_v54, %v3343_v49  ;;  %v3372_v4 = vrot.slane %v9151_v54, %v3339_v52  ;;  %v8702_v7 = vld [vmem:[#allocation9 + $0x388] sm:$0xff]   ;;  %v8704_v11 = vld [vmem:[#allocation9 + $0x3c0] sm:$0xff]  }
 0x356   :  { %v4729_v24 = vmax.f32 %v4471_v13, 0.0  ;;  %v4731_v25 = vmax.f32 %v4512_v14, 0.0  ;;  %v4749_v32 = vpack.c.bf16 %v4728_v16, %v4728_v16  ;;  %v4751_v33 = vpack.c.bf16 %v4730_v19, %v4730_v19  ;;  %v8705_v52 = vld [vmem:[#allocation9 + $0x300] sm:$0xff]   ;;  %v8707_v20 = vld [vmem:[#allocation9 + $0x478] sm:$0xff]  }
 0x357   :  { %v4473_v26 = vpop.f32.mrf.mxu1  ;;  %v4514_v27 = vpop.f32.mrf.mxu0  ;;  %v8708_v21 = vld [vmem:[#allocation9 + $0x4f8] sm:$0xff]  }
 0x358   :  { %v4750_v28 = vpack.c.bf16 %v4729_v24, %v4729_v24  ;;  %v4752_v29 = vpack.c.bf16 %v4731_v25, %v4731_v25  ;;  %7815 = vmatpush3.bf16.msra.mxu0 %v8673_v62  ;;  %7837 = vmatpush3.bf16.msra.mxu1 %v8674_v15 }
 0x359   :  { %7844 = vmatprep.subr.bf16.mxu0 %v8675_v22  ;;  %7866 = vmatprep.subr.bf16.mxu1 %v8676_v23 }
 0x35a   :  { %6305 = vmatprep.mubr.bf16.mxu0 %v4750_v28  ;;  %6345 = vmatprep.mubr.bf16.mxu1 %v4752_v29  ;;  %v8709_v28 = vld [vmem:[#allocation9 + $0x438] sm:$0xff]  }
 0x35b   :  { %6306 = vmatmul.mubr.bf16.vlgmr.msra.gmra.mxu0 %v4749_v32  ;;  %6346 = vmatmul.mubr.bf16.vlgmr.msra.gmra.mxu1 %v4751_v33  ;;  %v8710_v29 = vld [vmem:[#allocation9 + $0x4b8] sm:$0xff]   ;;  %v8711_v32 = vld [vmem:[#allocation9 + $0x470] sm:$0xff]  }
 0x35c   :  { %7845 = vmatpush3.bf16.msra.mxu0 %v8677_v30  ;;  %7867 = vmatpush3.bf16.msra.mxu1 %v8678_v31  ;;  %v8712_v33 = vld [vmem:[#allocation9 + $0x4f0] sm:$0xff]  }
 0x35d   :  { %7846 = vmatprep.subr.bf16.mxu0 %v8679_v35  ;;  %7868 = vmatprep.subr.bf16.mxu1 %v8680_v36  ;;  %v8713_v35 = vld [vmem:[#allocation9 + $0x430] sm:$0xff]  }
 0x35e   :  { %v8714_v36 = vld [vmem:[#allocation9 + $0x4b0] sm:$0xff]  }
 0x360   :  { %7847 = vmatpush3.bf16.msra.mxu0 %v8681_v37  ;;  %7869 = vmatpush3.bf16.msra.mxu1 %v8682_v38  ;;  %v8715_v37 = vld [vmem:[#allocation9 + $0x468] sm:$0xff]  }
 0x361   :  { %7848 = vmatprep.subr.bf16.mxu0 %v8683_v39  ;;  %7870 = vmatprep.subr.bf16.mxu1 %v8684_v40  ;;  %v8716_v38 = vld [vmem:[#allocation9 + $0x4e8] sm:$0xff]  }
 0x362   :  { %v8717_v39 = vld [vmem:[#allocation9 + $0x428] sm:$0xff]  }
 0x363   :  { %v8718_v40 = vld [vmem:[#allocation9 + $0x4a8] sm:$0xff]  }
 0x364   :  { %7849 = vmatpush3.bf16.msra.mxu0 %v8685_v41  ;;  %7871 = vmatpush3.bf16.msra.mxu1 %v8686_v42  ;;  %v8719_v41 = vld [vmem:[#allocation9 + $0x460] sm:$0xff]  }
 0x365   :  { %7850 = vmatprep.subr.bf16.mxu0 %v8687_v43  ;;  %7872 = vmatprep.subr.bf16.mxu1 %v8688_v44  ;;  %v8720_v42 = vld [vmem:[#allocation9 + $0x4e0] sm:$0xff]  }
 0x366   :  { %v8721_v43 = vld [vmem:[#allocation9 + $0x420] sm:$0xff]  }
 0x367   :  { %v8722_v44 = vld [vmem:[#allocation9 + $0x4a0] sm:$0xff]  }
 0x368   :  { %7851 = vmatpush3.bf16.msra.mxu0 %v8689_v45  ;;  %7873 = vmatpush3.bf16.msra.mxu1 %v8690_v46  ;;  %v8723_v45 = vld [vmem:[#allocation9 + $0x458] sm:$0xff]  }
 0x369   :  { %7852 = vmatprep.subr.bf16.mxu0 %v8691_v47  ;;  %7874 = vmatprep.subr.bf16.mxu1 %v8692_v50  ;;  %v8724_v46 = vld [vmem:[#allocation9 + $0x4d8] sm:$0xff]  }
 0x36a   :  { %v8725_v47 = vld [vmem:[#allocation9 + $0x418] sm:$0xff]  }
 0x36b   :  { %v8726_v50 = vld [vmem:[#allocation9 + $0x498] sm:$0xff]  }
 0x36c   :  { %7853 = vmatpush3.bf16.msra.mxu0 %v8693_v51  ;;  %7875 = vmatpush3.bf16.msra.mxu1 %v8694_v55  ;;  %v8727_v51 = vld [vmem:[#allocation9 + $0x450] sm:$0xff]  }
 0x36d   :  { %7854 = vmatprep.subr.bf16.mxu0 %v8695_v18  ;;  %7876 = vmatprep.subr.bf16.mxu1 %v8696_v57  ;;  %v8728_v55 = vld [vmem:[#allocation9 + $0x4d0] sm:$0xff]   ;;  %v9172_v18 = vld [vmem:[#allocation7 + $0x10] sm:$0x1f] }
 0x36e   :  { %v8729_v57 = vld [vmem:[#allocation9 + $0x410] sm:$0xff]  }
 0x370   :  { %7855 = vmatpush3.bf16.msra.mxu0 %v8697_v58  ;;  %7877 = vmatpush3.bf16.msra.mxu1 %v8698_v61  ;;  %v8730_v58 = vld [vmem:[#allocation9 + $0x490] sm:$0xff]   ;;  %v8731_v61 = vld [vmem:[#allocation9 + $0x448] sm:$0xff]  }
 0x371   :  { %v4550_v8 = vpop.f32.mrf.mxu1  ;;  %v4591_v9 = vpop.f32.mrf.mxu0  ;;  %7856 = vmatprep.subr.bf16.mxu0 %v8699_v63  ;;  %7878 = vmatprep.subr.bf16.mxu1 %v8700_v2  ;;  %v8732_v63 = vld [vmem:[#allocation9 + $0x4c8] sm:$0xff]   ;;  %v3384_v2 = vrot.slane %v9172_v18, %v9113_v59 }
 0x372   :  { %v4551_v12 = vadd.f32 %v4550_v8, %v3368_v34  ;;  %v4592_v49 = vadd.f32 %v4591_v9, %v3376_v3  ;;  %v3392_v34 = vrot.slane %v9172_v18, %v9116_v60  ;;  %v3388_v3 = vrot.slane %v9172_v18, %v9121_v0  ;;  %v8735_v9 = vld [vmem:[#allocation9 + $0x440] sm:$0xff]  }
 0x373   :  { %v4552_v13 = vpop.f32.mrf.mxu1  ;;  %v4593_v14 = vpop.f32.mrf.mxu0  ;;  %v8737_v0 = vld [vmem:[#allocation9 + $0x400] sm:$0xff]  }
 0x374   :  { %v4553_v62 = vadd.f32 %v4552_v13, %v3372_v4  ;;  %v4594_v15 = vadd.f32 %v4593_v14, %v3380_v5  ;;  %7857 = vmatpush3.bf16.msra.mxu0 %v8701_v6  ;;  %7879 = vmatpush3.bf16.msra.mxu1 %v8702_v7  ;;  %v4732_v16 = vmax.f32 %v4551_v12, 0.0  ;;  %v4734_v53 = vmax.f32 %v4592_v49, 0.0  ;;  %v8733_v5 = vld [vmem:[#allocation9 + $0x408] sm:$0xff]   ;;  %v8738_v14 = vld [vmem:[#allocation9 + $0x480] sm:$0xff]  }
 0x375   :  { %v4554_v54 = vpop.f32.mrf.mxu1  ;;  %v4595_v19 = vpop.f32.mrf.mxu0  ;;  %7858 = vmatprep.subr.bf16.mxu0 %v8703_v10  ;;  %7880 = vmatprep.subr.bf16.mxu1 %v8704_v11  ;;  %v3396_v4 = vrot.slane %v9172_v18, %v9124_v1  ;;  %v8734_v6 = vld [vmem:[#allocation9 + $0x488] sm:$0xff]   ;;  %v8736_v10 = vld [vmem:[#allocation9 + $0x4c0] sm:$0xff]  }
 0x376   :  { %v4733_v22 = vmax.f32 %v4553_v62, 0.0  ;;  %v4735_v23 = vmax.f32 %v4594_v15, 0.0  ;;  %v4753_v30 = vpack.c.bf16 %v4732_v16, %v4732_v16  ;;  %v4755_v31 = vpack.c.bf16 %v4734_v53, %v4734_v53 }
 0x377   :  { %v4555_v24 = vpop.f32.mrf.mxu1  ;;  %v4596_v25 = vpop.f32.mrf.mxu0 }
 0x378   :  { %v4754_v26 = vpack.c.bf16 %v4733_v22, %v4733_v22  ;;  %v4756_v27 = vpack.c.bf16 %v4735_v23, %v4735_v23  ;;  %7859 = vmatpush3.bf16.msra.mxu0 %v8705_v52  ;;  %7881 = vmatpush3.bf16.msra.mxu1 %v8706_v56  ;;  %v8740_v24 = vld [vmem:[#allocation9 + $0x530] sm:$0xff]   ;;  %v8741_v25 = vld [vmem:[#allocation9 + $0x528] sm:$0xff]  }
 0x379   :  { %7888 = vmatprep.subr.bf16.mxu0 %v8707_v20  ;;  %7910 = vmatprep.subr.bf16.mxu1 %v8708_v21  ;;  %v8739_v21 = vld [vmem:[#allocation9 + $0x538] sm:$0xff]  }
 0x37a   :  { %6385 = vmatprep.mubr.bf16.mxu0 %v4754_v26  ;;  %6425 = vmatprep.mubr.bf16.mxu1 %v4756_v27  ;;  %v8742_v26 = vld [vmem:[#allocation9 + $0x520] sm:$0xff]   ;;  %v8743_v27 = vld [vmem:[#allocation9 + $0x518] sm:$0xff]  }
 0x37b   :  { %6386 = vmatmul.mubr.bf16.vlgmr.msra.gmra.mxu0 %v4753_v30  ;;  %6426 = vmatmul.mubr.bf16.vlgmr.msra.gmra.mxu1 %v4755_v31  ;;  %v8745_v30 = vld [vmem:[#allocation9 + $0x508] sm:$0xff]  }
 0x37c   :  { %7889 = vmatpush3.bf16.msra.mxu0 %v8709_v28  ;;  %7911 = vmatpush3.bf16.msra.mxu1 %v8710_v29  ;;  %v8744_v28 = vld [vmem:[#allocation9 + $0x510] sm:$0xff]   ;;  %v3400_v29 = vrot.slane %v9172_v18, %v9135_v48  ;;  %v7151_v48 = vld [vmem:[#allocation10] ss:$0 sm:$0xff] }
 0x37d   :  { %7890 = vmatprep.subr.bf16.mxu0 %v8711_v32  ;;  %7912 = vmatprep.subr.bf16.mxu1 %v8712_v33  ;;  %v8747_v18 = vld [vmem:[#allocation12 + $0x38] sm:$0xff]  }
 0x380   :  { %7891 = vmatpush3.bf16.msra.mxu0 %v8713_v35  ;;  %7913 = vmatpush3.bf16.msra.mxu1 %v8714_v36  ;;  %v8746_v35 = vld [vmem:[#allocation9 + $0x500] sm:$0xff]  }
 0x381   :  { %7892 = vmatprep.subr.bf16.mxu0 %v8715_v37  ;;  %7914 = vmatprep.subr.bf16.mxu1 %v8716_v38 }
 0x384   :  { %7893 = vmatpush3.bf16.msra.mxu0 %v8717_v39  ;;  %7915 = vmatpush3.bf16.msra.mxu1 %v8718_v40 }
 0x385   :  { %7894 = vmatprep.subr.bf16.mxu0 %v8719_v41  ;;  %7916 = vmatprep.subr.bf16.mxu1 %v8720_v42 }
 0x388   :  { %7895 = vmatpush3.bf16.msra.mxu0 %v8721_v43  ;;  %7917 = vmatpush3.bf16.msra.mxu1 %v8722_v44 }
 0x389   :  { %7896 = vmatprep.subr.bf16.mxu0 %v8723_v45  ;;  %7918 = vmatprep.subr.bf16.mxu1 %v8724_v46 }
 0x38c   :  { %7897 = vmatpush3.bf16.msra.mxu0 %v8725_v47  ;;  %7919 = vmatpush3.bf16.msra.mxu1 %v8726_v50 }
 0x38d   :  { %7898 = vmatprep.subr.bf16.mxu0 %v8727_v51  ;;  %7920 = vmatprep.subr.bf16.mxu1 %v8728_v55 }
 0x390   :  { %7899 = vmatpush3.bf16.msra.mxu0 %v8729_v57  ;;  %7921 = vmatpush3.bf16.msra.mxu1 %v8730_v58  ;;  %v8748_v58 = vld [vmem:[#allocation12 + $0x30] sm:$0xff]  }
 0x391   :  { %v4632_v7 = vpop.f32.mrf.mxu1  ;;  %v4673_v8 = vpop.f32.mrf.mxu0  ;;  %7900 = vmatprep.subr.bf16.mxu0 %v8731_v61  ;;  %7922 = vmatprep.subr.bf16.mxu1 %v8732_v63  ;;  %v8749_v61 = vld [vmem:[#allocation12 + $0x28] sm:$0xff]   ;;  %v8750_v63 = vld [vmem:[#allocation12 + $0x20] sm:$0xff]  }
 0x392   :  { %v4633_v59 = vadd.f32 %v4632_v7, %v3384_v2  ;;  %v4674_v11 = vadd.f32 %v4673_v8, %v3392_v34  ;;  %v8751_v2 = vld [vmem:[#allocation12 + $0x18] sm:$0xff]   ;;  %v8752_v34 = vld [vmem:[#allocation12 + $0x10] sm:$0xff]   ;;  %v8754_v8 = vld [vmem:[#allocation12] sm:$0xff]  }
 0x393   :  { %v4634_v12 = vpop.f32.mrf.mxu1  ;;  %v4675_v60 = vpop.f32.mrf.mxu0 }
 0x394   :  { %v4635_v49 = vadd.f32 %v4634_v12, %v3388_v3  ;;  %v4676_v13 = vadd.f32 %v4675_v60, %v3396_v4  ;;  %7901 = vmatpush3.bf16.msra.mxu0 %v8733_v5  ;;  %7923 = vmatpush3.bf16.msra.mxu1 %v8734_v6  ;;  %v4736_v62 = vmax.f32 %v4633_v59, 0.0  ;;  %v4738_v1 = vmax.f32 %v4674_v11, 0.0  ;;  %v8753_v3 = vld [vmem:[#allocation12 + $0x8] sm:$0xff]  }
 0x395   :  { %v4636_v15 = vpop.f32.mrf.mxu1  ;;  %v4677_v52 = vpop.f32.mrf.mxu0  ;;  %7902 = vmatprep.subr.bf16.mxu0 %v8735_v9  ;;  %7924 = vmatprep.subr.bf16.mxu1 %v8736_v10 }
 0x396   :  { %v4737_v56 = vmax.f32 %v4635_v49, 0.0  ;;  %v4739_v16 = vmax.f32 %v4676_v13, 0.0  ;;  %v4757_v22 = vpack.c.bf16 %v4736_v62, %v4736_v62  ;;  %v4759_v23 = vpack.c.bf16 %v4738_v1, %v4738_v1 }
 0x397   :  { %v4637_v53 = vpop.f32.mrf.mxu1  ;;  %v4678_v54 = vpop.f32.mrf.mxu0 }
 0x398   :  { %v4758_v19 = vpack.c.bf16 %v4737_v56, %v4737_v56  ;;  %v4760_v20 = vpack.c.bf16 %v4739_v16, %v4739_v16  ;;  %7903 = vmatpush3.bf16.msra.mxu0 %v8737_v0  ;;  %7925 = vmatpush3.bf16.msra.mxu1 %v8738_v14 }
 0x399   :  { %7970 = vmatprep.subr.bf16.mxu0 %v8938_v17  ;;  %7990 = vmatprep.subr.bf16.mxu1 %v8938_v17 }
 0x39a   :  { %6465 = vmatprep.mubr.bf16.mxu0 %v4758_v19  ;;  %6505 = vmatprep.mubr.bf16.mxu1 %v4760_v20 }
 0x39b   :  { %6466 = vmatmul.mubr.bf16.vlgmr.msra.gmra.mxu0 %v4757_v22  ;;  %6506 = vmatmul.mubr.bf16.vlgmr.msra.gmra.mxu1 %v4759_v23 }
 0x39c   :  { %7971 = vmatpush3.bf16.msra.mxu0 %v8739_v21  ;;  %7986 = vmatprep.mubr.msk.bf16.mxu0 %vm8939_vm0, %v8938_v17 }
 0x39d   :  { %7972 = vmatprep.subr.bf16.mxu0 %v8938_v17  ;;  %8006 = vmatprep.mubr.msk.bf16.mxu1 %vm8939_vm0, %v8938_v17 }
 0x39e   :  { %7991 = vmatpush3.bf16.msra.mxu1 %v8747_v18  ;;  %v7320_v18 = vld [vmem:[#allocation13] ss:$0 sm:$0xff] }
 0x39f   :  { %7992 = vmatprep.subr.bf16.mxu1 %v8938_v17 }
 0x3a0   :  { %7973 = vmatpush3.bf16.msra.mxu0 %v8740_v24 }
 0x3a1   :  { %7974 = vmatprep.subr.bf16.mxu0 %v8938_v17 }
 0x3a2   :  { %7993 = vmatpush3.bf16.msra.mxu1 %v8748_v58 }
 0x3a3   :  { %7994 = vmatprep.subr.bf16.mxu1 %v8938_v17 }
 0x3a4   :  { %7975 = vmatpush3.bf16.msra.mxu0 %v8741_v25 }
 0x3a5   :  { %7976 = vmatprep.subr.bf16.mxu0 %v8938_v17 }
 0x3a6   :  { %7995 = vmatpush3.bf16.msra.mxu1 %v8749_v61 }
 0x3a7   :  { %7996 = vmatprep.subr.bf16.mxu1 %v8938_v17 }
 0x3a8   :  { %7977 = vmatpush3.bf16.msra.mxu0 %v8742_v26 }
 0x3a9   :  { %7978 = vmatprep.subr.bf16.mxu0 %v8938_v17 }
 0x3aa   :  { %7997 = vmatpush3.bf16.msra.mxu1 %v8750_v63 }
 0x3ab   :  { %7998 = vmatprep.subr.bf16.mxu1 %v8938_v17 }
 0x3ac   :  { %7979 = vmatpush3.bf16.msra.mxu0 %v8743_v27 }
 0x3ad   :  { %7980 = vmatprep.subr.bf16.mxu0 %v8938_v17 }
 0x3ae   :  { %7999 = vmatpush3.bf16.msra.mxu1 %v8751_v2 }
 0x3af   :  { %8000 = vmatprep.subr.bf16.mxu1 %v8938_v17 }
 0x3b0   :  { %7981 = vmatpush3.bf16.msra.mxu0 %v8744_v28 }
 0x3b1   :  { %v4714_v31 = vpop.f32.mrf.mxu1  ;;  %7982 = vmatprep.subr.bf16.mxu0 %v8938_v17 }
 0x3b2   :  { %v4715_v32 = vadd.f32 %v4714_v31, %v3400_v29  ;;  %8001 = vmatpush3.bf16.msra.mxu1 %v8752_v34 }
 0x3b3   :  { %v7968_v33 = vpop.f32.mrf.mxu1  ;;  %8002 = vmatprep.subr.bf16.mxu1 %v8938_v17 }
 0x3b4   :  { %7983 = vmatpush3.bf16.msra.mxu0 %v8745_v30  ;;  %v4740_v36 = vmax.f32 %v4715_v32, 0.0 }
 0x3b5   :  { %v4717_v37 = vpop.f32.mrf.mxu1  ;;  %7984 = vmatprep.subr.bf16.mxu0 %v8938_v17 }
 0x3b6   :  { %v4761_v39 = vpack.c.bf16 %v4740_v36, %v4740_v36  ;;  %8003 = vmatpush3.bf16.msra.mxu1 %v8753_v3 }
 0x3b7   :  { %v7969_v38 = vpop.f32.mrf.mxu1  ;;  %8004 = vmatprep.subr.bf16.mxu1 %v8938_v17 }
 0x3b8   :  { %7985 = vmatpush3.bf16.msra.mxu0 %v8746_v35 }
 0x3ba   :  { %8005 = vmatpush3.bf16.msra.mxu1 %v8754_v8 }
 0x3bb   :  { %7987 = vmatmul.mubr.bf16.vlgmr.msra.gmra.mxu0 %v4761_v39 }
 0x3db   :  { %v7728_v40 = vpop.f32.mrf.mxu0  ;;  %v7750_v41 = vpop.f32.mrf.mxu1 }
 0x3dd   :  { %v7729_v42 = vpop.f32.mrf.mxu0  ;;  %v7751_v43 = vpop.f32.mrf.mxu1 }
 0x3de   :  { %v7730_v44 = vadd.f32 %v7729_v42, %v7728_v40  ;;  %v7752_v45 = vadd.f32 %v7751_v43, %v7750_v41 }
 0x3df   :  { %v7731_v46 = vpop.f32.mrf.mxu0  ;;  %v7753_v47 = vpop.f32.mrf.mxu1 }
 0x3e0   :  { %v6148_v50 = vadd.f32 %v7730_v44, %v7151_v48 }
 0x3e1   :  { %v7732_v51 = vpop.f32.mrf.mxu0  ;;  %v7754_v55 = vpop.f32.mrf.mxu1 }
 0x3e2   :  { %v6188_v57 = vadd.f32 %v7752_v45, %v6148_v50 }
 0x3fb   :  { %v7772_v4 = vpop.f32.mrf.mxu0  ;;  %v7794_v5 = vpop.f32.mrf.mxu1 }
 0x3fd   :  { %v7773_v6 = vpop.f32.mrf.mxu0  ;;  %v7795_v7 = vpop.f32.mrf.mxu1 }
 0x3fe   :  { %v7774_v9 = vadd.f32 %v7773_v6, %v7772_v4  ;;  %v7796_v10 = vadd.f32 %v7795_v7, %v7794_v5 }
 0x3ff   :  { %v7775_v59 = vpop.f32.mrf.mxu0  ;;  %v7797_v11 = vpop.f32.mrf.mxu1 }
 0x400   :  { %v6228_v12 = vadd.f32 %v7774_v9, %v6188_v57 }
 0x401   :  { %v7776_v60 = vpop.f32.mrf.mxu0  ;;  %v7798_v49 = vpop.f32.mrf.mxu1 }
 0x402   :  { %v6268_v13 = vadd.f32 %v7796_v10, %v6228_v12 }
 0x41b   :  { %v7816_v0 = vpop.f32.mrf.mxu0  ;;  %v7838_v14 = vpop.f32.mrf.mxu1 }
 0x41d   :  { %v7817_v62 = vpop.f32.mrf.mxu0  ;;  %v7839_v1 = vpop.f32.mrf.mxu1 }
 0x41e   :  { %v7818_v15 = vadd.f32 %v7817_v62, %v7816_v0  ;;  %v7840_v52 = vadd.f32 %v7839_v1, %v7838_v14 }
 0x41f   :  { %v7819_v56 = vpop.f32.mrf.mxu0  ;;  %v7841_v17 = vpop.f32.mrf.mxu1 }
 0x420   :  { %v6308_v16 = vadd.f32 %v7818_v15, %v6268_v13 }
 0x421   :  { %v7820_v53 = vpop.f32.mrf.mxu0  ;;  %v7842_v54 = vpop.f32.mrf.mxu1 }
 0x422   :  { %v6348_v19 = vadd.f32 %v7840_v52, %v6308_v16 }
 0x43b   :  { %v7860_v20 = vpop.f32.mrf.mxu0  ;;  %v7882_v21 = vpop.f32.mrf.mxu1 }
 0x43d   :  { %v7861_v22 = vpop.f32.mrf.mxu0  ;;  %v7883_v23 = vpop.f32.mrf.mxu1 }
 0x43e   :  { %v7862_v37 = vadd.f32 %v7861_v22, %v7860_v20  ;;  %v7884_v39 = vadd.f32 %v7883_v23, %v7882_v21 }
 0x43f   :  { %v7863_v24 = vpop.f32.mrf.mxu0  ;;  %v7885_v25 = vpop.f32.mrf.mxu1 }
 0x440   :  { %v6388_v38 = vadd.f32 %v7862_v37, %v6348_v19 }
 0x441   :  { %v7864_v26 = vpop.f32.mrf.mxu0  ;;  %v7886_v27 = vpop.f32.mrf.mxu1 }
 0x442   :  { %v6428_v41 = vadd.f32 %v7884_v39, %v6388_v38 }
 0x45b   :  { %v7904_v28 = vpop.f32.mrf.mxu0  ;;  %v7926_v29 = vpop.f32.mrf.mxu1 }
 0x45d   :  { %v7905_v30 = vpop.f32.mrf.mxu0  ;;  %v7927_v31 = vpop.f32.mrf.mxu1 }
 0x45e   :  { %v7906_v40 = vadd.f32 %v7905_v30, %v7904_v28  ;;  %v7928_v42 = vadd.f32 %v7927_v31, %v7926_v29 }
 0x45f   :  { %v7907_v32 = vpop.f32.mrf.mxu0  ;;  %v7929_v33 = vpop.f32.mrf.mxu1 }
 0x460   :  { %v6468_v48 = vadd.f32 %v7906_v40, %v6428_v41 }
 0x461   :  { %v7908_v35 = vpop.f32.mrf.mxu0  ;;  %v7930_v36 = vpop.f32.mrf.mxu1 }
 0x462   :  { %v6508_v43 = vadd.f32 %v7928_v42, %v6468_v48 }
 0x47b   :  { %v6547_v44 = vpop.f32.mrf.mxu0 }
 0x47c   :  { %v6548_v45 = vadd.f32 %v6547_v44, %v6508_v43 }
 0x47d   :  { %v7988_v46 = vpop.f32.mrf.mxu0 }
 0x47e   :  { %v6553_v47 = vmax.f32 %v6548_v45, 0.0 }
 0x47f   :  { %v6550_v50 = vpop.f32.mrf.mxu0 }
 0x480   :  { %v6554_v51 = vpack.c.bf16 %v6553_v47, %v6553_v47 }
 0x481   :  { %v7989_v55 = vpop.f32.mrf.mxu0 }
 0x482   :  { %8007 = vmatmul.mubr.bf16.vlgmr.msra.gmra.mxu1 %v6554_v51 }
 0x542   :  { %v6660_v57 = vpop.f32.mrf.mxu1 }
 0x543   :  { %v6661_v58 = vadd.f32 %v7320_v18, %v6660_v57 }
 0x544   :  { %v8008_v61 = vpop.f32.mrf.mxu1 }
 0x545   :  { %6666 = vst [vmem:[%s9216_s9] sm:$0xff] %v6661_v58 }
 0x546   :  { %v6663_v63 = vpop.f32.mrf.mxu1 }
 0x548   :  { %v8009_v2 = vpop.f32.mrf.mxu1 }
 0x549   :  { %6671 = vsyncpa [#allocation3], 1 }
 0x54a   :  { %6672 = vsyncpa [#allocation5], 1 }
 0x54b   :  { %6673 = vsyncpa [#allocation8], 1 }
 0x54c   :  { %6674 = vsyncpa [#allocation11], 1 }
 0x54d   :  { %6675 = vsyncpa [#allocation14], 1 }

</bundles_post_ra>
